<compile_context>
chip_gen: v7x
topology: tpu7x:2x2x1
jax: 0.10.0
libtpu: 0.0.40
codegen_flags: <defaults>
</compile_context>

<pallas_src>
import math
import jax
import jax.numpy as jnp
from jax import lax
from jax.experimental import pallas as pl
from jax.experimental.pallas import tpu as pltpu

# ----------------------------- config (small synthetic ViT) -----------------------------
BATCH = 2
IN_CH = 3
IMG = 64
PATCH = 16
GRID_HW = IMG // PATCH            # 4
NUM_PATCH = GRID_HW * GRID_HW     # 16
SEQ = NUM_PATCH + 1               # 17 (CLS + patches)
L_PAD = 32                        # padded sequence (sublane multiple)
EMBED = 128
HEADS = 4
HEAD_DIM = EMBED // HEADS         # 32
DEPTH = 2
MLP_HIDDEN = 4 * EMBED            # 512
LN_EPS = 1e-6                     # timm/DINO ViT LayerNorm eps
CPP = IN_CH * PATCH * PATCH       # 768
BL = BATCH * L_PAD                # 64 (batch folded into matmul rows)
NEG_INF = -1e30
STATIC_ROWS = BL + 8              # addend rows + [norm_g, norm_b, pad]
SMALL_ROWS = 16                   # per-layer packed small-param slab rows


# ----------------------------- in-kernel math helpers -----------------------------
def _erf(x):
    # Abramowitz & Stegun 7.1.26 rational approximation (max abs err ~1.5e-7).
    a1, a2, a3, a4, a5 = 0.254829592, -0.284496736, 1.421413741, -1.453152027, 1.061405429
    p = 0.3275911
    sgn = jnp.where(x >= 0.0, 1.0, -1.0)
    ax = jnp.abs(x)
    t = 1.0 / (1.0 + p * ax)
    poly = ((((a5 * t + a4) * t + a3) * t + a2) * t + a1) * t
    return sgn * (1.0 - poly * jnp.exp(-ax * ax))


def _gelu_exact(x):
    # nn.GELU() default (erf-based)
    return 0.5 * x * (1.0 + _erf(x * (1.0 / math.sqrt(2.0))))


def _layernorm(x, gamma, beta):
    mu = jnp.mean(x, axis=-1, keepdims=True)
    var = jnp.mean(jnp.square(x - mu), axis=-1, keepdims=True)
    return (x - mu) * lax.rsqrt(var + LN_EPS) * gamma + beta


# ----------------------------- fused depth-gridded Pallas kernel -----------------------------
def fused_vit_kernel(patches_ref, pw_ref, static_ref, mask_ref,
                     qkv_w_ref, proj_w_ref, fc1_w_ref, fc2_w_ref, small_ref,
                     o_ref, x_ref):
    d = pl.program_id(0)

    # d == 0: patch embed (zero rows for CLS/pad slots) + folded (conv bias + CLS + pos) addend.
    @pl.when(d == 0)
    def _init():
        x_ref[...] = (jnp.dot(patches_ref[...], pw_ref[...],
                              preferred_element_type=jnp.float32)
                      + static_ref[0:BL, :])

    # per-layer packed small params: one (16, 128) slab, static sublane slices (free).
    small = small_ref[0]
    ln1_g, ln1_b = small[0:1, :], small[1:2, :]
    ln2_g, ln2_b = small[2:3, :], small[3:4, :]
    proj_b, fc2_b = small[4:5, :], small[5:6, :]
    qb, kb, vb = small[6:7, :], small[7:8, :], small[8:9, :]
    fc1_b = jnp.concatenate([small[9 + i:10 + i, :] for i in range(4)], axis=1)  # (1, 512)

    x = x_ref[...]                               # (BL, D) resident token slab
    mask = mask_ref[...]                         # (BL, BL) additive block-diag/pad mask

    # ---- self-attention: x = x + proj(attn(LN1(x))) ----
    xn = _layernorm(x, ln1_g, ln1_b)
    qkv = jnp.dot(xn, qkv_w_ref[0], preferred_element_type=jnp.float32)   # (BL, 3D)
    heads = []
    for h in range(HEADS):                       # static unroll over heads
        lo, hi = h * HEAD_DIM, (h + 1) * HEAD_DIM
        q_h = qkv[:, lo:hi] + qb[:, lo:hi]                       # 1/sqrt(dh) pre-folded
        k_h = qkv[:, EMBED + lo:EMBED + hi] + kb[:, lo:hi]
        v_h = qkv[:, 2 * EMBED + lo:2 * EMBED + hi] + vb[:, lo:hi]
        # q_h @ k_h.T without an explicit transpose (contract on dim 1 of both)
        s = lax.dot_general(q_h, k_h, (((1,), (1,)), ((), ())),
                            preferred_element_type=jnp.float32)  # (BL, BL)
        s = s + mask
        s = s - jnp.max(s, axis=-1, keepdims=True)
        p = jnp.exp(s)
        p = p * pl.reciprocal(jnp.sum(p, axis=-1, keepdims=True), approx=True)
        heads.append(jnp.dot(p, v_h, preferred_element_type=jnp.float32))  # (BL, HD)
    attn = jnp.concatenate(heads, axis=1)                                   # (BL, D)
    x = x + jnp.dot(attn, proj_w_ref[0], preferred_element_type=jnp.float32) + proj_b

    # ---- MLP: x = x + fc2(GELU(fc1(LN2(x)))) ----
    xn2 = _layernorm(x, ln2_g, ln2_b)
    hdn = jnp.dot(xn2, fc1_w_ref[0], preferred_element_type=jnp.float32) + fc1_b
    hdn = _gelu_exact(hdn)
    x = x + jnp.dot(hdn, fc2_w_ref[0], preferred_element_type=jnp.float32) + fc2_b

    x_ref[...] = x

    # last layer: final LayerNorm, lane-dense (BL, 128) output
    @pl.when(d == pl.num_programs(0) - 1)
    def _final():
        tail = static_ref[BL:BL + 8, :]          # aligned 8-row tail: [norm_g, norm_b, pad]
        o_ref[...] = _layernorm(x, tail[0:1, :], tail[1:2, :])


def run_fused(padded_patches, prep):
    inputs = (padded_patches, prep['patch_w'], prep['static'], prep['mask'],
              prep['qkv_w'], prep['proj_w'], prep['fc1_w'], prep['fc2_w'], prep['small'])

    flops = (2 * BL * CPP * EMBED
             + DEPTH * (2 * BL * EMBED * 3 * EMBED
                        + HEADS * 2 * 2 * BL * BL * HEAD_DIM
                        + 2 * BL * EMBED * EMBED
                        + 2 * 2 * BL * EMBED * MLP_HIDDEN))
    transcendentals = DEPTH * (HEADS * BL * BL + BL * MLP_HIDDEN)
    bytes_accessed = sum(int(a.size) * 4 for a in inputs) + BL * EMBED * 4

    return pl.pallas_call(
        fused_vit_kernel,
        out_shape=jax.ShapeDtypeStruct((BL, EMBED), jnp.float32),
        grid=(DEPTH,),
        in_specs=[
            # depth-invariant blocks (fetched once, stay resident)
            pl.BlockSpec((BL, CPP), lambda d: (0, 0)),
            pl.BlockSpec((CPP, EMBED), lambda d: (0, 0)),
            pl.BlockSpec((STATIC_ROWS, EMBED), lambda d: (0, 0)),
            pl.BlockSpec((BL, BL), lambda d: (0, 0)),
            # per-layer weight blocks (double-buffered across the depth grid)
            pl.BlockSpec((1, EMBED, 3 * EMBED), lambda d: (d, 0, 0)),
            pl.BlockSpec((1, EMBED, EMBED), lambda d: (d, 0, 0)),
            pl.BlockSpec((1, EMBED, MLP_HIDDEN), lambda d: (d, 0, 0)),
            pl.BlockSpec((1, MLP_HIDDEN, EMBED), lambda d: (d, 0, 0)),
            pl.BlockSpec((1, SMALL_ROWS, EMBED), lambda d: (d, 0, 0)),
        ],
        out_specs=pl.BlockSpec((BL, EMBED), lambda d: (0, 0)),
        scratch_shapes=[pltpu.VMEM((BL, EMBED), jnp.float32)],
        compiler_params=pltpu.CompilerParams(
            dimension_semantics=("arbitrary",),
            vmem_limit_bytes=32 * 1024 * 1024),
        cost_estimate=pl.CostEstimate(flops=flops, transcendentals=transcendentals,
                                      bytes_accessed=bytes_accessed),
    )(*inputs)


# ----------------------------- host-side glue (tiny, plain JAX) -----------------------------
def patchify(x):
    # NCHW -> (B, num_patches, C*P*P) with (C, kh, kw) flatten order
    # (exactly what Conv2d(kernel=stride=PATCH) contracts per output position).
    B, C, H, W = x.shape
    h, w = H // PATCH, W // PATCH
    p = x.reshape(B, C, h, PATCH, w, PATCH)
    p = p.transpose(0, 2, 4, 1, 3, 5)
    return p.reshape(B, h * w, C * PATCH * PATCH)


def pad_patches(patches):
    # (B, NUM_PATCH, CPP) -> (B*L_PAD, CPP); CLS slot (row 0) and pad rows are zero so
    # their patch-embed contribution is zero.
    padded = jnp.pad(patches, ((0, 0), (1, L_PAD - 1 - NUM_PATCH), (0, 0)))
    return padded.reshape(BATCH * L_PAD, CPP)


def prepare_params(params):
    scale = 1.0 / math.sqrt(HEAD_DIM)

    # per-row additive term: CLS row = cls + pos[0]; patch rows = conv_bias + pos[1+i];
    # pad rows = 0.  Final-norm gamma/beta appended (aligned tail rows BL, BL+1).
    cls_row = (params['cls'][0, 0] + params['pos'][0, 0])[None, :]
    patch_rows = params['patch_b'] + params['pos'][0, 1:SEQ]
    pad_rows = jnp.zeros((L_PAD - SEQ, EMBED), jnp.float32)
    per_b = jnp.concatenate([cls_row, patch_rows, pad_rows], axis=0)
    addend = jnp.tile(per_b, (BATCH, 1))
    static = jnp.concatenate(
        [addend, params['norm_g'], params['norm_b'],
         jnp.zeros((STATIC_ROWS - BL - 2, EMBED), jnp.float32)], axis=0)

    # additive mask: valid iff query/key in same batch AND key is a real token
    idx = jnp.arange(BL)
    key_real = (idx % L_PAD) < SEQ
    same_b = (idx // L_PAD)[:, None] == (idx // L_PAD)[None, :]
    mask = jnp.where(same_b & key_real[None, :], 0.0, NEG_INF).astype(jnp.float32)

    qkv_w, proj_w, fc1_w, fc2_w, small = [], [], [], [], []
    for blk in params['blocks']:
        # fold the 1/sqrt(head_dim) softmax scale into the q columns of qkv_w / qkv_b
        w = jnp.concatenate([blk['qkv_w'][:, :EMBED] * scale, blk['qkv_w'][:, EMBED:]], axis=1)
        qkv_w.append(w)
        proj_w.append(blk['proj_w'])
        fc1_w.append(blk['fc1_w'])
        fc2_w.append(blk['fc2_w'])
        qb = blk['qkv_b'][:, 0:EMBED] * scale
        kb = blk['qkv_b'][:, EMBED:2 * EMBED]
        vb = blk['qkv_b'][:, 2 * EMBED:3 * EMBED]
        rows = jnp.concatenate(
            [blk['ln1_g'], blk['ln1_b'], blk['ln2_g'], blk['ln2_b'],
             blk['proj_b'], blk['fc2_b'], qb, kb, vb,
             blk['fc1_b'].reshape(4, EMBED),
             jnp.zeros((SMALL_ROWS - 13, EMBED), jnp.float32)], axis=0)
        small.append(rows)

    return {'patch_w': params['patch_w'], 'static': static, 'mask': mask,
            'qkv_w': jnp.stack(qkv_w), 'proj_w': jnp.stack(proj_w),
            'fc1_w': jnp.stack(fc1_w), 'fc2_w': jnp.stack(fc2_w),
            'small': jnp.stack(small)}


@jax.jit
def custom_dino_forward(x, prep):
    B = x.shape[0]
    padded = pad_patches(patchify(x))
    out2d = run_fused(padded, prep)                      # (BL, D)
    tok = out2d.reshape(B, L_PAD, EMBED)[:, 1:SEQ]       # drop CLS, drop pad rows
    out = tok.reshape(B, GRID_HW, GRID_HW, EMBED)        # (bs, h, w, c)
    return jnp.transpose(out, (0, 3, 1, 2))              # .permute(0, 3, 1, 2) -> NCHW


# ----------------------------- parameter init (deterministic, synthetic) -----------------------------
def init_params(key):
    def nrm(k, shape, scale=0.02):
        return (scale * jax.random.normal(k, shape)).astype(jnp.float32)

    keys = jax.random.split(key, 5 + DEPTH)
    params = {
        'patch_w': nrm(keys[0], (CPP, EMBED)),
        'patch_b': nrm(keys[1], (1, EMBED)),
        'cls': nrm(keys[2], (1, 1, EMBED)),
        'pos': nrm(keys[3], (1, SEQ, EMBED)),
        'norm_g': jnp.ones((1, EMBED), jnp.float32),
        'norm_b': jnp.zeros((1, EMBED), jnp.float32),
        'blocks': [],
    }
    for d in range(DEPTH):
        bk = jax.random.split(keys[5 + d], 12)
        params['blocks'].append({
            'ln1_g': 1.0 + nrm(bk[0], (1, EMBED), 0.01),
            'ln1_b': nrm(bk[1], (1, EMBED), 0.01),
            'qkv_w': nrm(bk[2], (EMBED, 3 * EMBED)),
            'qkv_b': nrm(bk[3], (1, 3 * EMBED), 0.01),
            'proj_w': nrm(bk[4], (EMBED, EMBED)),
            'proj_b': nrm(bk[5], (1, EMBED), 0.01),
            'ln2_g': 1.0 + nrm(bk[6], (1, EMBED), 0.01),
            'ln2_b': nrm(bk[7], (1, EMBED), 0.01),
            'fc1_w': nrm(bk[8], (EMBED, MLP_HIDDEN)),
            'fc1_b': nrm(bk[9], (1, MLP_HIDDEN), 0.01),
            'fc2_w': nrm(bk[10], (MLP_HIDDEN, EMBED)),
            'fc2_b': nrm(bk[11], (1, EMBED), 0.01),
        })
    return params


# ----------------------------- pure-JAX reference (validation) -----------------------------
def _ref_ln(x, g, b):
    mu = jnp.mean(x, axis=-1, keepdims=True)
    var = jnp.mean(jnp.square(x - mu), axis=-1, keepdims=True)
    return (x - mu) / jnp.sqrt(var + LN_EPS) * g + b


def _ref_block(x, blk):
    B, L, D = x.shape
    xn = _ref_ln(x, blk['ln1_g'][0], blk['ln1_b'][0])
    qkv = xn @ blk['qkv_w'] + blk['qkv_b'][0]
    q, k, v = jnp.split(qkv, 3, axis=-1)
    hview = lambda t: t.reshape(B, L, HEADS, HEAD_DIM).transpose(0, 2, 1, 3)
    q, k, v = hview(q), hview(k), hview(v)
    s = jnp.einsum('bhld,bhmd->bhlm', q, k) / math.sqrt(HEAD_DIM)
    p = jax.nn.softmax(s, axis=-1)
    a = jnp.einsum('bhlm,bhmd->bhld', p, v).transpose(0, 2, 1, 3).reshape(B, L, D)
    x = x + a @ blk['proj_w'] + blk['proj_b'][0]
    xn2 = _ref_ln(x, blk['ln2_g'][0], blk['ln2_b'][0])
    h = jax.nn.gelu(xn2 @ blk['fc1_w'] + blk['fc1_b'][0], approximate=False)
    return x + h @ blk['fc2_w'] + blk['fc2_b'][0]


def reference_forward(x, params):
    B = x.shape[0]
    tok = patchify(x) @ params['patch_w'] + params['patch_b'][0]
    tok = jnp.concatenate([jnp.broadcast_to(params['cls'], (B, 1, EMBED)), tok], axis=1)
    tok = tok + params['pos']
    for blk in params['blocks']:
        tok = _ref_block(tok, blk)
    tok = _ref_ln(tok, params['norm_g'][0], params['norm_b'][0])
    out = tok[:, 1:].reshape(B, GRID_HW, GRID_HW, EMBED)
    return jnp.transpose(out, (0, 3, 1, 2))


# ----------------------------- main -----------------------------
if __name__ == "__main__":
    key = jax.random.PRNGKey(0)
    pkey, xkey = jax.random.split(key)
    params = init_params(pkey)
    x = jax.random.normal(xkey, (BATCH, IN_CH, IMG, IMG), dtype=jnp.float32)

    prep = prepare_params(params)
    out = jax.block_until_ready(custom_dino_forward(x, prep))
    assert out.shape == (BATCH, EMBED, GRID_HW, GRID_HW), out.shape

    ref = jax.block_until_ready(reference_forward(x, params))
    max_err = float(jnp.max(jnp.abs(out - ref)))
    # slack covers approx (EUP) softmax reciprocal + rational erf approximation
    assert max_err < 2e-3, f"max abs err too large: {max_err}"

    print("KERNEL_OK")
</pallas_src>

<mosaic_0001>
module attributes {stable_mosaic.version = 11 : i64} {
  func.func @fused_vit_kernel(%arg0: i32, %arg1: memref<64x768xf32, #tpu.memory_space<vmem>>, %arg2: memref<768x128xf32, #tpu.memory_space<vmem>>, %arg3: memref<72x128xf32, #tpu.memory_space<vmem>>, %arg4: memref<64x64xf32, #tpu.memory_space<vmem>>, %arg5: memref<1x128x384xf32, #tpu.memory_space<vmem>>, %arg6: memref<1x128x128xf32, #tpu.memory_space<vmem>>, %arg7: memref<1x128x512xf32, #tpu.memory_space<vmem>>, %arg8: memref<1x512x128xf32, #tpu.memory_space<vmem>>, %arg9: memref<1x16x128xf32, #tpu.memory_space<vmem>>, %arg10: memref<64x128xf32, #tpu.memory_space<vmem>>, %arg11: memref<64x128xf32, #tpu.memory_space<vmem>>) attributes {dimension_semantics = [#tpu.dimension_semantics<arbitrary>], iteration_bounds = array<i64: 2>, scalar_prefetch = 0 : i64, scratch_operands = 1 : i64, tpu.core_type = #tpu.core_type<tc>, window_params = [{pipeline_mode = #tpu.pipeline_mode<synchronous>, transform_indices = @transform_0, window_bounds = array<i64: 64, 768>}, {pipeline_mode = #tpu.pipeline_mode<synchronous>, transform_indices = @transform_1, window_bounds = array<i64: 768, 128>}, {pipeline_mode = #tpu.pipeline_mode<synchronous>, transform_indices = @transform_2, window_bounds = array<i64: 72, 128>}, {pipeline_mode = #tpu.pipeline_mode<synchronous>, transform_indices = @transform_3, window_bounds = array<i64: 64, 64>}, {transform_indices = @transform_4, window_bounds = array<i64: 1, 128, 384>}, {transform_indices = @transform_5, window_bounds = array<i64: 1, 128, 128>}, {transform_indices = @transform_6, window_bounds = array<i64: 1, 128, 512>}, {transform_indices = @transform_7, window_bounds = array<i64: 1, 512, 128>}, {transform_indices = @transform_8, window_bounds = array<i64: 1, 16, 128>}, {pipeline_mode = #tpu.pipeline_mode<synchronous>, transform_indices = @transform_9, window_bounds = array<i64: 64, 128>}]} {
    %c0_i32 = arith.constant 0 : i32
    %0 = arith.cmpi eq, %arg0, %c0_i32 : i32
    %1 = arith.extui %0 : i1 to i32
    %c0_i32_0 = arith.constant 0 : i32
    %2 = arith.cmpi ne, %1, %c0_i32_0 : i32
    scf.if %2 {
      %c0_67 = arith.constant 0 : index
      %c0_68 = arith.constant 0 : index
      %231 = vector.load %arg1[%c0_67, %c0_68] : memref<64x768xf32, #tpu.memory_space<vmem>>, vector<64x768xf32>
      %c0_69 = arith.constant 0 : index
      %c0_70 = arith.constant 0 : index
      %232 = vector.load %arg2[%c0_69, %c0_70] : memref<768x128xf32, #tpu.memory_space<vmem>>, vector<768x128xf32>
      %cst_71 = arith.constant dense<0.000000e+00> : vector<64x128xf32>
      %233 = tpu.matmul %231, %232, %cst_71 {dimension_numbers = #tpu.dot_dimension_numbers<[1], [0], [0], [1], [0, 0, 1, 1], [], []>} : vector<64x768xf32>, vector<768x128xf32>, vector<64x128xf32> -> vector<64x128xf32>
      %c0_72 = arith.constant 0 : index
      %c0_73 = arith.constant 0 : index
      %234 = vector.load %arg3[%c0_72, %c0_73] : memref<72x128xf32, #tpu.memory_space<vmem>>, vector<64x128xf32>
      %235 = arith.addf %233, %234 : vector<64x128xf32>
      %c0_74 = arith.constant 0 : index
      %c0_75 = arith.constant 0 : index
      %236 = vector.load %arg11[%c0_74, %c0_75] : memref<64x128xf32, #tpu.memory_space<vmem>>, vector<64x128xf32>
      tpu.vector_store %arg11[%c0_74, %c0_75], %235 {strides = array<i32>} : memref<64x128xf32, #tpu.memory_space<vmem>>, vector<64x128xf32>,
    } else {
    }
    %c0 = arith.constant 0 : index
    %c0_1 = arith.constant 0 : index
    %c0_2 = arith.constant 0 : index
    %3 = vector.load %arg9[%c0, %c0_1, %c0_2] : memref<1x16x128xf32, #tpu.memory_space<vmem>>, vector<1x16x128xf32>
    %4 = vector.shape_cast %3 : vector<1x16x128xf32> to vector<16x128xf32>
    %5 = vector.extract_strided_slice %4 {offsets = [0, 0], sizes = [1, 128], strides = [1, 1]} : vector<16x128xf32> to vector<1x128xf32>
    %6 = vector.extract_strided_slice %4 {offsets = [1, 0], sizes = [1, 128], strides = [1, 1]} : vector<16x128xf32> to vector<1x128xf32>
    %7 = vector.extract_strided_slice %4 {offsets = [2, 0], sizes = [1, 128], strides = [1, 1]} : vector<16x128xf32> to vector<1x128xf32>
    %8 = vector.extract_strided_slice %4 {offsets = [3, 0], sizes = [1, 128], strides = [1, 1]} : vector<16x128xf32> to vector<1x128xf32>
    %9 = vector.extract_strided_slice %4 {offsets = [4, 0], sizes = [1, 128], strides = [1, 1]} : vector<16x128xf32> to vector<1x128xf32>
    %10 = vector.extract_strided_slice %4 {offsets = [5, 0], sizes = [1, 128], strides = [1, 1]} : vector<16x128xf32> to vector<1x128xf32>
    %11 = vector.extract_strided_slice %4 {offsets = [6, 0], sizes = [1, 128], strides = [1, 1]} : vector<16x128xf32> to vector<1x128xf32>
    %12 = vector.extract_strided_slice %4 {offsets = [7, 0], sizes = [1, 128], strides = [1, 1]} : vector<16x128xf32> to vector<1x128xf32>
    %13 = vector.extract_strided_slice %4 {offsets = [8, 0], sizes = [1, 128], strides = [1, 1]} : vector<16x128xf32> to vector<1x128xf32>
    %14 = vector.extract_strided_slice %4 {offsets = [9, 0], sizes = [1, 128], strides = [1, 1]} : vector<16x128xf32> to vector<1x128xf32>
    %15 = vector.extract_strided_slice %4 {offsets = [10, 0], sizes = [1, 128], strides = [1, 1]} : vector<16x128xf32> to vector<1x128xf32>
    %16 = vector.extract_strided_slice %4 {offsets = [11, 0], sizes = [1, 128], strides = [1, 1]} : vector<16x128xf32> to vector<1x128xf32>
    %17 = vector.extract_strided_slice %4 {offsets = [12, 0], sizes = [1, 128], strides = [1, 1]} : vector<16x128xf32> to vector<1x128xf32>
    %18 = tpu.concatenate %14, %15, %16, %17 in 1 : vector<1x128xf32>, vector<1x128xf32>, vector<1x128xf32>, vector<1x128xf32> -> vector<1x512xf32>
    %c0_3 = arith.constant 0 : index
    %c0_4 = arith.constant 0 : index
    %19 = vector.load %arg11[%c0_3, %c0_4] : memref<64x128xf32, #tpu.memory_space<vmem>>, vector<64x128xf32>
    %c0_5 = arith.constant 0 : index
    %c0_6 = arith.constant 0 : index
    %20 = vector.load %arg4[%c0_5, %c0_6] : memref<64x64xf32, #tpu.memory_space<vmem>>, vector<64x64xf32>
    %cst = arith.constant dense<0.000000e+00> : vector<64xf32>
    %21 = vector.multi_reduction <add>, %19, %cst [1] : vector<64x128xf32> to vector<64xf32>
    %22 = vector.shape_cast %21 : vector<64xf32> to vector<64x1xf32>
    %cst_7 = arith.constant 1.280000e+02 : f32
    %23 = vector.broadcast %cst_7 : f32 to vector<64x1xf32>
    %24 = arith.divf %22, %23 : vector<64x1xf32>
    %25 = vector.broadcast %24 : vector<64x1xf32> to vector<64x128xf32>
    %26 = arith.subf %19, %25 : vector<64x128xf32>
    %27 = arith.mulf %26, %26 : vector<64x128xf32>
    %cst_8 = arith.constant dense<0.000000e+00> : vector<64xf32>
    %28 = vector.multi_reduction <add>, %27, %cst_8 [1] : vector<64x128xf32> to vector<64xf32>
    %29 = vector.shape_cast %28 : vector<64xf32> to vector<64x1xf32>
    %cst_9 = arith.constant 1.280000e+02 : f32
    %30 = vector.broadcast %cst_9 : f32 to vector<64x1xf32>
    %31 = arith.divf %29, %30 : vector<64x1xf32>
    %32 = vector.broadcast %24 : vector<64x1xf32> to vector<64x128xf32>
    %33 = arith.subf %19, %32 : vector<64x128xf32>
    %cst_10 = arith.constant 9.99999997E-7 : f32
    %34 = vector.broadcast %cst_10 : f32 to vector<64x1xf32>
    %35 = arith.addf %31, %34 : vector<64x1xf32>
    %36 = math.rsqrt %35 : vector<64x1xf32>
    %37 = vector.broadcast %36 : vector<64x1xf32> to vector<64x128xf32>
    %38 = arith.mulf %33, %37 : vector<64x128xf32>
    %39 = vector.broadcast %5 : vector<1x128xf32> to vector<64x128xf32>
    %40 = arith.mulf %38, %39 : vector<64x128xf32>
    %41 = vector.broadcast %6 : vector<1x128xf32> to vector<64x128xf32>
    %42 = arith.addf %40, %41 : vector<64x128xf32>
    %c0_11 = arith.constant 0 : index
    %c0_12 = arith.constant 0 : index
    %c0_13 = arith.constant 0 : index
    %43 = vector.load %arg5[%c0_11, %c0_12, %c0_13] : memref<1x128x384xf32, #tpu.memory_space<vmem>>, vector<1x128x384xf32>
    %44 = vector.shape_cast %43 : vector<1x128x384xf32> to vector<128x384xf32>
    %cst_14 = arith.constant dense<0.000000e+00> : vector<64x384xf32>
    %45 = tpu.matmul %42, %44, %cst_14 {dimension_numbers = #tpu.dot_dimension_numbers<[1], [0], [0], [1], [0, 0, 1, 1], [], []>} : vector<64x128xf32>, vector<128x384xf32>, vector<64x384xf32> -> vector<64x384xf32>
    %46 = vector.extract_strided_slice %45 {offsets = [0, 0], sizes = [64, 32], strides = [1, 1]} : vector<64x384xf32> to vector<64x32xf32>
    %47 = vector.extract_strided_slice %11 {offsets = [0, 0], sizes = [1, 32], strides = [1, 1]} : vector<1x128xf32> to vector<1x32xf32>
    %48 = vector.broadcast %47 : vector<1x32xf32> to vector<64x32xf32>
    %49 = arith.addf %46, %48 : vector<64x32xf32>
    %50 = vector.extract_strided_slice %45 {offsets = [0, 128], sizes = [64, 32], strides = [1, 1]} : vector<64x384xf32> to vector<64x32xf32>
    %51 = vector.extract_strided_slice %12 {offsets = [0, 0], sizes = [1, 32], strides = [1, 1]} : vector<1x128xf32> to vector<1x32xf32>
    %52 = vector.broadcast %51 : vector<1x32xf32> to vector<64x32xf32>
    %53 = arith.addf %50, %52 : vector<64x32xf32>
    %54 = vector.extract_strided_slice %45 {offsets = [0, 256], sizes = [64, 32], strides = [1, 1]} : vector<64x384xf32> to vector<64x32xf32>
    %55 = vector.extract_strided_slice %13 {offsets = [0, 0], sizes = [1, 32], strides = [1, 1]} : vector<1x128xf32> to vector<1x32xf32>
    %56 = vector.broadcast %55 : vector<1x32xf32> to vector<64x32xf32>
    %57 = arith.addf %54, %56 : vector<64x32xf32>
    %cst_15 = arith.constant dense<0.000000e+00> : vector<64x64xf32>
    %58 = tpu.matmul %49, %53, %cst_15 {dimension_numbers = #tpu.dot_dimension_numbers<[1], [1], [0], [0], [0, 0, 1, 0], [], []>} : vector<64x32xf32>, vector<64x32xf32>, vector<64x64xf32> -> vector<64x64xf32>
    %59 = arith.addf %58, %20 : vector<64x64xf32>
    %cst_16 = arith.constant dense<0xFF800000> : vector<64xf32>
    %60 = vector.multi_reduction <maximumf>, %59, %cst_16 [1] : vector<64x64xf32> to vector<64xf32>
    %61 = vector.shape_cast %60 : vector<64xf32> to vector<64x1xf32>
    %62 = vector.broadcast %61 : vector<64x1xf32> to vector<64x64xf32>
    %63 = arith.subf %59, %62 : vector<64x64xf32>
    %64 = math.exp %63 : vector<64x64xf32>
    %cst_17 = arith.constant dense<0.000000e+00> : vector<64xf32>
    %65 = vector.multi_reduction <add>, %64, %cst_17 [1] : vector<64x64xf32> to vector<64xf32>
    %66 = vector.shape_cast %65 : vector<64xf32> to vector<64x1xf32>
    %67 = tpu.reciprocal %66 {approx = true} : vector<64x1xf32> -> vector<64x1xf32>
    %68 = vector.broadcast %67 : vector<64x1xf32> to vector<64x64xf32>
    %69 = arith.mulf %64, %68 : vector<64x64xf32>
    %cst_18 = arith.constant dense<0.000000e+00> : vector<64x32xf32>
    %70 = tpu.matmul %69, %57, %cst_18 {dimension_numbers = #tpu.dot_dimension_numbers<[1], [0], [0], [1], [0, 0, 1, 1], [], []>} : vector<64x64xf32>, vector<64x32xf32>, vector<64x32xf32> -> vector<64x32xf32>
    %71 = vector.extract_strided_slice %45 {offsets = [0, 32], sizes = [64, 32], strides = [1, 1]} : vector<64x384xf32> to vector<64x32xf32>
    %72 = vector.extract_strided_slice %11 {offsets = [0, 32], sizes = [1, 32], strides = [1, 1]} : vector<1x128xf32> to vector<1x32xf32>
    %73 = vector.broadcast %72 : vector<1x32xf32> to vector<64x32xf32>
    %74 = arith.addf %71, %73 : vector<64x32xf32>
    %75 = vector.extract_strided_slice %45 {offsets = [0, 160], sizes = [64, 32], strides = [1, 1]} : vector<64x384xf32> to vector<64x32xf32>
    %76 = vector.extract_strided_slice %12 {offsets = [0, 32], sizes = [1, 32], strides = [1, 1]} : vector<1x128xf32> to vector<1x32xf32>
    %77 = vector.broadcast %76 : vector<1x32xf32> to vector<64x32xf32>
    %78 = arith.addf %75, %77 : vector<64x32xf32>
    %79 = vector.extract_strided_slice %45 {offsets = [0, 288], sizes = [64, 32], strides = [1, 1]} : vector<64x384xf32> to vector<64x32xf32>
    %80 = vector.extract_strided_slice %13 {offsets = [0, 32], sizes = [1, 32], strides = [1, 1]} : vector<1x128xf32> to vector<1x32xf32>
    %81 = vector.broadcast %80 : vector<1x32xf32> to vector<64x32xf32>
    %82 = arith.addf %79, %81 : vector<64x32xf32>
    %cst_19 = arith.constant dense<0.000000e+00> : vector<64x64xf32>
    %83 = tpu.matmul %74, %78, %cst_19 {dimension_numbers = #tpu.dot_dimension_numbers<[1], [1], [0], [0], [0, 0, 1, 0], [], []>} : vector<64x32xf32>, vector<64x32xf32>, vector<64x64xf32> -> vector<64x64xf32>
    %84 = arith.addf %83, %20 : vector<64x64xf32>
    %cst_20 = arith.constant dense<0xFF800000> : vector<64xf32>
    %85 = vector.multi_reduction <maximumf>, %84, %cst_20 [1] : vector<64x64xf32> to vector<64xf32>
    %86 = vector.shape_cast %85 : vector<64xf32> to vector<64x1xf32>
    %87 = vector.broadcast %86 : vector<64x1xf32> to vector<64x64xf32>
    %88 = arith.subf %84, %87 : vector<64x64xf32>
    %89 = math.exp %88 : vector<64x64xf32>
    %cst_21 = arith.constant dense<0.000000e+00> : vector<64xf32>
    %90 = vector.multi_reduction <add>, %89, %cst_21 [1] : vector<64x64xf32> to vector<64xf32>
    %91 = vector.shape_cast %90 : vector<64xf32> to vector<64x1xf32>
    %92 = tpu.reciprocal %91 {approx = true} : vector<64x1xf32> -> vector<64x1xf32>
    %93 = vector.broadcast %92 : vector<64x1xf32> to vector<64x64xf32>
    %94 = arith.mulf %89, %93 : vector<64x64xf32>
    %cst_22 = arith.constant dense<0.000000e+00> : vector<64x32xf32>
    %95 = tpu.matmul %94, %82, %cst_22 {dimension_numbers = #tpu.dot_dimension_numbers<[1], [0], [0], [1], [0, 0, 1, 1], [], []>} : vector<64x64xf32>, vector<64x32xf32>, vector<64x32xf32> -> vector<64x32xf32>
    %96 = vector.extract_strided_slice %45 {offsets = [0, 64], sizes = [64, 32], strides = [1, 1]} : vector<64x384xf32> to vector<64x32xf32>
    %97 = vector.extract_strided_slice %11 {offsets = [0, 64], sizes = [1, 32], strides = [1, 1]} : vector<1x128xf32> to vector<1x32xf32>
    %98 = vector.broadcast %97 : vector<1x32xf32> to vector<64x32xf32>
    %99 = arith.addf %96, %98 : vector<64x32xf32>
    %100 = vector.extract_strided_slice %45 {offsets = [0, 192], sizes = [64, 32], strides = [1, 1]} : vector<64x384xf32> to vector<64x32xf32>
    %101 = vector.extract_strided_slice %12 {offsets = [0, 64], sizes = [1, 32], strides = [1, 1]} : vector<1x128xf32> to vector<1x32xf32>
    %102 = vector.broadcast %101 : vector<1x32xf32> to vector<64x32xf32>
    %103 = arith.addf %100, %102 : vector<64x32xf32>
    %104 = vector.extract_strided_slice %45 {offsets = [0, 320], sizes = [64, 32], strides = [1, 1]} : vector<64x384xf32> to vector<64x32xf32>
    %105 = vector.extract_strided_slice %13 {offsets = [0, 64], sizes = [1, 32], strides = [1, 1]} : vector<1x128xf32> to vector<1x32xf32>
    %106 = vector.broadcast %105 : vector<1x32xf32> to vector<64x32xf32>
    %107 = arith.addf %104, %106 : vector<64x32xf32>
    %cst_23 = arith.constant dense<0.000000e+00> : vector<64x64xf32>
    %108 = tpu.matmul %99, %103, %cst_23 {dimension_numbers = #tpu.dot_dimension_numbers<[1], [1], [0], [0], [0, 0, 1, 0], [], []>} : vector<64x32xf32>, vector<64x32xf32>, vector<64x64xf32> -> vector<64x64xf32>
    %109 = arith.addf %108, %20 : vector<64x64xf32>
    %cst_24 = arith.constant dense<0xFF800000> : vector<64xf32>
    %110 = vector.multi_reduction <maximumf>, %109, %cst_24 [1] : vector<64x64xf32> to vector<64xf32>
    %111 = vector.shape_cast %110 : vector<64xf32> to vector<64x1xf32>
    %112 = vector.broadcast %111 : vector<64x1xf32> to vector<64x64xf32>
    %113 = arith.subf %109, %112 : vector<64x64xf32>
    %114 = math.exp %113 : vector<64x64xf32>
    %cst_25 = arith.constant dense<0.000000e+00> : vector<64xf32>
    %115 = vector.multi_reduction <add>, %114, %cst_25 [1] : vector<64x64xf32> to vector<64xf32>
    %116 = vector.shape_cast %115 : vector<64xf32> to vector<64x1xf32>
    %117 = tpu.reciprocal %116 {approx = true} : vector<64x1xf32> -> vector<64x1xf32>
    %118 = vector.broadcast %117 : vector<64x1xf32> to vector<64x64xf32>
    %119 = arith.mulf %114, %118 : vector<64x64xf32>
    %cst_26 = arith.constant dense<0.000000e+00> : vector<64x32xf32>
    %120 = tpu.matmul %119, %107, %cst_26 {dimension_numbers = #tpu.dot_dimension_numbers<[1], [0], [0], [1], [0, 0, 1, 1], [], []>} : vector<64x64xf32>, vector<64x32xf32>, vector<64x32xf32> -> vector<64x32xf32>
    %121 = vector.extract_strided_slice %45 {offsets = [0, 96], sizes = [64, 32], strides = [1, 1]} : vector<64x384xf32> to vector<64x32xf32>
    %122 = vector.extract_strided_slice %11 {offsets = [0, 96], sizes = [1, 32], strides = [1, 1]} : vector<1x128xf32> to vector<1x32xf32>
    %123 = vector.broadcast %122 : vector<1x32xf32> to vector<64x32xf32>
    %124 = arith.addf %121, %123 : vector<64x32xf32>
    %125 = vector.extract_strided_slice %45 {offsets = [0, 224], sizes = [64, 32], strides = [1, 1]} : vector<64x384xf32> to vector<64x32xf32>
    %126 = vector.extract_strided_slice %12 {offsets = [0, 96], sizes = [1, 32], strides = [1, 1]} : vector<1x128xf32> to vector<1x32xf32>
    %127 = vector.broadcast %126 : vector<1x32xf32> to vector<64x32xf32>
    %128 = arith.addf %125, %127 : vector<64x32xf32>
    %129 = vector.extract_strided_slice %45 {offsets = [0, 352], sizes = [64, 32], strides = [1, 1]} : vector<64x384xf32> to vector<64x32xf32>
    %130 = vector.extract_strided_slice %13 {offsets = [0, 96], sizes = [1, 32], strides = [1, 1]} : vector<1x128xf32> to vector<1x32xf32>
    %131 = vector.broadcast %130 : vector<1x32xf32> to vector<64x32xf32>
    %132 = arith.addf %129, %131 : vector<64x32xf32>
    %cst_27 = arith.constant dense<0.000000e+00> : vector<64x64xf32>
    %133 = tpu.matmul %124, %128, %cst_27 {dimension_numbers = #tpu.dot_dimension_numbers<[1], [1], [0], [0], [0, 0, 1, 0], [], []>} : vector<64x32xf32>, vector<64x32xf32>, vector<64x64xf32> -> vector<64x64xf32>
    %134 = arith.addf %133, %20 : vector<64x64xf32>
    %cst_28 = arith.constant dense<0xFF800000> : vector<64xf32>
    %135 = vector.multi_reduction <maximumf>, %134, %cst_28 [1] : vector<64x64xf32> to vector<64xf32>
    %136 = vector.shape_cast %135 : vector<64xf32> to vector<64x1xf32>
    %137 = vector.broadcast %136 : vector<64x1xf32> to vector<64x64xf32>
    %138 = arith.subf %134, %137 : vector<64x64xf32>
    %139 = math.exp %138 : vector<64x64xf32>
    %cst_29 = arith.constant dense<0.000000e+00> : vector<64xf32>
    %140 = vector.multi_reduction <add>, %139, %cst_29 [1] : vector<64x64xf32> to vector<64xf32>
    %141 = vector.shape_cast %140 : vector<64xf32> to vector<64x1xf32>
    %142 = tpu.reciprocal %141 {approx = true} : vector<64x1xf32> -> vector<64x1xf32>
    %143 = vector.broadcast %142 : vector<64x1xf32> to vector<64x64xf32>
    %144 = arith.mulf %139, %143 : vector<64x64xf32>
    %cst_30 = arith.constant dense<0.000000e+00> : vector<64x32xf32>
    %145 = tpu.matmul %144, %132, %cst_30 {dimension_numbers = #tpu.dot_dimension_numbers<[1], [0], [0], [1], [0, 0, 1, 1], [], []>} : vector<64x64xf32>, vector<64x32xf32>, vector<64x32xf32> -> vector<64x32xf32>
    %146 = tpu.concatenate %70, %95, %120, %145 in 1 : vector<64x32xf32>, vector<64x32xf32>, vector<64x32xf32>, vector<64x32xf32> -> vector<64x128xf32>
    %c0_31 = arith.constant 0 : index
    %c0_32 = arith.constant 0 : index
    %c0_33 = arith.constant 0 : index
    %147 = vector.load %arg6[%c0_31, %c0_32, %c0_33] : memref<1x128x128xf32, #tpu.memory_space<vmem>>, vector<1x128x128xf32>
    %148 = vector.shape_cast %147 : vector<1x128x128xf32> to vector<128x128xf32>
    %cst_34 = arith.constant dense<0.000000e+00> : vector<64x128xf32>
    %149 = tpu.matmul %146, %148, %cst_34 {dimension_numbers = #tpu.dot_dimension_numbers<[1], [0], [0], [1], [0, 0, 1, 1], [], []>} : vector<64x128xf32>, vector<128x128xf32>, vector<64x128xf32> -> vector<64x128xf32>
    %150 = arith.addf %19, %149 : vector<64x128xf32>
    %151 = vector.broadcast %9 : vector<1x128xf32> to vector<64x128xf32>
    %152 = arith.addf %150, %151 : vector<64x128xf32>
    %cst_35 = arith.constant dense<0.000000e+00> : vector<64xf32>
    %153 = vector.multi_reduction <add>, %152, %cst_35 [1] : vector<64x128xf32> to vector<64xf32>
    %154 = vector.shape_cast %153 : vector<64xf32> to vector<64x1xf32>
    %cst_36 = arith.constant 1.280000e+02 : f32
    %155 = vector.broadcast %cst_36 : f32 to vector<64x1xf32>
    %156 = arith.divf %154, %155 : vector<64x1xf32>
    %157 = vector.broadcast %156 : vector<64x1xf32> to vector<64x128xf32>
    %158 = arith.subf %152, %157 : vector<64x128xf32>
    %159 = arith.mulf %158, %158 : vector<64x128xf32>
    %cst_37 = arith.constant dense<0.000000e+00> : vector<64xf32>
    %160 = vector.multi_reduction <add>, %159, %cst_37 [1] : vector<64x128xf32> to vector<64xf32>
    %161 = vector.shape_cast %160 : vector<64xf32> to vector<64x1xf32>
    %cst_38 = arith.constant 1.280000e+02 : f32
    %162 = vector.broadcast %cst_38 : f32 to vector<64x1xf32>
    %163 = arith.divf %161, %162 : vector<64x1xf32>
    %164 = vector.broadcast %156 : vector<64x1xf32> to vector<64x128xf32>
    %165 = arith.subf %152, %164 : vector<64x128xf32>
    %cst_39 = arith.constant 9.99999997E-7 : f32
    %166 = vector.broadcast %cst_39 : f32 to vector<64x1xf32>
    %167 = arith.addf %163, %166 : vector<64x1xf32>
    %168 = math.rsqrt %167 : vector<64x1xf32>
    %169 = vector.broadcast %168 : vector<64x1xf32> to vector<64x128xf32>
    %170 = arith.mulf %165, %169 : vector<64x128xf32>
    %171 = vector.broadcast %7 : vector<1x128xf32> to vector<64x128xf32>
    %172 = arith.mulf %170, %171 : vector<64x128xf32>
    %173 = vector.broadcast %8 : vector<1x128xf32> to vector<64x128xf32>
    %174 = arith.addf %172, %173 : vector<64x128xf32>
    %c0_40 = arith.constant 0 : index
    %c0_41 = arith.constant 0 : index
    %c0_42 = arith.constant 0 : index
    %175 = vector.load %arg7[%c0_40, %c0_41, %c0_42] : memref<1x128x512xf32, #tpu.memory_space<vmem>>, vector<1x128x512xf32>
    %176 = vector.shape_cast %175 : vector<1x128x512xf32> to vector<128x512xf32>
    %cst_43 = arith.constant dense<0.000000e+00> : vector<64x512xf32>
    %177 = tpu.matmul %174, %176, %cst_43 {dimension_numbers = #tpu.dot_dimension_numbers<[1], [0], [0], [1], [0, 0, 1, 1], [], []>} : vector<64x128xf32>, vector<128x512xf32>, vector<64x512xf32> -> vector<64x512xf32>
    %178 = vector.broadcast %18 : vector<1x512xf32> to vector<64x512xf32>
    %179 = arith.addf %177, %178 : vector<64x512xf32>
    %cst_44 = arith.constant 5.000000e-01 : f32
    %180 = vector.broadcast %cst_44 : f32 to vector<64x512xf32>
    %181 = arith.mulf %180, %179 : vector<64x512xf32>
    %cst_45 = arith.constant 0.707106769 : f32
    %182 = vector.broadcast %cst_45 : f32 to vector<64x512xf32>
    %183 = arith.mulf %179, %182 : vector<64x512xf32>
    %cst_46 = arith.constant 0.000000e+00 : f32
    %184 = vector.broadcast %cst_46 : f32 to vector<64x512xf32>
    %185 = arith.cmpf oge, %183, %184 : vector<64x512xf32>
    %cst_47 = arith.constant 1.000000e+00 : f32
    %cst_48 = arith.constant -1.000000e+00 : f32
    %186 = vector.broadcast %cst_47 : f32 to vector<64x512xf32>
    %187 = vector.broadcast %cst_48 : f32 to vector<64x512xf32>
    %188 = arith.select %185, %186, %187 : vector<64x512xi1>, vector<64x512xf32>
    %189 = math.absf %183 : vector<64x512xf32>
    %cst_49 = arith.constant 0.327591091 : f32
    %190 = vector.broadcast %cst_49 : f32 to vector<64x512xf32>
    %191 = arith.mulf %190, %189 : vector<64x512xf32>
    %cst_50 = arith.constant 1.000000e+00 : f32
    %192 = vector.broadcast %cst_50 : f32 to vector<64x512xf32>
    %193 = arith.addf %192, %191 : vector<64x512xf32>
    %cst_51 = arith.constant 1.000000e+00 : f32
    %194 = vector.broadcast %cst_51 : f32 to vector<64x512xf32>
    %195 = arith.divf %194, %193 : vector<64x512xf32>
    %cst_52 = arith.constant 1.06140542 : f32
    %196 = vector.broadcast %cst_52 : f32 to vector<64x512xf32>
    %197 = arith.mulf %196, %195 : vector<64x512xf32>
    %cst_53 = arith.constant -1.45315206 : f32
    %198 = vector.broadcast %cst_53 : f32 to vector<64x512xf32>
    %199 = arith.addf %197, %198 : vector<64x512xf32>
    %200 = arith.mulf %199, %195 : vector<64x512xf32>
    %cst_54 = arith.constant 1.42141378 : f32
    %201 = vector.broadcast %cst_54 : f32 to vector<64x512xf32>
    %202 = arith.addf %200, %201 : vector<64x512xf32>
    %203 = arith.mulf %202, %195 : vector<64x512xf32>
    %cst_55 = arith.constant -0.284496725 : f32
    %204 = vector.broadcast %cst_55 : f32 to vector<64x512xf32>
    %205 = arith.addf %203, %204 : vector<64x512xf32>
    %206 = arith.mulf %205, %195 : vector<64x512xf32>
    %cst_56 = arith.constant 0.254829586 : f32
    %207 = vector.broadcast %cst_56 : f32 to vector<64x512xf32>
    %208 = arith.addf %206, %207 : vector<64x512xf32>
    %209 = arith.mulf %208, %195 : vector<64x512xf32>
    %cst_57 = arith.constant 0.000000e+00 : f32
    %210 = vector.broadcast %cst_57 : f32 to vector<64x512xf32>
    %211 = arith.subf %210, %189 : vector<64x512xf32>
    %212 = arith.mulf %211, %189 : vector<64x512xf32>
    %213 = math.exp %212 : vector<64x512xf32>
    %214 = arith.mulf %209, %213 : vector<64x512xf32>
    %cst_58 = arith.constant 1.000000e+00 : f32
    %215 = vector.broadcast %cst_58 : f32 to vector<64x512xf32>
    %216 = arith.subf %215, %214 : vector<64x512xf32>
    %217 = arith.mulf %188, %216 : vector<64x512xf32>
    %cst_59 = arith.constant 1.000000e+00 : f32
    %218 = vector.broadcast %cst_59 : f32 to vector<64x512xf32>
    %219 = arith.addf %218, %217 : vector<64x512xf32>
    %220 = arith.mulf %181, %219 : vector<64x512xf32>
    %c0_60 = arith.constant 0 : index
    %c0_61 = arith.constant 0 : index
    %c0_62 = arith.constant 0 : index
    %221 = vector.load %arg8[%c0_60, %c0_61, %c0_62] : memref<1x512x128xf32, #tpu.memory_space<vmem>>, vector<1x512x128xf32>
    %222 = vector.shape_cast %221 : vector<1x512x128xf32> to vector<512x128xf32>
    %cst_63 = arith.constant dense<0.000000e+00> : vector<64x128xf32>
    %223 = tpu.matmul %220, %222, %cst_63 {dimension_numbers = #tpu.dot_dimension_numbers<[1], [0], [0], [1], [0, 0, 1, 1], [], []>} : vector<64x512xf32>, vector<512x128xf32>, vector<64x128xf32> -> vector<64x128xf32>
    %224 = arith.addf %152, %223 : vector<64x128xf32>
    %225 = vector.broadcast %10 : vector<1x128xf32> to vector<64x128xf32>
    %226 = arith.addf %224, %225 : vector<64x128xf32>
    %c0_64 = arith.constant 0 : index
    %c0_65 = arith.constant 0 : index
    %227 = vector.load %arg11[%c0_64, %c0_65] : memref<64x128xf32, #tpu.memory_space<vmem>>, vector<64x128xf32>
    tpu.vector_store %arg11[%c0_64, %c0_65], %226 {strides = array<i32>} : memref<64x128xf32, #tpu.memory_space<vmem>>, vector<64x128xf32>,
    %c1_i32 = arith.constant 1 : i32
    %228 = arith.cmpi eq, %arg0, %c1_i32 : i32
    %229 = arith.extui %228 : i1 to i32
    %c0_i32_66 = arith.constant 0 : i32
    %230 = arith.cmpi ne, %229, %c0_i32_66 : i32
    scf.if %230 {
      %c64 = arith.constant 64 : index
      %c0_67 = arith.constant 0 : index
      %231 = vector.load %arg3[%c64, %c0_67] : memref<72x128xf32, #tpu.memory_space<vmem>>, vector<8x128xf32>
      %232 = vector.extract_strided_slice %231 {offsets = [0, 0], sizes = [1, 128], strides = [1, 1]} : vector<8x128xf32> to vector<1x128xf32>
      %233 = vector.extract_strided_slice %231 {offsets = [1, 0], sizes = [1, 128], strides = [1, 1]} : vector<8x128xf32> to vector<1x128xf32>
      %cst_68 = arith.constant dense<0.000000e+00> : vector<64xf32>
      %234 = vector.multi_reduction <add>, %226, %cst_68 [1] : vector<64x128xf32> to vector<64xf32>
      %235 = vector.shape_cast %234 : vector<64xf32> to vector<64x1xf32>
      %cst_69 = arith.constant 1.280000e+02 : f32
      %236 = vector.broadcast %cst_69 : f32 to vector<64x1xf32>
      %237 = arith.divf %235, %236 : vector<64x1xf32>
      %238 = vector.broadcast %237 : vector<64x1xf32> to vector<64x128xf32>
      %239 = arith.subf %226, %238 : vector<64x128xf32>
      %240 = arith.mulf %239, %239 : vector<64x128xf32>
      %cst_70 = arith.constant dense<0.000000e+00> : vector<64xf32>
      %241 = vector.multi_reduction <add>, %240, %cst_70 [1] : vector<64x128xf32> to vector<64xf32>
      %242 = vector.shape_cast %241 : vector<64xf32> to vector<64x1xf32>
      %cst_71 = arith.constant 1.280000e+02 : f32
      %243 = vector.broadcast %cst_71 : f32 to vector<64x1xf32>
      %244 = arith.divf %242, %243 : vector<64x1xf32>
      %245 = vector.broadcast %237 : vector<64x1xf32> to vector<64x128xf32>
      %246 = arith.subf %226, %245 : vector<64x128xf32>
      %cst_72 = arith.constant 9.99999997E-7 : f32
      %247 = vector.broadcast %cst_72 : f32 to vector<64x1xf32>
      %248 = arith.addf %244, %247 : vector<64x1xf32>
      %249 = math.rsqrt %248 : vector<64x1xf32>
      %250 = vector.broadcast %249 : vector<64x1xf32> to vector<64x128xf32>
      %251 = arith.mulf %246, %250 : vector<64x128xf32>
      %252 = vector.broadcast %232 : vector<1x128xf32> to vector<64x128xf32>
      %253 = arith.mulf %251, %252 : vector<64x128xf32>
      %254 = vector.broadcast %233 : vector<1x128xf32> to vector<64x128xf32>
      %255 = arith.addf %253, %254 : vector<64x128xf32>
      %c0_73 = arith.constant 0 : index
      %c0_74 = arith.constant 0 : index
      %256 = vector.load %arg10[%c0_73, %c0_74] : memref<64x128xf32, #tpu.memory_space<vmem>>, vector<64x128xf32>
      tpu.vector_store %arg10[%c0_73, %c0_74], %255 {strides = array<i32>} : memref<64x128xf32, #tpu.memory_space<vmem>>, vector<64x128xf32>,
    } else {
    }
    return
  }
  func.func @transform_0(%arg0: i32) -> (i32, i32) {
    %c0_i32 = arith.constant 0 : i32
    %c0_i32_0 = arith.constant 0 : i32
    %c0_i32_1 = arith.constant 0 : i32
    return %c0_i32, %c0_i32_0 : i32, i32
  }
  func.func @transform_1(%arg0: i32) -> (i32, i32) {
    %c0_i32 = arith.constant 0 : i32
    %c0_i32_0 = arith.constant 0 : i32
    %c0_i32_1 = arith.constant 0 : i32
    return %c0_i32, %c0_i32_0 : i32, i32
  }
  func.func @transform_2(%arg0: i32) -> (i32, i32) {
    %c0_i32 = arith.constant 0 : i32
    %c0_i32_0 = arith.constant 0 : i32
    %c0_i32_1 = arith.constant 0 : i32
    return %c0_i32, %c0_i32_0 : i32, i32
  }
  func.func @transform_3(%arg0: i32) -> (i32, i32) {
    %c0_i32 = arith.constant 0 : i32
    %c0_i32_0 = arith.constant 0 : i32
    %c0_i32_1 = arith.constant 0 : i32
    return %c0_i32, %c0_i32_0 : i32, i32
  }
  func.func @transform_4(%arg0: i32) -> (i32, i32, i32) {
    %c0_i32 = arith.constant 0 : i32
    %c0_i32_0 = arith.constant 0 : i32
    %c0_i32_1 = arith.constant 0 : i32
    return %arg0, %c0_i32, %c0_i32_0 : i32, i32, i32
  }
  func.func @transform_5(%arg0: i32) -> (i32, i32, i32) {
    %c0_i32 = arith.constant 0 : i32
    %c0_i32_0 = arith.constant 0 : i32
    %c0_i32_1 = arith.constant 0 : i32
    return %arg0, %c0_i32, %c0_i32_0 : i32, i32, i32
  }
  func.func @transform_6(%arg0: i32) -> (i32, i32, i32) {
    %c0_i32 = arith.constant 0 : i32
    %c0_i32_0 = arith.constant 0 : i32
    %c0_i32_1 = arith.constant 0 : i32
    return %arg0, %c0_i32, %c0_i32_0 : i32, i32, i32
  }
  func.func @transform_7(%arg0: i32) -> (i32, i32, i32) {
    %c0_i32 = arith.constant 0 : i32
    %c0_i32_0 = arith.constant 0 : i32
    %c0_i32_1 = arith.constant 0 : i32
    return %arg0, %c0_i32, %c0_i32_0 : i32, i32, i32
  }
  func.func @transform_8(%arg0: i32) -> (i32, i32, i32) {
    %c0_i32 = arith.constant 0 : i32
    %c0_i32_0 = arith.constant 0 : i32
    %c0_i32_1 = arith.constant 0 : i32
    return %arg0, %c0_i32, %c0_i32_0 : i32, i32, i32
  }
  func.func @transform_9(%arg0: i32) -> (i32, i32) {
    %c0_i32 = arith.constant 0 : i32
    %c0_i32_0 = arith.constant 0 : i32
    %c0_i32_1 = arith.constant 0 : i32
    return %c0_i32, %c0_i32_0 : i32, i32
  }
}

</mosaic_0001>

<bundles_post_ra>
// kernel: custom_dino_forward.1
= control target key start
LH: loop header
LB: loop body
LE: loop exit
PB: predicated region body
PF: predicated region fallthrough
CT: control target
= control target key end

     0   :  { %s6935_s30 = smov 0   ;;  %s9452_s0 = inlined_call_operand.vmem [shape: f32[64,768], index: 0, kind: input, shape index: {}]   ;;  %s9453_s1 = inlined_call_operand.vmem [shape: f32[768,128], index: 1, kind: input, shape index: {}]   ;;  %s9454_s2 = inlined_call_operand.vmem [shape: f32[72,128], index: 2, kind: input, shape index: {}]   ;;  %s9455_s3 = inlined_call_operand.vmem [shape: f32[64,64], index: 3, kind: input, shape index: {}]   ;;  %s9456_s4 = inlined_call_operand.vmem [shape: f32[2,128,384], index: 4, kind: input, shape index: {}]   ;;  %s9457_s5 = inlined_call_operand.vmem [shape: f32[2,128,128], index: 5, kind: input, shape index: {}]   ;;  %s9458_s6 = inlined_call_operand.vmem [shape: f32[2,128,512], index: 6, kind: input, shape index: {}]   ;;  %s9459_s7 = inlined_call_operand.vmem [shape: f32[2,512,128], index: 7, kind: input, shape index: {}]   ;;  %s9460_s8 = inlined_call_operand.vmem [shape: f32[2,16,128], index: 8, kind: input, shape index: {}]   ;;  %s9461_s9 = inlined_call_operand.vmem [shape: f32[64,128], index: 9, kind: output, shape index: {}]  }
   0x1 LB: > { %s6941_s10 = sadd.s32 4294967295, %s6878_s30   ;;  %p4977_p0 = scmp.ge.s32.totalorder %s6878_s30, 1  ;;  %s6878_s30 = sphi %s6935_s30, %s19_s30  }
   0x2   : > { %p322_p1 = scmp.lt.s32.totalorder %s6878_s30, 3 }
   0x4   : > { %p323_p2 = pnand %p4977_p0, %p322_p1 }
   0x6   : > { %326 = sbr.rel (%p323_p2) target bundleno = 4605 (0x11fd), region = 56 }
   0xd   : > { %p373_p3 = scmp.lt.s32.totalorder %s6941_s10, 1  ;;  %p4987_p4 = scmp.ne.s32.totalorder %s6941_s10, 0 }
   0xe   : > { %v466_v0 = vld [vmem:[%s9453_s1 + $0x80] sm:$0xff] (!%p4987_p4)  ;;  %v467_v1 = vld [vmem:[%s9453_s1 + $0x88] sm:$0xff] (!%p4987_p4)  ;;  %v468_v11 = vld [vmem:[%s9453_s1 + $0x90] sm:$0xff] (!%p4987_p4) }
   0xf   : > { %s374_s11 = scalar_select %p373_p3, %s6941_s10, 1 }
  0x10   : > { %401 = sbr.rel (%p4987_p4) target bundleno = 314 (0x13a), region = 60  ;;  %v498_v2 = vld [vmem:[%s9453_s1 + $0x180] sm:$0xff] (!%p4987_p4)  ;;  %v5859_v3 = vpack.c.bf16 (!%p4987_p4), %v467_v1, %v466_v0  ;;  %v499_v4 = vld [vmem:[%s9453_s1 + $0x188] sm:$0xff] (!%p4987_p4)  ;;  %v469_v13 = vld [vmem:[%s9453_s1 + $0x98] sm:$0xff] (!%p4987_p4) }
  0x11   : > { %s6355_s12 = smul.u32 384, %s374_s11  ;;  %s5087_s13 = sshll.u32 %s374_s11, 7  ;;  %v450_v5 = vld [vmem:[%s9453_s1] sm:$0xff] (!%p4987_p4)  ;;  %v451_v6 = vld [vmem:[%s9453_s1 + $0x8] sm:$0xff] (!%p4987_p4)  ;;  %v5891_v7 = vpack.c.bf16 (!%p4987_p4), %v499_v4, %v498_v2  ;;  %v500_v14 = vld [vmem:[%s9453_s1 + $0x190] sm:$0xff] (!%p4987_p4)  ;;  %v5863_v16 = vpack.c.bf16 (!%p4987_p4), %v469_v13, %v468_v11 }
  0x12   : > { %s6950_s16 = scalar_lea.vmem %s9457_s5, %s5087_s13  ;;  %s5088_s17 = sshll.u32 %s374_s11, 9  ;;  %v5861_v8 = vpack.c.bf16 (!%p4987_p4), %v451_v6, %v450_v5  ;;  %v482_v9 = vld [vmem:[%s9453_s1 + $0x100] sm:$0xff] (!%p4987_p4)  ;;  %v483_v10 = vld [vmem:[%s9453_s1 + $0x108] sm:$0xff] (!%p4987_p4)  ;;  %5860 = vmatprep.subr.bf16.mxu0 (!%p4987_p4), %v5859_v3  ;;  %v501_v15 = vld [vmem:[%s9453_s1 + $0x198] sm:$0xff] (!%p4987_p4) }
  0x13   : > { %s6955_s20 = scalar_lea.vmem %s9456_s4, %s6355_s12  ;;  %s6960_s23 = scalar_lea.vmem %s9458_s6, %s5088_s17  ;;  %v5893_v12 = vpack.c.bf16 (!%p4987_p4), %v483_v10, %v482_v9  ;;  %5892 = vmatprep.subr.bf16.mxu1 (!%p4987_p4), %v5891_v7  ;;  %v5895_v17 = vpack.c.bf16 (!%p4987_p4), %v501_v15, %v500_v14  ;;  %v452_v18 = vld [vmem:[%s9453_s1 + $0x10] sm:$0xff] (!%p4987_p4)  ;;  %v453_v19 = vld [vmem:[%s9453_s1 + $0x18] sm:$0xff] (!%p4987_p4)  ;;  %v470_v23 = vld [vmem:[%s9453_s1 + $0xa0] sm:$0xff] (!%p4987_p4) }
  0x14   : > { %s6965_s26 = scalar_lea.vmem %s9459_s7, %s5088_s17  ;;  %s5090_s27 = sshll.u32 %s374_s11, 4  ;;  %5862 = vmatpush3.bf16.msra.mxu0 (!%p4987_p4), %v5861_v8  ;;  %v484_v20 = vld [vmem:[%s9453_s1 + $0x110] sm:$0xff] (!%p4987_p4)  ;;  %v5865_v21 = vpack.c.bf16 (!%p4987_p4), %v453_v19, %v452_v18  ;;  %v485_v22 = vld [vmem:[%s9453_s1 + $0x118] sm:$0xff] (!%p4987_p4)  ;;  %v471_v24 = vld [vmem:[%s9453_s1 + $0xa8] sm:$0xff] (!%p4987_p4) }
  0x15   : > { %s6970_s13 = scalar_lea.vmem %s9460_s8, %s5090_s27  ;;  %5894 = vmatpush3.bf16.msra.mxu1 (!%p4987_p4), %v5893_v12  ;;  %5864 = vmatprep.subr.bf16.mxu0 (!%p4987_p4), %v5863_v16  ;;  %v5897_v25 = vpack.c.bf16 (!%p4987_p4), %v485_v22, %v484_v20  ;;  %v5867_v26 = vpack.c.bf16 (!%p4987_p4), %v471_v24, %v470_v23  ;;  %v502_v27 = vld [vmem:[%s9453_s1 + $0x1a0] sm:$0xff] (!%p4987_p4)  ;;  %v503_v28 = vld [vmem:[%s9453_s1 + $0x1a8] sm:$0xff] (!%p4987_p4)  ;;  %v472_v35 = vld [vmem:[%s9453_s1 + $0xb0] sm:$0xff] (!%p4987_p4) }
  0x16   : > { %5896 = vmatprep.subr.bf16.mxu1 (!%p4987_p4), %v5895_v17  ;;  %v454_v29 = vld [vmem:[%s9453_s1 + $0x20] sm:$0xff] (!%p4987_p4)  ;;  %v5899_v30 = vpack.c.bf16 (!%p4987_p4), %v503_v28, %v502_v27  ;;  %v455_v31 = vld [vmem:[%s9453_s1 + $0x28] sm:$0xff] (!%p4987_p4)  ;;  %v473_v36 = vld [vmem:[%s9453_s1 + $0xb8] sm:$0xff] (!%p4987_p4) }
  0x17   : > { %v486_v32 = vld [vmem:[%s9453_s1 + $0x120] sm:$0xff]  ;;  %v487_v33 = vld [vmem:[%s9453_s1 + $0x128] sm:$0xff]  ;;  %v5869_v34 = vpack.c.bf16 %v455_v31, %v454_v29  ;;  %v504_v37 = vld [vmem:[%s9453_s1 + $0x1b0] sm:$0xff]  ;;  %v5871_v39 = vpack.c.bf16 %v473_v36, %v472_v35 }
  0x18   : > { %5866 = vmatpush3.bf16.msra.mxu0 %v5865_v21  ;;  %v5901_v38 = vpack.c.bf16 %v487_v33, %v486_v32  ;;  %v505_v40 = vld [vmem:[%s9453_s1 + $0x1b8] sm:$0xff]  ;;  %v456_v41 = vld [vmem:[%s9453_s1 + $0x30] sm:$0xff]  ;;  %v474_v46 = vld [vmem:[%s9453_s1 + $0xc0] sm:$0xff] }
  0x19   : > { %5898 = vmatpush3.bf16.msra.mxu1 %v5897_v25  ;;  %5868 = vmatprep.subr.bf16.mxu0 %v5867_v26  ;;  %v457_v42 = vld [vmem:[%s9453_s1 + $0x38] sm:$0xff]  ;;  %v5903_v43 = vpack.c.bf16 %v505_v40, %v504_v37  ;;  %v488_v44 = vld [vmem:[%s9453_s1 + $0x130] sm:$0xff]  ;;  %v475_v47 = vld [vmem:[%s9453_s1 + $0xc8] sm:$0xff] }
  0x1a   : > { %5900 = vmatprep.subr.bf16.mxu1 %v5899_v30  ;;  %v489_v45 = vld [vmem:[%s9453_s1 + $0x138] sm:$0xff]  ;;  %v506_v48 = vld [vmem:[%s9453_s1 + $0x1c0] sm:$0xff]  ;;  %v507_v49 = vld [vmem:[%s9453_s1 + $0x1c8] sm:$0xff]  ;;  %v5873_v50 = vpack.c.bf16 %v457_v42, %v456_v41  ;;  %v5875_v52 = vpack.c.bf16 %v475_v47, %v474_v46 }
  0x1b   : > { %v5905_v51 = vpack.c.bf16 %v489_v45, %v488_v44  ;;  %v458_v53 = vld [vmem:[%s9453_s1 + $0x40] sm:$0xff]  ;;  %v459_v54 = vld [vmem:[%s9453_s1 + $0x48] sm:$0xff]  ;;  %v5907_v56 = vpack.c.bf16 %v507_v49, %v506_v48  ;;  %v476_v58 = vld [vmem:[%s9453_s1 + $0xd0] sm:$0xff] }
  0x1c   : > { %5870 = vmatpush3.bf16.msra.mxu0 %v5869_v34  ;;  %v490_v55 = vld [vmem:[%s9453_s1 + $0x140] sm:$0xff]  ;;  %v491_v57 = vld [vmem:[%s9453_s1 + $0x148] sm:$0xff]  ;;  %v477_v59 = vld [vmem:[%s9453_s1 + $0xd8] sm:$0xff]  ;;  %v5877_v62 = vpack.c.bf16 %v459_v54, %v458_v53 }
  0x1d   : > { %5902 = vmatpush3.bf16.msra.mxu1 %v5901_v38  ;;  %5872 = vmatprep.subr.bf16.mxu0 %v5871_v39  ;;  %v508_v60 = vld [vmem:[%s9453_s1 + $0x1d0] sm:$0xff]  ;;  %v509_v61 = vld [vmem:[%s9453_s1 + $0x1d8] sm:$0xff]  ;;  %v5909_v63 = vpack.c.bf16 %v491_v57, %v490_v55  ;;  %v5879_v0 = vpack.c.bf16 %v477_v59, %v476_v58  ;;  %v478_v6 = vld [vmem:[%s9453_s1 + $0xe0] sm:$0xff] }
  0x1e   : > { %5904 = vmatprep.subr.bf16.mxu1 %v5903_v43  ;;  %v460_v1 = vld [vmem:[%s9453_s1 + $0x50] sm:$0xff]  ;;  %v461_v2 = vld [vmem:[%s9453_s1 + $0x58] sm:$0xff]  ;;  %v5911_v4 = vpack.c.bf16 %v509_v61, %v508_v60  ;;  %v479_v7 = vld [vmem:[%s9453_s1 + $0xe8] sm:$0xff] }
  0x1f   : > { %v492_v3 = vld [vmem:[%s9453_s1 + $0x150] sm:$0xff]  ;;  %v493_v5 = vld [vmem:[%s9453_s1 + $0x158] sm:$0xff]  ;;  %v510_v8 = vld [vmem:[%s9453_s1 + $0x1e0] sm:$0xff]  ;;  %v5881_v10 = vpack.c.bf16 %v461_v2, %v460_v1  ;;  %v5883_v14 = vpack.c.bf16 %v479_v7, %v478_v6 }
  0x20   : > { %5874 = vmatpush3.bf16.msra.mxu0 %v5873_v50  ;;  %v511_v9 = vld [vmem:[%s9453_s1 + $0x1e8] sm:$0xff]  ;;  %v462_v11 = vld [vmem:[%s9453_s1 + $0x60] sm:$0xff]  ;;  %v5913_v13 = vpack.c.bf16 %v493_v5, %v492_v3  ;;  %v405_v17 = vld [vmem:[%s9452_s0 + $0x18] sm:$0xff] }
  0x21   : > { %5906 = vmatpush3.bf16.msra.mxu1 %v5905_v51  ;;  %5876 = vmatprep.subr.bf16.mxu0 %v5875_v52  ;;  %v463_v12 = vld [vmem:[%s9453_s1 + $0x68] sm:$0xff]  ;;  %v494_v15 = vld [vmem:[%s9453_s1 + $0x160] sm:$0xff]  ;;  %v5915_v18 = vpack.c.bf16 %v511_v9, %v510_v8  ;;  %v480_v20 = vld [vmem:[%s9453_s1 + $0xf0] sm:$0xff] }
  0x22   : > { %5908 = vmatprep.subr.bf16.mxu1 %v5907_v56  ;;  %v403_v16 = vld [vmem:[%s9452_s0 + $0x8] sm:$0xff]  ;;  %v481_v21 = vld [vmem:[%s9453_s1 + $0xf8] sm:$0xff]  ;;  %v512_v22 = vld [vmem:[%s9453_s1 + $0x1f0] sm:$0xff]  ;;  %723 = vmatprep.mubr.f32.mxu1 %v405_v17  ;;  %v5885_v24 = vpack.c.bf16 %v463_v12, %v462_v11 }
  0x23   : > { %v495_v19 = vld [vmem:[%s9453_s1 + $0x168] sm:$0xff]  ;;  %618 = vmatprep.mubr.f32.mxu0 %v403_v16  ;;  %v513_v23 = vld [vmem:[%s9453_s1 + $0x1f8] sm:$0xff]  ;;  %v5887_v26 = vpack.c.bf16 %v481_v21, %v480_v20  ;;  %v464_v27 = vld [vmem:[%s9453_s1 + $0x70] sm:$0xff] }
  0x24   : > { %5878 = vmatpush3.bf16.msra.mxu0 %v5877_v62  ;;  %v5917_v25 = vpack.c.bf16 %v495_v19, %v494_v15  ;;  %v465_v28 = vld [vmem:[%s9453_s1 + $0x78] sm:$0xff]  ;;  %v496_v29 = vld [vmem:[%s9453_s1 + $0x170] sm:$0xff]  ;;  %v5919_v30 = vpack.c.bf16 %v513_v23, %v512_v22  ;;  %v530_v32 = vld [vmem:[%s9453_s1 + $0x280] sm:$0xff] }
  0x25   : > { %5910 = vmatpush3.bf16.msra.mxu1 %v5909_v63  ;;  %5880 = vmatprep.subr.bf16.mxu0 %v5879_v0  ;;  %v497_v31 = vld [vmem:[%s9453_s1 + $0x178] sm:$0xff]  ;;  %v531_v33 = vld [vmem:[%s9453_s1 + $0x288] sm:$0xff]  ;;  %v5889_v34 = vpack.c.bf16 %v465_v28, %v464_v27  ;;  %v514_v37 = vld [vmem:[%s9453_s1 + $0x200] sm:$0xff] }
  0x26   : > { %5912 = vmatprep.subr.bf16.mxu1 %v5911_v4  ;;  %v5921_v35 = vpack.c.bf16 %v497_v31, %v496_v29  ;;  %v5923_v36 = vpack.c.bf16 %v531_v33, %v530_v32  ;;  %v515_v38 = vld [vmem:[%s9453_s1 + $0x208] sm:$0xff]  ;;  %v532_v39 = vld [vmem:[%s9453_s1 + $0x290] sm:$0xff]  ;;  %v533_v40 = vld [vmem:[%s9453_s1 + $0x298] sm:$0xff] }
  0x27   : > { %v402_v41 = vld [vmem:[%s9452_s0] sm:$0xff]  ;;  %v5925_v42 = vpack.c.bf16 %v515_v38, %v514_v37  ;;  %v404_v43 = vld [vmem:[%s9452_s0 + $0x10] sm:$0xff]  ;;  %v517_v45 = vld [vmem:[%s9453_s1 + $0x218] sm:$0xff]  ;;  %v5927_v47 = vpack.c.bf16 %v533_v40, %v532_v39 }
  0x28   : > { %5882 = vmatpush3.bf16.msra.mxu0 %v5881_v10  ;;  %v516_v44 = vld [vmem:[%s9453_s1 + $0x210] sm:$0xff]  ;;  %v409_v46 = vld [vmem:[%s9452_s0 + $0x38] sm:$0xff]  ;;  %v411_v48 = vld [vmem:[%s9452_s0 + $0x48] sm:$0xff] }
  0x29   : > { %5914 = vmatpush3.bf16.msra.mxu1 %v5913_v13  ;;  %5884 = vmatprep.subr.bf16.mxu0 %v5883_v14  ;;  %v534_v49 = vld [vmem:[%s9453_s1 + $0x2a0] sm:$0xff]  ;;  %v535_v50 = vld [vmem:[%s9453_s1 + $0x2a8] sm:$0xff]  ;;  %v408_v51 = vld [vmem:[%s9452_s0 + $0x30] sm:$0xff]  ;;  %v5929_v52 = vpack.c.bf16 %v517_v45, %v516_v44 }
  0x2a   : > { %5916 = vmatprep.subr.bf16.mxu1 %v5915_v18  ;;  %v410_v53 = vld [vmem:[%s9452_s0 + $0x40] sm:$0xff]  ;;  %v519_v55 = vld [vmem:[%s9453_s1 + $0x228] sm:$0xff]  ;;  %v5931_v57 = vpack.c.bf16 %v535_v50, %v534_v49  ;;  %v417_v58 = vld [vmem:[%s9452_s0 + $0x78] sm:$0xff] }
  0x2b   : > { %v518_v54 = vld [vmem:[%s9453_s1 + $0x220] sm:$0xff]  ;;  %v415_v56 = vld [vmem:[%s9452_s0 + $0x68] sm:$0xff]  ;;  %v536_v59 = vld [vmem:[%s9453_s1 + $0x2b0] sm:$0xff] }
  0x2c   : > { %5886 = vmatpush3.bf16.msra.mxu0 %v5885_v24  ;;  %v537_v60 = vld [vmem:[%s9453_s1 + $0x2b8] sm:$0xff]  ;;  %v414_v61 = vld [vmem:[%s9452_s0 + $0x60] sm:$0xff]  ;;  %v5933_v62 = vpack.c.bf16 %v519_v55, %v518_v54  ;;  %v416_v63 = vld [vmem:[%s9452_s0 + $0x70] sm:$0xff] }
  0x2d   : > { %5918 = vmatpush3.bf16.msra.mxu1 %v5917_v25  ;;  %5888 = vmatprep.subr.bf16.mxu0 %v5887_v26  ;;  %v520_v0 = vld [vmem:[%s9453_s1 + $0x230] sm:$0xff]  ;;  %v521_v1 = vld [vmem:[%s9453_s1 + $0x238] sm:$0xff]  ;;  %v5935_v3 = vpack.c.bf16 %v537_v60, %v536_v59  ;;  %v423_v4 = vld [vmem:[%s9452_s0 + $0xa8] sm:$0xff] }
  0x2e   : > { %5920 = vmatprep.subr.bf16.mxu1 %v5919_v30  ;;  %v421_v2 = vld [vmem:[%s9452_s0 + $0x98] sm:$0xff]  ;;  %v538_v5 = vld [vmem:[%s9453_s1 + $0x2c0] sm:$0xff]  ;;  %v539_v6 = vld [vmem:[%s9453_s1 + $0x2c8] sm:$0xff]  ;;  %v5937_v8 = vpack.c.bf16 %v521_v1, %v520_v0 }
  0x2f   : > { %v420_v7 = vld [vmem:[%s9452_s0 + $0x90] sm:$0xff]  ;;  %v422_v9 = vld [vmem:[%s9452_s0 + $0xa0] sm:$0xff]  ;;  %v523_v11 = vld [vmem:[%s9453_s1 + $0x248] sm:$0xff]  ;;  %v5939_v13 = vpack.c.bf16 %v539_v6, %v538_v5 }
  0x30   : > { %5890 = vmatpush3.bf16.msra.mxu0 %v5889_v34  ;;  %v522_v10 = vld [vmem:[%s9453_s1 + $0x240] sm:$0xff]  ;;  %v427_v12 = vld [vmem:[%s9452_s0 + $0xc8] sm:$0xff]  ;;  %v429_v14 = vld [vmem:[%s9452_s0 + $0xd8] sm:$0xff] }
  0x31   : > { %5922 = vmatpush3.bf16.msra.mxu1 %v5921_v35  ;;  %5924 = vmatprep.subr.bf16.mxu0 %v5923_v36  ;;  %v540_v15 = vld [vmem:[%s9453_s1 + $0x2d0] sm:$0xff]  ;;  %v541_v16 = vld [vmem:[%s9453_s1 + $0x2d8] sm:$0xff]  ;;  %v426_v17 = vld [vmem:[%s9452_s0 + $0xc0] sm:$0xff]  ;;  %v5941_v18 = vpack.c.bf16 %v523_v11, %v522_v10 }
  0x32   : > { %6339 = vmatprep.subr.bf16.mxu1 %v5923_v36  ;;  %v428_v19 = vld [vmem:[%s9452_s0 + $0xd0] sm:$0xff]  ;;  %v525_v21 = vld [vmem:[%s9453_s1 + $0x258] sm:$0xff]  ;;  %v5943_v23 = vpack.c.bf16 %v541_v16, %v540_v15  ;;  %v435_v24 = vld [vmem:[%s9452_s0 + $0x108] sm:$0xff] }
  0x33   : > { %619 = vmatmul.mubr.f32.vlgmr.msra.gmra.mrb[0].mxu0 %v402_v41  ;;  %v524_v20 = vld [vmem:[%s9453_s1 + $0x250] sm:$0xff]  ;;  %v433_v22 = vld [vmem:[%s9452_s0 + $0xf8] sm:$0xff]  ;;  %v542_v25 = vld [vmem:[%s9453_s1 + $0x2e0] sm:$0xff] }
  0x34   : > { %724 = vmatmul.mubr.f32.vlgmr.msra.gmra.mrb[0].mxu1 %v404_v43  ;;  %5926 = vmatpush3.bf16.msra.mxu0 %v5925_v42  ;;  %v543_v26 = vld [vmem:[%s9453_s1 + $0x2e8] sm:$0xff]  ;;  %v432_v27 = vld [vmem:[%s9452_s0 + $0xf0] sm:$0xff]  ;;  %v5945_v28 = vpack.c.bf16 %v525_v21, %v524_v20  ;;  %v434_v29 = vld [vmem:[%s9452_s0 + $0x100] sm:$0xff] }
  0x35   : > { %6347 = vmatpush3.bf16.msra.mxu1 %v5925_v42  ;;  %623 = vmatprep.mubr.f32.mxu0 %v409_v46  ;;  %v526_v30 = vld [vmem:[%s9453_s1 + $0x260] sm:$0xff]  ;;  %v527_v31 = vld [vmem:[%s9453_s1 + $0x268] sm:$0xff]  ;;  %v5947_v33 = vpack.c.bf16 %v543_v26, %v542_v25  ;;  %v441_v34 = vld [vmem:[%s9452_s0 + $0x138] sm:$0xff] }
  0x36   : > { %728 = vmatprep.mubr.f32.mxu1 %v411_v48  ;;  %5928 = vmatprep.subr.bf16.mxu0 %v5927_v47  ;;  %v439_v32 = vld [vmem:[%s9452_s0 + $0x128] sm:$0xff]  ;;  %v544_v35 = vld [vmem:[%s9453_s1 + $0x2f0] sm:$0xff]  ;;  %v545_v36 = vld [vmem:[%s9453_s1 + $0x2f8] sm:$0xff]  ;;  %v5949_v38 = vpack.c.bf16 %v527_v31, %v526_v30 }
  0x37   : > { %624 = vmatmul.mubr.f32.gmra.mrb[2].mxu0 %v408_v51  ;;  %6340 = vmatprep.subr.bf16.mxu1 %v5927_v47  ;;  %v438_v37 = vld [vmem:[%s9452_s0 + $0x120] sm:$0xff]  ;;  %v440_v39 = vld [vmem:[%s9452_s0 + $0x130] sm:$0xff]  ;;  %v529_v41 = vld [vmem:[%s9453_s1 + $0x278] sm:$0xff]  ;;  %v5951_v43 = vpack.c.bf16 %v545_v36, %v544_v35 }
  0x38   : > { %729 = vmatmul.mubr.f32.gmra.mrb[2].mxu1 %v410_v53  ;;  %5930 = vmatpush3.bf16.msra.mxu0 %v5929_v52  ;;  %v528_v40 = vld [vmem:[%s9453_s1 + $0x270] sm:$0xff]  ;;  %v445_v42 = vld [vmem:[%s9452_s0 + $0x158] sm:$0xff]  ;;  %v447_v44 = vld [vmem:[%s9452_s0 + $0x168] sm:$0xff] }
  0x39   : > { %6348 = vmatpush3.bf16.msra.mxu1 %v5929_v52  ;;  %628 = vmatprep.mubr.f32.mxu0 %v415_v56  ;;  %v444_v45 = vld [vmem:[%s9452_s0 + $0x150] sm:$0xff]  ;;  %v5953_v46 = vpack.c.bf16 %v529_v41, %v528_v40  ;;  %v446_v47 = vld [vmem:[%s9452_s0 + $0x160] sm:$0xff]  ;;  %v407_v48 = vld [vmem:[%s9452_s0 + $0x28] sm:$0xff] }
  0x3a   : > { %733 = vmatprep.mubr.f32.mxu1 %v417_v58  ;;  %5932 = vmatprep.subr.bf16.mxu0 %v5931_v57  ;;  %v431_v49 = vld [vmem:[%s9452_s0 + $0xe8] sm:$0xff]  ;;  %v406_v50 = vld [vmem:[%s9452_s0 + $0x20] sm:$0xff]  ;;  %v413_v52 = vld [vmem:[%s9452_s0 + $0x58] sm:$0xff] }
  0x3b   : > { %629 = vmatmul.mubr.f32.gmra.mrb[4].mxu0 %v414_v61  ;;  %6341 = vmatprep.subr.bf16.mxu1 %v5931_v57  ;;  %v430_v51 = vld [vmem:[%s9452_s0 + $0xe0] sm:$0xff]  ;;  %v437_v53 = vld [vmem:[%s9452_s0 + $0x118] sm:$0xff]  ;;  %v412_v54 = vld [vmem:[%s9452_s0 + $0x50] sm:$0xff] }
  0x3c   : > { %734 = vmatmul.mubr.f32.gmra.mrb[4].mxu1 %v416_v63  ;;  %5934 = vmatpush3.bf16.msra.mxu0 %v5933_v62  ;;  %v436_v55 = vld [vmem:[%s9452_s0 + $0x110] sm:$0xff]  ;;  %v419_v56 = vld [vmem:[%s9452_s0 + $0x88] sm:$0xff]  ;;  %v418_v58 = vld [vmem:[%s9452_s0 + $0x80] sm:$0xff] }
  0x3d   : > { %6349 = vmatpush3.bf16.msra.mxu1 %v5933_v62  ;;  %633 = vmatprep.mubr.f32.mxu0 %v421_v2  ;;  %v443_v57 = vld [vmem:[%s9452_s0 + $0x148] sm:$0xff]  ;;  %v442_v59 = vld [vmem:[%s9452_s0 + $0x140] sm:$0xff]  ;;  %v425_v60 = vld [vmem:[%s9452_s0 + $0xb8] sm:$0xff] }
  0x3e   : > { %738 = vmatprep.mubr.f32.mxu1 %v423_v4  ;;  %5936 = vmatprep.subr.bf16.mxu0 %v5935_v3  ;;  %v449_v61 = vld [vmem:[%s9452_s0 + $0x178] sm:$0xff]  ;;  %v424_v62 = vld [vmem:[%s9452_s0 + $0xb0] sm:$0xff]  ;;  %v546_v2 = vld [vmem:[%s9454_s2] sm:$0xff] }
  0x3f   : > { %634 = vmatmul.mubr.f32.gmra.mrb[6].mxu0 %v420_v7  ;;  %6342 = vmatprep.subr.bf16.mxu1 %v5935_v3  ;;  %v448_v63 = vld [vmem:[%s9452_s0 + $0x170] sm:$0xff]  ;;  %v547_v10 = vld [vmem:[%s9454_s2 + $0x8] sm:$0xff] }
  0x40   : > { %739 = vmatmul.mubr.f32.gmra.mrb[6].mxu1 %v422_v9  ;;  %5938 = vmatpush3.bf16.msra.mxu0 %v5937_v8 }
  0x41   : > { %6350 = vmatpush3.bf16.msra.mxu1 %v5937_v8  ;;  %638 = vmatprep.mubr.f32.mxu0 %v427_v12 }
  0x42   : > { %743 = vmatprep.mubr.f32.mxu1 %v429_v14  ;;  %5940 = vmatprep.subr.bf16.mxu0 %v5939_v13 }
  0x43   : > { %639 = vmatmul.mubr.f32.gmra.mrb[8].mxu0 %v426_v17  ;;  %6343 = vmatprep.subr.bf16.mxu1 %v5939_v13 }
  0x44   : > { %744 = vmatmul.mubr.f32.gmra.mrb[8].mxu1 %v428_v19  ;;  %5942 = vmatpush3.bf16.msra.mxu0 %v5941_v18  ;;  %v548_v19 = vld [vmem:[%s9454_s2 + $0x10] sm:$0xff] }
  0x45   : > { %6351 = vmatpush3.bf16.msra.mxu1 %v5941_v18  ;;  %643 = vmatprep.mubr.f32.mxu0 %v433_v22 }
  0x46   : > { %748 = vmatprep.mubr.f32.mxu1 %v435_v24  ;;  %5944 = vmatprep.subr.bf16.mxu0 %v5943_v23 }
  0x47   : > { %644 = vmatmul.mubr.f32.gmra.mrb[10].mxu0 %v432_v27  ;;  %6344 = vmatprep.subr.bf16.mxu1 %v5943_v23 }
  0x48   : > { %749 = vmatmul.mubr.f32.gmra.mrb[10].mxu1 %v434_v29  ;;  %5946 = vmatpush3.bf16.msra.mxu0 %v5945_v28 }
  0x49   : > { %6352 = vmatpush3.bf16.msra.mxu1 %v5945_v28  ;;  %648 = vmatprep.mubr.f32.mxu0 %v439_v32  ;;  %v549_v28 = vld [vmem:[%s9454_s2 + $0x18] sm:$0xff] }
  0x4a   : > { %753 = vmatprep.mubr.f32.mxu1 %v441_v34  ;;  %5948 = vmatprep.subr.bf16.mxu0 %v5947_v33 }
  0x4b   : > { %649 = vmatmul.mubr.f32.gmra.mrb[12].mxu0 %v438_v37  ;;  %6345 = vmatprep.subr.bf16.mxu1 %v5947_v33  ;;  %v550_v37 = vld [vmem:[%s9454_s2 + $0x20] sm:$0xff] }
  0x4c   : > { %754 = vmatmul.mubr.f32.gmra.mrb[12].mxu1 %v440_v39  ;;  %5950 = vmatpush3.bf16.msra.mxu0 %v5949_v38 }
  0x4d   : > { %6353 = vmatpush3.bf16.msra.mxu1 %v5949_v38  ;;  %653 = vmatprep.mubr.f32.mxu0 %v445_v42 }
  0x4e   : > { %758 = vmatprep.mubr.f32.mxu1 %v447_v44  ;;  %5952 = vmatprep.subr.bf16.mxu0 %v5951_v43 }
  0x4f   : > { %654 = vmatmul.mubr.f32.gmra.mrb[14].mxu0 %v444_v45  ;;  %6346 = vmatprep.subr.bf16.mxu1 %v5951_v43 }
  0x50   : > { %759 = vmatmul.mubr.f32.gmra.mrb[14].mxu1 %v446_v47  ;;  %5954 = vmatpush3.bf16.msra.mxu0 %v5953_v46 }
  0x51   : > { %6354 = vmatpush3.bf16.msra.mxu1 %v5953_v46  ;;  %828 = vmatprep.mubr.f32.mxu0 %v407_v48  ;;  %v551_v46 = vld [vmem:[%s9454_s2 + $0x28] sm:$0xff] }
  0x52   : > { %848 = vmatprep.mubr.f32.mxu1 %v431_v49 }
  0x53   : > { %829 = vmatmul.mubr.f32.vlgmr.msra.gmra.mrb[16].mxu0 %v406_v50 }
  0x54   : > { %849 = vmatmul.mubr.f32.vlgmr.msra.gmra.mrb[16].mxu1 %v430_v51  ;;  %833 = vmatprep.mubr.f32.mxu0 %v413_v52 }
  0x55   : > { %853 = vmatprep.mubr.f32.mxu1 %v437_v53 }
  0x57   : > { %834 = vmatmul.mubr.f32.gmra.mrb[18].mxu0 %v412_v54 }
  0x58   : > { %854 = vmatmul.mubr.f32.gmra.mrb[18].mxu1 %v436_v55  ;;  %838 = vmatprep.mubr.f32.mxu0 %v419_v56  ;;  %v552_v55 = vld [vmem:[%s9454_s2 + $0x30] sm:$0xff] }
  0x59   : > { %858 = vmatprep.mubr.f32.mxu1 %v443_v57 }
  0x5b   : > { %839 = vmatmul.mubr.f32.gmra.mrb[20].mxu0 %v418_v58 }
  0x5c   : > { %859 = vmatmul.mubr.f32.gmra.mrb[20].mxu1 %v442_v59  ;;  %843 = vmatprep.mubr.f32.mxu0 %v425_v60 }
  0x5d   : > { %863 = vmatprep.mubr.f32.mxu1 %v449_v61 }
  0x5f   : > { %844 = vmatmul.mubr.f32.gmra.mrb[22].mxu0 %v424_v62 }
  0x60   : > { %864 = vmatmul.mubr.f32.gmra.mrb[22].mxu1 %v448_v63 }
 0x106   : > { %v5123_v0 = vpop.f32.mrb[0].mxu0 }
 0x107   : > { %v5179_v1 = vpop.f32.mrb[0].mxu1  ;;  %v5124_v3 = vpop.f32.mrb[1].mxu0 }
 0x108   : > { %v5125_v4 = vadd.f32 %v5124_v3, %v5123_v0  ;;  %v5180_v5 = vpop.f32.mrb[1].mxu1  ;;  %v553_v0 = vld [vmem:[%s9454_s2 + $0x38] sm:$0xff] }
 0x109   : > { %v5181_v6 = vadd.f32 %v5180_v5, %v5179_v1 }
 0x10a   : > { %v621_v7 = vadd.f32 %v5125_v4, %v546_v2  ;;  %v5126_v8 = vpop.f32.mrb[2].mxu0 }
 0x10b   : > { %v5182_v9 = vpop.f32.mrb[2].mxu1  ;;  %v5127_v11 = vpop.f32.mrb[3].mxu0 }
 0x10c   : > { %v7411_v12 = vadd.f32 %v5181_v6, %v621_v7  ;;  %v5128_v13 = vadd.f32 %v5127_v11, %v5126_v8  ;;  %v5183_v14 = vpop.f32.mrb[3].mxu1 }
 0x10d   : > { %v5184_v15 = vadd.f32 %v5183_v14, %v5182_v9 }
 0x10e   : > { %v626_v16 = vadd.f32 %v5128_v13, %v547_v10  ;;  %v5129_v17 = vpop.f32.mrb[4].mxu0 }
 0x10f   : > { %v5185_v18 = vpop.f32.mrb[4].mxu1  ;;  %v5130_v20 = vpop.f32.mrb[5].mxu0 }
 0x110   : > { %v7416_v21 = vadd.f32 %v5184_v15, %v626_v16  ;;  %v5131_v22 = vadd.f32 %v5130_v20, %v5129_v17  ;;  %v5186_v23 = vpop.f32.mrb[5].mxu1 }
 0x111   : > { %v5187_v24 = vadd.f32 %v5186_v23, %v5185_v18 }
 0x112   : > { %v631_v25 = vadd.f32 %v5131_v22, %v548_v19  ;;  %v5132_v26 = vpop.f32.mrb[6].mxu0 }
 0x113   : > { %v5188_v27 = vpop.f32.mrb[6].mxu1  ;;  %v5133_v29 = vpop.f32.mrb[7].mxu0 }
 0x114   : > { %v7421_v30 = vadd.f32 %v5187_v24, %v631_v25  ;;  %v5134_v31 = vadd.f32 %v5133_v29, %v5132_v26  ;;  %v5189_v32 = vpop.f32.mrb[7].mxu1 }
 0x115   : > { %v5190_v33 = vadd.f32 %v5189_v32, %v5188_v27 }
 0x116   : > { %v636_v34 = vadd.f32 %v5134_v31, %v549_v28  ;;  %v5135_v35 = vpop.f32.mrb[8].mxu0 }
 0x117   : > { %v5191_v36 = vpop.f32.mrb[8].mxu1  ;;  %v5136_v38 = vpop.f32.mrb[9].mxu0 }
 0x118   : > { %v7426_v39 = vadd.f32 %v5190_v33, %v636_v34  ;;  %v5137_v40 = vadd.f32 %v5136_v38, %v5135_v35  ;;  %v5192_v41 = vpop.f32.mrb[9].mxu1 }
 0x119   : > { %v5193_v42 = vadd.f32 %v5192_v41, %v5191_v36 }
 0x11a   : > { %v641_v43 = vadd.f32 %v5137_v40, %v550_v37  ;;  %v5138_v44 = vpop.f32.mrb[10].mxu0 }
 0x11b   : > { %v5194_v45 = vpop.f32.mrb[10].mxu1  ;;  %v5139_v47 = vpop.f32.mrb[11].mxu0 }
 0x11c   : > { %v746_v48 = vadd.f32 %v5193_v42, %v641_v43  ;;  %v5140_v49 = vadd.f32 %v5139_v47, %v5138_v44  ;;  %v5195_v50 = vpop.f32.mrb[11].mxu1 }
 0x11d   : > { %v5196_v51 = vadd.f32 %v5195_v50, %v5194_v45 }
 0x11e   : > { %v646_v52 = vadd.f32 %v5140_v49, %v551_v46  ;;  %v5141_v53 = vpop.f32.mrb[12].mxu0 }
 0x11f   : > { %v5197_v54 = vpop.f32.mrb[12].mxu1  ;;  %v5142_v56 = vpop.f32.mrb[13].mxu0 }
 0x120   : > { %v751_v57 = vadd.f32 %v5196_v51, %v646_v52  ;;  %v5143_v58 = vadd.f32 %v5142_v56, %v5141_v53  ;;  %v5198_v59 = vpop.f32.mrb[13].mxu1 }
 0x121   : > { %v5199_v60 = vadd.f32 %v5198_v59, %v5197_v54 }
 0x122   : > { %v651_v61 = vadd.f32 %v5143_v58, %v552_v55  ;;  %v5144_v62 = vpop.f32.mrb[14].mxu0 }
 0x123   : > { %v5200_v63 = vpop.f32.mrb[14].mxu1  ;;  %v5145_v1 = vpop.f32.mrb[15].mxu0 }
 0x124   : > { %v756_v2 = vadd.f32 %v5199_v60, %v651_v61  ;;  %v5146_v3 = vadd.f32 %v5145_v1, %v5144_v62  ;;  %v5201_v4 = vpop.f32.mrb[15].mxu1 }
 0x125   : > { %v5202_v5 = vadd.f32 %v5201_v4, %v5200_v63 }
 0x126   : > { %v656_v6 = vadd.f32 %v5146_v3, %v553_v0  ;;  %v5235_v7 = vpop.f32.mrb[16].mxu0 }
 0x127   : > { %v5247_v8 = vpop.f32.mrb[16].mxu1  ;;  %v5236_v9 = vpop.f32.mrb[17].mxu0 }
 0x128   : > { %v761_v10 = vadd.f32 %v5202_v5, %v656_v6  ;;  %v5237_v11 = vadd.f32 %v5236_v9, %v5235_v7  ;;  %v5248_v13 = vpop.f32.mrb[17].mxu1 }
 0x129   : > { %v5249_v14 = vadd.f32 %v5248_v13, %v5247_v8 }
 0x12a   : > { %v831_v15 = vadd.f32 %v5237_v11, %v7411_v12  ;;  %v5238_v16 = vpop.f32.mrb[18].mxu0 }
 0x12b   : > { %v851_v17 = vadd.f32 %v5249_v14, %v746_v48  ;;  %v5250_v18 = vpop.f32.mrb[18].mxu1  ;;  %v5239_v19 = vpop.f32.mrb[19].mxu0 }
 0x12c   : > { %869 = vst [vmem:[#allocation2] sm:$0xff] %v831_v15  ;;  %v5240_v20 = vadd.f32 %v5239_v19, %v5238_v16  ;;  %v5251_v22 = vpop.f32.mrb[19].mxu1 }
 0x12d   : > { %873 = vst [vmem:[#allocation2 + $0x20] sm:$0xff] %v851_v17  ;;  %v5252_v23 = vadd.f32 %v5251_v22, %v5250_v18 }
 0x12e   : > { %v836_v24 = vadd.f32 %v5240_v20, %v7416_v21  ;;  %v5241_v25 = vpop.f32.mrb[20].mxu0 }
 0x12f   : > { %v856_v26 = vadd.f32 %v5252_v23, %v751_v57  ;;  %v5253_v27 = vpop.f32.mrb[20].mxu1  ;;  %v5242_v28 = vpop.f32.mrb[21].mxu0 }
 0x130   : > { %870 = vst [vmem:[#allocation2 + $0x8] sm:$0xff] %v836_v24  ;;  %v5243_v29 = vadd.f32 %v5242_v28, %v5241_v25  ;;  %v5254_v31 = vpop.f32.mrb[21].mxu1 }
 0x131   : > { %874 = vst [vmem:[#allocation2 + $0x28] sm:$0xff] %v856_v26  ;;  %v5255_v12 = vadd.f32 %v5254_v31, %v5253_v27 }
 0x132   : > { %v841_v32 = vadd.f32 %v5243_v29, %v7421_v30  ;;  %v5244_v33 = vpop.f32.mrb[22].mxu0 }
 0x133   : > { %v861_v34 = vadd.f32 %v5255_v12, %v756_v2  ;;  %v5256_v35 = vpop.f32.mrb[22].mxu1  ;;  %v5245_v36 = vpop.f32.mrb[23].mxu0 }
 0x134   : > { %871 = vst [vmem:[#allocation2 + $0x10] sm:$0xff] %v841_v32  ;;  %v5246_v37 = vadd.f32 %v5245_v36, %v5244_v33  ;;  %v5257_v38 = vpop.f32.mrb[23].mxu1 }
 0x135   : > { %875 = vst [vmem:[#allocation2 + $0x30] sm:$0xff] %v861_v34  ;;  %v5258_v21 = vadd.f32 %v5257_v38, %v5256_v35 }
 0x136   : > { %v846_v40 = vadd.f32 %v5246_v37, %v7426_v39 }
 0x137   : > { %v866_v41 = vadd.f32 %v5258_v21, %v761_v10 }
 0x138   : > { %872 = vst [vmem:[#allocation2 + $0x18] sm:$0xff] %v846_v40 }
 0x139   : > { %876 = vst [vmem:[#allocation2 + $0x38] sm:$0xff] %v866_v41 }
 0x13a PF: > { %v886_v42 = vld [vmem:[#allocation2] sm:$0xff]  ;;  %v887_v30 = vld [vmem:[#allocation2 + $0x8] sm:$0xff]  ;;  %v1018_v52 = vld [vmem:[%s6955_s20 + $0x18] sm:$0xff]  ;;  %vm1317_vm0 = vcmask 261120   ;;  %vm1471_vm2 = vcmask 523264   ;;  %s6881_s25 = smov 96  }
 0x13b   : > { %v888_v43 = vld [vmem:[#allocation2 + $0x10] sm:$0xff]  ;;  %902 = vadd.xlane.f32.xlu0 %v886_v42  ;;  %v7441_v45 = vld [vmem:[#allocation2 + $0x20] sm:$0xff]  ;;  %v7443_v39 = vld [vmem:[#allocation2 + $0x28] sm:$0xff]  ;;  %s6882_s27 = smov 64   ;;  %s6883_s28 = smov 32   ;;  %vm3039_vm3 = vcmask 785408  }
 0x13c   : > { %906 = vadd.xlane.f32.xlu1 %v888_v43  ;;  %v7447_v46 = vld [vmem:[#allocation2 + $0x30] sm:$0xff]  ;;  %v1016_v48 = vld [vmem:[%s6955_s20 + $0x8] sm:$0xff]  ;;  %v1019_v49 = vld [vmem:[%s6955_s20 + $0x20] sm:$0xff]  ;;  %p5084_p5 = scmp.ne.s32.totalorder %s6941_s10, 1 }
 0x13d   : > { %v1015_v50 = vld [vmem:[%s6955_s20] sm:$0xff]  ;;  %v5955_v51 = vpack.c.bf16 %v1019_v49, %v1016_v48  ;;  %v1022_v53 = vld [vmem:[%s6955_s20 + $0x38] sm:$0xff]  ;;  %v1025_v54 = vld [vmem:[%s6955_s20 + $0x50] sm:$0xff] }
 0x13e   : > { %v5957_v55 = vpack.c.bf16 %v1018_v52, %v1015_v50  ;;  %v5959_v56 = vpack.c.bf16 %v1025_v54, %v1022_v53  ;;  %v1017_v57 = vld [vmem:[%s6955_s20 + $0x10] sm:$0xff]  ;;  %v1020_v58 = vld [vmem:[%s6955_s20 + $0x28] sm:$0xff]  ;;  %v1031_v63 = vld [vmem:[%s6955_s20 + $0x80] sm:$0xff] }
 0x13f   : > { %v889_v44 = vld [vmem:[#allocation2 + $0x18] sm:$0xff]  ;;  %904 = vadd.xlane.f32.xlu0 %v887_v30  ;;  %v1021_v59 = vld [vmem:[%s6955_s20 + $0x30] sm:$0xff]  ;;  %5956 = vmatprep.subr.bf16.mxu0 %v5955_v51  ;;  %v5987_v60 = vpack.c.bf16 %v1020_v58, %v1017_v57  ;;  %v1024_v61 = vld [vmem:[%s6955_s20 + $0x48] sm:$0xff] }
 0x140   : > { %908 = vadd.xlane.f32.xlu1 %v889_v44  ;;  %v7449_v47 = vld [vmem:[#allocation2 + $0x38] sm:$0xff]  ;;  %v1028_v62 = vld [vmem:[%s6955_s20 + $0x68] sm:$0xff]  ;;  %5958 = vmatpush1.bf16.msra.mxu0 %v5957_v55  ;;  %v5961_v0 = vpack.c.bf16 %v1024_v61, %v1021_v59  ;;  %v1023_v1 = vld [vmem:[%s6955_s20 + $0x40] sm:$0xff] }
 0x141   : > { %v1026_v2 = vld [vmem:[%s6955_s20 + $0x58] sm:$0xff]  ;;  %5960 = vmatprep.subr.bf16.mxu0 %v5959_v56  ;;  %5988 = vmatprep.subr.bf16.mxu1 %v5987_v60  ;;  %v5963_v3 = vpack.c.bf16 %v1031_v63, %v1028_v62  ;;  %v1027_v5 = vld [vmem:[%s6955_s20 + $0x60] sm:$0xff]  ;;  %v1040_v49 = vld [vmem:[%s6955_s20 + $0xc8] sm:$0xff] }
 0x142   : > { %v5991_v4 = vpack.c.bf16 %v1026_v2, %v1023_v1  ;;  %v1030_v6 = vld [vmem:[%s6955_s20 + $0x78] sm:$0xff]  ;;  %5990 = vmatpush3.bf16.msra.mxu1 %v5987_v60  ;;  %v1043_v50 = vld [vmem:[%s6955_s20 + $0xe0] sm:$0xff]  ;;  %v1049_v59 = vld [vmem:[%s6955_s20 + $0x110] sm:$0xff] }
 0x143   : > { %910 = vadd.xlane.f32.xlu0 %v7441_v45  ;;  %v5965_v7 = vpack.c.bf16 %v1030_v6, %v1027_v5  ;;  %v1035_v51 = vld [vmem:[%s6955_s20 + $0xa0] sm:$0xff]  ;;  %v5971_v52 = vpack.c.bf16 %v1043_v50, %v1040_v49  ;;  %v1038_v53 = vld [vmem:[%s6955_s20 + $0xb8] sm:$0xff]  ;;  %v1041_v60 = vld [vmem:[%s6955_s20 + $0xd0] sm:$0xff] }
 0x144   : > { %912 = vadd.xlane.f32.xlu1 %v7443_v39  ;;  %5992 = vmatprep.subr.bf16.mxu1 %v5991_v4  ;;  %v1039_v54 = vld [vmem:[%s6955_s20 + $0xc0] sm:$0xff]  ;;  %v1042_v55 = vld [vmem:[%s6955_s20 + $0xd8] sm:$0xff]  ;;  %v5999_v56 = vpack.c.bf16 %v1038_v53, %v1035_v51  ;;  %v1044_v62 = vld [vmem:[%s6955_s20 + $0xe8] sm:$0xff] }
 0x145   : > { %5962 = vmatpush1.bf16.msra.mxu0 %v5961_v0  ;;  %v5973_v57 = vpack.c.bf16 %v1042_v55, %v1039_v54  ;;  %v1046_v58 = vld [vmem:[%s6955_s20 + $0xf8] sm:$0xff]  ;;  %v1045_v63 = vld [vmem:[%s6955_s20 + $0xf0] sm:$0xff]  ;;  %v1048_v0 = vld [vmem:[%s6955_s20 + $0x108] sm:$0xff]  ;;  %v6003_v1 = vpack.c.bf16 %v1044_v62, %v1041_v60 }
 0x146   : > { %5964 = vmatprep.subr.bf16.mxu0 %v5963_v3  ;;  %5994 = vmatpush3.bf16.msra.mxu1 %v5991_v4  ;;  %v5975_v61 = vpack.c.bf16 %v1049_v59, %v1046_v58  ;;  %v5977_v2 = vpack.c.bf16 %v1048_v0, %v1045_v63  ;;  %v1052_v3 = vld [vmem:[%s6955_s20 + $0x128] sm:$0xff]  ;;  %v1055_v4 = vld [vmem:[%s6955_s20 + $0x140] sm:$0xff]  ;;  %vm7589_vm1 = vmpackc.low %vm1317_vm0, %vm1317_vm0 }
 0x147   : > { %914 = vadd.xlane.f32.xlu0 %v7447_v46  ;;  %v1047_v5 = vld [vmem:[%s6955_s20 + $0x100] sm:$0xff]  ;;  %v5979_v6 = vpack.c.bf16 %v1055_v4, %v1052_v3 }
 0x148   : > { %916 = vadd.xlane.f32.xlu1 %v7449_v47  ;;  %v7544_v51 = vld [vmem:[%s6970_s13] sm:$0xff] }
 0x149   : > { %5966 = vmatpush1.bf16.msra.mxu0 %v5965_v7  ;;  %v1050_v7 = vld [vmem:[%s6955_s20 + $0x118] sm:$0xff] }
 0x1c8   : > { %v903_v8 = vpop.xlane.xlu0 %902 }
 0x1c9   : > { %v907_v9 = vpop.xlane.xlu1 %906  ;;  %v919_v10 = vmul.f32 0.0078125, %v903_v8  ;;  %v1051_v8 = vld [vmem:[%s6955_s20 + $0x120] sm:$0xff] }
 0x1ca   : > { %v921_v11 = vmul.f32 0.0078125, %v907_v9  ;;  %v1054_v9 = vld [vmem:[%s6955_s20 + $0x138] sm:$0xff] }
 0x1cb   : > { %v7469_v13 = vsub.f32 %v886_v42, %v919_v10  ;;  %v1034_v42 = vld [vmem:[%s6955_s20 + $0x98] sm:$0xff]  ;;  %v6007_v10 = vpack.c.bf16 %v1050_v7, %v1047_v5 }
 0x1cc   : > { %v7471_v14 = vsub.f32 %v888_v43, %v921_v11  ;;  %v905_v15 = vpop.xlane.xlu0 %904  ;;  %v1037_v43 = vld [vmem:[%s6955_s20 + $0xb0] sm:$0xff]  ;;  %v5981_v11 = vpack.c.bf16 %v1054_v9, %v1051_v8 }
 0x1cd   : > { %v909_v16 = vpop.xlane.xlu1 %908  ;;  %v920_v17 = vmul.f32 0.0078125, %v905_v15  ;;  %v935_v18 = vmul.f32 %v7469_v13, %v7469_v13  ;;  %v1058_v15 = vld [vmem:[%s6955_s20 + $0x158] sm:$0xff] }
 0x1ce   : > { %v922_v19 = vmul.f32 0.0078125, %v909_v16  ;;  %v937_v20 = vmul.f32 %v7471_v14, %v7471_v14  ;;  %v1061_v16 = vld [vmem:[%s6955_s20 + $0x170] sm:$0xff] }
 0x1cf   : > { %943 = vadd.xlane.f32.xlu0 %v935_v18  ;;  %v7477_v22 = vsub.f32 %v887_v30, %v920_v17  ;;  %v1029_v30 = vld [vmem:[%s6955_s20 + $0x70] sm:$0xff]  ;;  %v5983_v18 = vpack.c.bf16 %v1061_v16, %v1058_v15 }
 0x1d0   : > { %v7479_v23 = vsub.f32 %v889_v44, %v922_v19  ;;  %v911_v24 = vpop.xlane.xlu0 %910  ;;  %v5967_v44 = vpack.c.bf16 %v1037_v43, %v1034_v42  ;;  %v1053_v17 = vld [vmem:[%s6955_s20 + $0x130] sm:$0xff]  ;;  %v1056_v19 = vld [vmem:[%s6955_s20 + $0x148] sm:$0xff] }
 0x1d1   : > { %v913_v25 = vpop.xlane.xlu1 %912  ;;  %v923_v26 = vmul.f32 0.0078125, %v911_v24  ;;  %v936_v27 = vmul.f32 %v7477_v22, %v7477_v22  ;;  %v1060_v24 = vld [vmem:[%s6955_s20 + $0x168] sm:$0xff] }
 0x1d2   : > { %v924_v28 = vmul.f32 0.0078125, %v913_v25  ;;  %v938_v29 = vmul.f32 %v7479_v23, %v7479_v23  ;;  %5968 = vmatprep.subr.bf16.mxu0 %v5967_v44  ;;  %v6011_v25 = vpack.c.bf16 %v1056_v19, %v1053_v17 }
 0x1d3   : > { %947 = vadd.xlane.f32.xlu0 %v937_v20  ;;  %945 = vadd.xlane.f32.xlu1 %v936_v27  ;;  %v7486_v31 = vsub.f32 %v7441_v45, %v923_v26  ;;  %v1032_v45 = vld [vmem:[%s6955_s20 + $0x88] sm:$0xff]  ;;  %v1057_v20 = vld [vmem:[%s6955_s20 + $0x150] sm:$0xff]  ;;  %v1059_v27 = vld [vmem:[%s6955_s20 + $0x160] sm:$0xff] }
 0x1d4   : > { %v7489_v12 = vsub.f32 %v7443_v39, %v924_v28  ;;  %v915_v32 = vpop.xlane.xlu0 %914  ;;  %v1033_v39 = vld [vmem:[%s6955_s20 + $0x90] sm:$0xff]  ;;  %v5985_v26 = vpack.c.bf16 %v1060_v24, %v1057_v20  ;;  %v1062_v28 = vld [vmem:[%s6955_s20 + $0x178] sm:$0xff] }
 0x1d5   : > { %v917_v33 = vpop.xlane.xlu1 %916  ;;  %v925_v34 = vmul.f32 0.0078125, %v915_v32  ;;  %v939_v35 = vmul.f32 %v7486_v31, %v7486_v31  ;;  %v6880_v32 = vmov 0.0  }
 0x1d6   : > { %v926_v36 = vmul.f32 0.0078125, %v917_v33  ;;  %v940_v37 = vmul.f32 %v7489_v12, %v7489_v12  ;;  %1127 = vmatprep.mubr.f32.mxu0 %v6880_v32 }
 0x1d7   : > { %949 = vadd.xlane.f32.xlu1 %v938_v29  ;;  %951 = vadd.xlane.f32.xlu0 %v939_v35  ;;  %v7496_v38 = vsub.f32 %v7447_v46, %v925_v34  ;;  %v1036_v46 = vld [vmem:[%s6955_s20 + $0xa8] sm:$0xff]  ;;  %v6015_v29 = vpack.c.bf16 %v1062_v28, %v1059_v27  ;;  %v991_v35 = vlaneseq }
 0x1d8   : > { %v7499_v21 = vsub.f32 %v7449_v47, %v926_v36  ;;  %v5995_v47 = vpack.c.bf16 %v1032_v45, %v1029_v30  ;;  %v5969_v48 = vpack.c.bf16 %v1036_v46, %v1033_v39 }
 0x1d9   : > { %v941_v40 = vmul.f32 %v7496_v38, %v7496_v38  ;;  %v7538_v43 = vshrl.u32 %v991_v35, 7 }
 0x1da   : > { %v942_v41 = vmul.f32 %v7499_v21, %v7499_v21  ;;  %5996 = vmatprep.subr.bf16.mxu1 %v5995_v47  ;;  %5970 = vmatpush1.bf16.msra.mxu0 %v5969_v48 }
 0x1db   : > { %953 = vadd.xlane.f32.xlu1 %v940_v37  ;;  %955 = vadd.xlane.f32.xlu0 %v941_v40  ;;  %9487 = vst [vmem:[#allocation3_spill] sm:$0xff] %v7538_v43  ;;  %v7541_v48 = vsub.s32 0, %v7538_v43  ;;  %v7547_v54 = vsub.s32 1, %v7538_v43  ;;  %v1295_v35 = vsub.s32 7, %v7538_v43 }
 0x1dc   : > { %5998 = vmatpush3.bf16.msra.mxu1 %v5995_v47  ;;  %5972 = vmatprep.subr.bf16.mxu0 %v5971_v52 }
 0x1dd   : > { %6000 = vmatprep.subr.bf16.mxu1 %v5999_v56  ;;  %9488 = vst [vmem:[#allocation4_spill] sm:$0xff] %v7541_v48  ;;  %9489 = vst [vmem:[#allocation5_spill] sm:$0xff] %v7547_v54  ;;  %v1006_v63 = vrot.slane %v7544_v51, %v7547_v54 }
 0x1de   : > { %5974 = vmatpush1.bf16.msra.mxu0 %v5973_v57  ;;  %v994_v57 = vrot.slane %v7544_v51, %v7541_v48 }
 0x1df   : > { %957 = vadd.xlane.f32.xlu1 %v942_v41  ;;  %5976 = vmatprep.subr.bf16.mxu0 %v5975_v61 }
 0x1e0   : > { %6002 = vmatpush3.bf16.msra.mxu1 %v5999_v56 }
 0x1e1   : > { %6004 = vmatprep.subr.bf16.mxu1 %v6003_v1 }
 0x1e2   : > { %5978 = vmatpush1.bf16.msra.mxu0 %v5977_v2 }
 0x1e3   : > { %5980 = vmatprep.subr.bf16.mxu0 %v5979_v6 }
 0x1e4   : > { %6006 = vmatpush3.bf16.msra.mxu1 %v6003_v1 }
 0x1e5   : > { %6008 = vmatprep.subr.bf16.mxu1 %v6007_v10 }
 0x1e6   : > { %5982 = vmatpush1.bf16.msra.mxu0 %v5981_v11 }
 0x1e7   : > { %5984 = vmatprep.subr.bf16.mxu0 %v5983_v18 }
 0x1e8   : > { %6010 = vmatpush3.bf16.msra.mxu1 %v6007_v10 }
 0x1e9   : > { %6012 = vmatprep.subr.bf16.mxu1 %v6011_v25 }
 0x1ea   : > { %5986 = vmatpush1.bf16.msra.mxu0 %v5985_v26 }
 0x1ec   : > { %6014 = vmatpush3.bf16.msra.mxu1 %v6011_v25 }
 0x1ed   : > { %6016 = vmatprep.subr.bf16.mxu1 %v6015_v29 }
 0x1f0   : > { %6018 = vmatpush3.bf16.msra.mxu1 %v6015_v29 }
 0x25c   : > { %v944_v33 = vpop.xlane.xlu0 %943 }
 0x25d   : > { %v959_v34 = vmul.f32 0.0078125, %v944_v33 }
 0x25f   : > { %v967_v36 = vadd.f32 1e-06, %v959_v34 }
 0x260   : > { %v946_v37 = vpop.xlane.xlu1 %945  ;;  %v948_v40 = vpop.xlane.xlu0 %947 }
 0x261   : > { %6549 = vrsqrt.f32 %v967_v36  ;;  %v960_v41 = vmul.f32 0.0078125, %v946_v37  ;;  %v961_v42 = vmul.f32 0.0078125, %v948_v40  ;;  %v878_v36 = vld [vmem:[%s6970_s13 + $0x8] sm:$0xff] }
 0x263   : > { %v968_v30 = vadd.f32 1e-06, %v960_v41  ;;  %v969_v44 = vadd.f32 1e-06, %v961_v42  ;;  %v1308_v42 = vrot.slane %v878_v36, %v7541_v48 }
 0x264   : > { %v950_v45 = vpop.xlane.xlu1 %949  ;;  %v952_v39 = vpop.xlane.xlu0 %951 }
 0x265   : > { %6551 = vrsqrt.f32 %v968_v30  ;;  %v962_v46 = vmul.f32 0.0078125, %v950_v45  ;;  %v963_v47 = vmul.f32 0.0078125, %v952_v39  ;;  %v7579_v30 = vrot.slane %v7544_v51, %v1295_v35 }
 0x266   : > { %6553 = vrsqrt.f32 %v969_v44 }
 0x267   : > { %v970_v49 = vadd.f32 1e-06, %v962_v46  ;;  %v971_v50 = vadd.f32 1e-06, %v963_v47 }
 0x268   : > { %v954_v52 = vpop.xlane.xlu1 %953  ;;  %v956_v53 = vpop.xlane.xlu0 %955 }
 0x269   : > { %6555 = vrsqrt.f32 %v970_v49  ;;  %v964_v55 = vmul.f32 0.0078125, %v954_v52  ;;  %v965_v56 = vmul.f32 0.0078125, %v956_v53 }
 0x26a   : > { %6557 = vrsqrt.f32 %v971_v50 }
 0x26b   : > { %v6550_v58 = vpop.eup %6549  ;;  %v972_v59 = vadd.f32 1e-06, %v964_v55  ;;  %v973_v60 = vadd.f32 1e-06, %v965_v56 }
 0x26c   : > { %v958_v61 = vpop.xlane.xlu1 %957  ;;  %v983_v62 = vmul.f32 %v6550_v58, %v7469_v13 }
 0x26d   : > { %6559 = vrsqrt.f32 %v972_v59  ;;  %v966_v0 = vmul.f32 0.0078125, %v958_v61 }
 0x26e   : > { %6561 = vrsqrt.f32 %v973_v60  ;;  %v995_v1 = vmul.f32 %v994_v57, %v983_v62 }
 0x26f   : > { %v6552_v2 = vpop.eup %6551  ;;  %v974_v3 = vadd.f32 1e-06, %v966_v0 }
 0x270   : > { %v6554_v4 = vpop.eup %6553  ;;  %v1007_v5 = vadd.f32 %v1006_v63, %v995_v1  ;;  %v984_v6 = vmul.f32 %v6552_v2, %v7477_v22 }
 0x271   : > { %6563 = vrsqrt.f32 %v974_v3  ;;  %v985_v7 = vmul.f32 %v6554_v4, %v7471_v14 }
 0x272   : > { %1128 = vmatmul.mubr.f32.vlgmr.msra.gmra.mrb[0].mxu0 %v1007_v5  ;;  %5579 = vmatprep.mubr.f32.mxu1 %v1007_v5  ;;  %v996_v8 = vmul.f32 %v994_v57, %v984_v6 }
 0x273   : > { %v6556_v13 = vpop.eup %6555  ;;  %1133 = vmatprep.mubr.f32.mxu0 %v6880_v32  ;;  %v997_v9 = vmul.f32 %v994_v57, %v985_v7 }
 0x274   : > { %v6558_v10 = vpop.eup %6557  ;;  %v1008_v11 = vadd.f32 %v1006_v63, %v996_v8  ;;  %v986_v15 = vmul.f32 %v6556_v13, %v7479_v23 }
 0x275   : > { %v1009_v16 = vadd.f32 %v1006_v63, %v997_v9  ;;  %v987_v17 = vmul.f32 %v6558_v10, %v7486_v31 }
 0x276   : > { %1134 = vmatmul.mubr.f32.gmra.mrb[2].mxu0 %v1008_v11  ;;  %5580 = vmatmul.mubr.f32.vlgmr.msra.gmra.mrb[0].mxu1 %v1008_v11  ;;  %v998_v22 = vmul.f32 %v994_v57, %v986_v15 }
 0x277   : > { %v6560_v18 = vpop.eup %6559  ;;  %5582 = vmatprep.mubr.f32.mxu1 %v1009_v16  ;;  %1139 = vmatprep.mubr.f32.mxu0 %v6880_v32  ;;  %v999_v14 = vmul.f32 %v994_v57, %v987_v17 }
 0x278   : > { %v6562_v19 = vpop.eup %6561  ;;  %v1010_v20 = vadd.f32 %v1006_v63, %v998_v22  ;;  %v988_v24 = vmul.f32 %v6560_v18, %v7489_v12 }
 0x279   : > { %v1011_v25 = vadd.f32 %v1006_v63, %v999_v14  ;;  %v989_v26 = vmul.f32 %v6562_v19, %v7496_v38  ;;  %v1283_v38 = vsub.s32 6, %v7538_v43 }
 0x27a   : > { %1140 = vmatmul.mubr.f32.gmra.mrb[4].mxu0 %v1009_v16  ;;  %5583 = vmatmul.mubr.f32.gmra.mrb[2].mxu1 %v1010_v20  ;;  %v1000_v23 = vmul.f32 %v994_v57, %v988_v24 }
 0x27b   : > { %v6564_v27 = vpop.eup %6563  ;;  %5585 = vmatprep.mubr.f32.mxu1 %v1011_v25  ;;  %1145 = vmatprep.mubr.f32.mxu0 %v6880_v32  ;;  %v1001_v31 = vmul.f32 %v994_v57, %v989_v26 }
 0x27c   : > { %v1012_v28 = vadd.f32 %v1006_v63, %v1000_v23  ;;  %v990_v29 = vmul.f32 %v6564_v27, %v7499_v21  ;;  %v7570_v21 = vrot.slane %v7544_v51, %v1283_v38 }
 0x27d   : > { %v1013_v33 = vadd.f32 %v1006_v63, %v1001_v31 }
 0x27e   : > { %1146 = vmatmul.mubr.f32.gmra.mrb[6].mxu0 %v1010_v20  ;;  %5586 = vmatmul.mubr.f32.gmra.mrb[4].mxu1 %v1012_v28  ;;  %v1002_v34 = vmul.f32 %v994_v57, %v990_v29 }
 0x27f   : > { %5588 = vmatprep.mubr.f32.mxu1 %v1013_v33  ;;  %1151 = vmatprep.mubr.f32.mxu0 %v6880_v32 }
 0x280   : > { %v1014_v12 = vadd.f32 %v1006_v63, %v1002_v34 }
 0x282   : > { %1152 = vmatmul.mubr.f32.gmra.mrb[8].mxu0 %v1011_v25  ;;  %5589 = vmatmul.mubr.f32.gmra.mrb[6].mxu1 %v1014_v12 }
 0x283   : > { %1157 = vmatprep.mubr.f32.mxu0 %v6880_v32 }
 0x286   : > { %1158 = vmatmul.mubr.f32.gmra.mrb[10].mxu0 %v1012_v28 }
 0x287   : > { %1163 = vmatprep.mubr.f32.mxu0 %v6880_v32 }
 0x28a   : > { %1164 = vmatmul.mubr.f32.gmra.mrb[12].mxu0 %v1013_v33 }
 0x28b   : > { %1169 = vmatprep.mubr.f32.mxu0 %v6880_v32 }
 0x28e   : > { %1170 = vmatmul.mubr.f32.gmra.mrb[14].mxu0 %v1014_v12 }
 0x345   : > { %v1129_v37 = vpop.f32.mrb[0].mxu0 }
 0x346   : > { %v7575_v40 = vadd.f32 %v7570_v21, %v1129_v37  ;;  %v1131_v41 = vpop.f32.mrb[1].mxu0 }
 0x347   : > { %v1297_v49 = vadd.f32 %v7579_v30, %v1131_v41 }
 0x348   : > { %5607 = vmatprep.mubr.msk.f32.mxu0 %vm1317_vm0, %v7575_v40 }
 0x349   : > { %v7583_v44 = vpop.f32.mrb[2].mxu0  ;;  %v5581_v45 = vpop.f32.mrb[0].mxu1 }
 0x34a   : > { %v1310_v39 = vadd.f32 %v5581_v45, %v1308_v42  ;;  %v1137_v46 = vpop.f32.mrb[3].mxu0  ;;  %v1242_v47 = vpop.f32.mrb[1].mxu1  ;;  %v7635_v41 = vadd.f32 %v7570_v21, %v7583_v44 }
 0x34b   : > { %v1298_v50 = vadd.f32 %v7579_v30, %v1137_v46  ;;  %v1309_v52 = vadd.f32 %v1308_v42, %v1242_v47  ;;  %v7673_v47 = vld [vmem:[%s9455_s3 + $0x8] sm:$0xff] }
 0x34d   : > { %v7593_v51 = vpop.f32.mrb[4].mxu0  ;;  %v5584_v55 = vpop.f32.mrb[2].mxu1  ;;  %v6019_v56 = vpack.c.bf16 %v1298_v50, %v1297_v49  ;;  %v6043_v57 = vpack.c.bf16 %v1310_v39, %v1309_v52  ;;  %v7595_v58 = vpack.i.bf16 %v1298_v50, %v1297_v49  ;;  %v7597_v62 = vpack.i.bf16 %v1310_v39, %v1309_v52  ;;  %v7678_v49 = vld [vmem:[%s9455_s3] sm:$0xff] }
 0x34e   : > { %v1312_v59 = vadd.f32 %v5584_v55, %v1308_v42  ;;  %v1143_v60 = vpop.f32.mrb[5].mxu0  ;;  %v1252_v61 = vpop.f32.mrb[3].mxu1  ;;  %v7685_v55 = vld [vmem:[%s9455_s3 + $0x18] sm:$0xff] }
 0x34f   : > { %v1311_v63 = vadd.f32 %v1308_v42, %v1252_v61  ;;  %6021 = vmatprep.subr.msk.bf16.mxu0 %vm7589_vm1, %v6019_v56  ;;  %6044 = vmatprep.subr.bf16.mxu1 %v6043_v57  ;;  %v1299_v7 = vadd.f32 %v7579_v30, %v1143_v60 }
 0x350   : > { %6024 = vmatpush3.bf16.xpose.msk.msra.mxu0 %vm7589_vm1, %v6019_v56  ;;  %6046 = vmatpush3.bf16.msra.mxu1 %v6043_v57  ;;  %v7691_v57 = vld [vmem:[%s9455_s3 + $0x10] sm:$0xff] }
 0x351   : > { %v1147_v0 = vpop.f32.mrb[6].mxu0  ;;  %v5587_v1 = vpop.f32.mrb[4].mxu1  ;;  %v6047_v2 = vpack.c.bf16 %v1312_v59, %v1311_v63  ;;  %v7603_v3 = vpack.i.bf16 %v1312_v59, %v1311_v63 }
 0x352   : > { %v1314_v4 = vadd.f32 %v5587_v1, %v1308_v42  ;;  %v1149_v5 = vpop.f32.mrb[7].mxu0  ;;  %v1262_v6 = vpop.f32.mrb[5].mxu1  ;;  %v7699_v1 = vld [vmem:[%s9455_s3 + $0x28] sm:$0xff] }
 0x353   : > { %v1300_v8 = vadd.f32 %v7579_v30, %v1149_v5  ;;  %v1313_v13 = vadd.f32 %v1308_v42, %v1262_v6  ;;  %6048 = vmatprep.subr.bf16.mxu1 %v6047_v2 }
 0x354   : > { %6050 = vmatpush3.bf16.msra.mxu1 %v6047_v2 }
 0x355   : > { %v1153_v9 = vpop.f32.mrb[8].mxu0  ;;  %v5590_v10 = vpop.f32.mrb[6].mxu1  ;;  %v6025_v11 = vpack.c.bf16 %v1300_v8, %v1299_v7  ;;  %v6051_v15 = vpack.c.bf16 %v1314_v4, %v1313_v13  ;;  %v7607_v16 = vpack.i.bf16 %v1300_v8, %v1299_v7  ;;  %v7609_v14 = vpack.i.bf16 %v1314_v4, %v1313_v13  ;;  %v7705_v4 = vld [vmem:[%s9455_s3 + $0x20] sm:$0xff] }
 0x356   : > { %v1316_v17 = vadd.f32 %v5590_v10, %v1308_v42  ;;  %v1155_v22 = vpop.f32.mrb[9].mxu0  ;;  %v1272_v18 = vpop.f32.mrb[7].mxu1  ;;  %v7649_v45 = vadd.f32 %v7570_v21, %v1153_v9  ;;  %v7713_v9 = vld [vmem:[%s9455_s3 + $0x38] sm:$0xff] }
 0x357   : > { %v1315_v19 = vadd.f32 %v1308_v42, %v1272_v18  ;;  %6027 = vmatprep.subr.msk.bf16.mxu0 %vm7589_vm1, %v6025_v11  ;;  %6052 = vmatprep.subr.bf16.mxu1 %v6051_v15  ;;  %v1301_v23 = vadd.f32 %v7579_v30, %v1155_v22  ;;  %v7639_v42 = vadd.f32 %v7570_v21, %v7593_v51 }
 0x358   : > { %6030 = vmatpush3.bf16.xpose.msk.msra.mxu0 %vm7589_vm1, %v6025_v11  ;;  %6054 = vmatpush3.bf16.msra.mxu1 %v6051_v15  ;;  %v7719_v11 = vld [vmem:[%s9455_s3 + $0x30] sm:$0xff] }
 0x359   : > { %v1159_v20 = vpop.f32.mrb[10].mxu0  ;;  %v6055_v24 = vpack.c.bf16 %v1316_v17, %v1315_v19  ;;  %v7615_v25 = vpack.i.bf16 %v1316_v17, %v1315_v19 }
 0x35a   : > { %v1161_v26 = vpop.f32.mrb[11].mxu0  ;;  %v7656_v44 = vadd.f32 %v7570_v21, %v1159_v20 }
 0x35b   : > { %v1302_v27 = vadd.f32 %v7579_v30, %v1161_v26  ;;  %6056 = vmatprep.subr.bf16.mxu1 %v6055_v24 }
 0x35c   : > { %6058 = vmatpush3.bf16.msra.mxu1 %v6055_v24 }
 0x35d   : > { %v1165_v31 = vpop.f32.mrb[12].mxu0  ;;  %v6031_v28 = vpack.c.bf16 %v1302_v27, %v1301_v23  ;;  %v7619_v29 = vpack.i.bf16 %v1302_v27, %v1301_v23 }
 0x35e   : > { %v1167_v33 = vpop.f32.mrb[13].mxu0  ;;  %v7659_v39 = vadd.f32 %v7570_v21, %v1165_v31 }
 0x35f   : > { %6033 = vmatprep.subr.msk.bf16.mxu0 %vm7589_vm1, %v6031_v28  ;;  %v1303_v38 = vadd.f32 %v7579_v30, %v1167_v33 }
 0x360   : > { %6036 = vmatpush3.bf16.xpose.msk.msra.mxu0 %vm7589_vm1, %v6031_v28 }
 0x361   : > { %v1171_v34 = vpop.f32.mrb[14].mxu0 }
 0x362   : > { %v1173_v12 = vpop.f32.mrb[15].mxu0  ;;  %v7666_v46 = vadd.f32 %v7570_v21, %v1171_v34 }
 0x363   : > { %v1304_v35 = vadd.f32 %v7579_v30, %v1173_v12  ;;  %v7646_v30 = vadd.f32 %v7570_v21, %v1147_v0 }
 0x365   : > { %v6037_v36 = vpack.c.bf16 %v1304_v35, %v1303_v38  ;;  %v7627_v37 = vpack.i.bf16 %v1304_v35, %v1303_v38 }
 0x367   : > { %6039 = vmatprep.subr.msk.bf16.mxu0 %vm7589_vm1, %v6037_v36 }
 0x368   : > { %6042 = vmatpush3.bf16.xpose.msk.msra.mxu0 %vm7589_vm1, %v6037_v36 }
 0x36f   : > { %5608 = vmatmul.mubr.msk.f32.vlgmr.msra.gmra.mrb[16].mxu0 %vm1317_vm0, %v7635_v41 }
 0x370   : > { %5610 = vmatprep.mubr.msk.f32.mxu0 %vm1317_vm0, %v7639_v42 }
 0x373   : > { %5611 = vmatmul.mubr.msk.f32.gmra.mrb[18].mxu0 %vm1317_vm0, %v7646_v30 }
 0x374   : > { %5613 = vmatprep.mubr.msk.f32.mxu0 %vm1317_vm0, %v7649_v45 }
 0x377   : > { %5614 = vmatmul.mubr.msk.f32.gmra.mrb[20].mxu0 %vm1317_vm0, %v7656_v44 }
 0x378   : > { %5616 = vmatprep.mubr.msk.f32.mxu0 %vm1317_vm0, %v7659_v39 }
 0x37b   : > { %5617 = vmatmul.mubr.msk.f32.gmra.mrb[22].mxu0 %vm1317_vm0, %v7666_v46 }
 0x442   : > { %v5609_v50 = vpop.f32.mrb[16].mxu0 }
 0x443   : > { %v1438_v52 = vadd.f32 %v5609_v50, %v7673_v47  ;;  %v1432_v51 = vpop.f32.mrb[17].mxu0 }
 0x444   : > { %v1433_v21 = vadd.f32 %v1432_v51, %v7678_v49 }
 0x445   : > { %v1475_v56 = vsel %vm1471_vm2, %v1438_v52, -inf }
 0x446   : > { %1476 = vmax.xlane.f32.xlu1 %v1475_v56  ;;  %v5612_v59 = vpop.f32.mrb[18].mxu0  ;;  %v1472_v60 = vsel %vm1471_vm2, %v1433_v21, -inf }
 0x447   : > { %v1448_v61 = vadd.f32 %v5612_v59, %v7685_v55  ;;  %v1442_v63 = vpop.f32.mrb[19].mxu0  ;;  %1473 = vmax.xlane.f32.xlu0 %v1472_v60 }
 0x448   : > { %v1443_v0 = vadd.f32 %v1442_v63, %v7691_v57 }
 0x449   : > { %v1481_v2 = vsel %vm1471_vm2, %v1448_v61, -inf }
 0x44a   : > { %1482 = vmax.xlane.f32.xlu1 %v1481_v2  ;;  %v5615_v5 = vpop.f32.mrb[20].mxu0  ;;  %v1478_v6 = vsel %vm1471_vm2, %v1443_v0, -inf }
 0x44b   : > { %v1458_v7 = vadd.f32 %v5615_v5, %v7699_v1  ;;  %v1452_v8 = vpop.f32.mrb[21].mxu0  ;;  %1479 = vmax.xlane.f32.xlu0 %v1478_v6 }
 0x44c   : > { %v1453_v13 = vadd.f32 %v1452_v8, %v7705_v4 }
 0x44d   : > { %v1487_v10 = vsel %vm1471_vm2, %v1458_v7, -inf }
 0x44e   : > { %1488 = vmax.xlane.f32.xlu1 %v1487_v10  ;;  %v5618_v15 = vpop.f32.mrb[22].mxu0  ;;  %v1484_v17 = vsel %vm1471_vm2, %v1453_v13, -inf }
 0x44f   : > { %v7723_v22 = vadd.f32 %v5618_v15, %v7713_v9  ;;  %v1462_v18 = vpop.f32.mrb[23].mxu0  ;;  %1485 = vmax.xlane.f32.xlu0 %v1484_v17 }
 0x450   : > { %v7726_v19 = vadd.f32 %v1462_v18, %v7719_v11 }
 0x451   : > { %v1493_v20 = vsel %vm1471_vm2, %v7723_v22, -inf }
 0x452   : > { %1494 = vmax.xlane.f32.xlu1 %v1493_v20  ;;  %v1490_v24 = vsel %vm1471_vm2, %v7726_v19, -inf }
 0x453   : > { %1491 = vmax.xlane.f32.xlu0 %v1490_v24 }
 0x463   : > { %6375 = vrot.lane.b32.xlu1 %v7607_v16, %s6881_s25 }
 0x469   : > { %6370 = vrot.lane.b32.xlu0 %v7595_v58, %s6881_s25 }
 0x4d3   : > { %v1477_v26 = vpop.xlane.xlu1 %1476 }
 0x4d4   : > { %v1497_v23 = vsub.f32 %v1438_v52, %v1477_v26  ;;  %v1474_v27 = vpop.xlane.xlu0 %1473 }
 0x4d5   : > { %v1496_v31 = vsub.f32 %v1433_v21, %v1474_v27 }
 0x4d6   : > { %v1506_v28 = vmul.f32 1.442695, %v1497_v23 }
 0x4d7   : > { %v1504_v33 = vmul.f32 1.442695, %v1496_v31  ;;  %v1483_v60 = vpop.xlane.xlu1 %1482 }
 0x4d8   : > { %6565 = vpow2.f32 %v1506_v28  ;;  %v1480_v34 = vpop.xlane.xlu0 %1479  ;;  %v1499_v63 = vsub.f32 %v1448_v61, %v1483_v60 }
 0x4d9   : > { %6567 = vpow2.f32 %v1504_v33  ;;  %v1498_v2 = vsub.f32 %v1443_v0, %v1480_v34 }
 0x4da   : > { %v1510_v6 = vmul.f32 1.442695, %v1499_v63 }
 0x4db   : > { %v1489_v5 = vpop.xlane.xlu1 %1488  ;;  %v1508_v10 = vmul.f32 1.442695, %v1498_v2 }
 0x4dc   : > { %v1486_v12 = vpop.xlane.xlu0 %1485  ;;  %v1501_v8 = vsub.f32 %v1458_v7, %v1489_v5  ;;  %6569 = vpow2.f32 %v1510_v6 }
 0x4dd   : > { %v1500_v15 = vsub.f32 %v1453_v13, %v1486_v12  ;;  %6571 = vpow2.f32 %v1508_v10 }
 0x4de   : > { %v1514_v17 = vmul.f32 1.442695, %v1501_v8 }
 0x4df   : > { %v1512_v18 = vmul.f32 1.442695, %v1500_v15  ;;  %v1495_v27 = vpop.xlane.xlu1 %1494 }
 0x4e0   : > { %v1492_v38 = vpop.xlane.xlu0 %1491  ;;  %6573 = vpow2.f32 %v1514_v17  ;;  %v1503_v31 = vsub.f32 %v7723_v22, %v1495_v27 }
 0x4e1   : > { %6575 = vpow2.f32 %v1512_v18  ;;  %v1502_v33 = vsub.f32 %v7726_v19, %v1492_v38 }
 0x4e2   : > { %v7736_v35 = vpop.eup %6565  ;;  %v1518_v28 = vmul.f32 1.442695, %v1503_v31 }
 0x4e3   : > { %v7738_v36 = vpop.eup %6567  ;;  %v1523_v50 = vsel %vm1471_vm2, %v7736_v35, 0.0  ;;  %v1516_v34 = vmul.f32 1.442695, %v1502_v33 }
 0x4e4   : > { %1524 = vadd.xlane.f32.xlu1 %v1523_v50  ;;  %v6371_v51 = vpop.permute.xlu0 %6370  ;;  %v1520_v52 = vsel %vm1471_vm2, %v7738_v36, 0.0  ;;  %6577 = vpow2.f32 %v1518_v28  ;;  %v6376_v50 = vpop.permute.xlu1 %6375 }
 0x4e5   : > { %v6373_v21 = vunpack.i.h.bf16 %v6371_v51  ;;  %v6372_v56 = vunpack.i.l.bf16 %v6371_v51  ;;  %1521 = vadd.xlane.f32.xlu0 %v1520_v52  ;;  %6579 = vpow2.f32 %v1516_v34  ;;  %v6378_v6 = vunpack.i.h.bf16 %v6376_v50 }
 0x4e6   : > { %v7753_v20 = vpop.eup %6569  ;;  %v6377_v8 = vunpack.i.l.bf16 %v6376_v50 }
 0x4e7   : > { %v7744_v59 = vpack.c.bf16 %v6373_v21, %v6372_v56  ;;  %v7755_v24 = vpop.eup %6571  ;;  %v1529_v26 = vsel %vm1471_vm2, %v7753_v20, 0.0 }
 0x4e8   : > { %v1526_v0 = vsel %vm1471_vm2, %v7755_v24, 0.0  ;;  %v6065_v17 = vpack.c.bf16 %v6378_v6, %v6377_v8 }
 0x4e9   : > { %6061 = vmatprep.subr.msk.bf16.mxu1 %vm7589_vm1, %v7744_v59 }
 0x4ea   : > { %v7759_v61 = vpop.eup %6573 }
 0x4eb   : > { %v7763_v7 = vpop.eup %6575  ;;  %v1535_v13 = vsel %vm1471_vm2, %v7759_v61, 0.0 }
 0x4ec   : > { %v1532_v23 = vsel %vm1471_vm2, %v7763_v7, 0.0 }
 0x4ee   : > { %v7787_v22 = vpop.eup %6577 }
 0x4ef   : > { %v1541_v19 = vsel %vm1471_vm2, %v7787_v22, 0.0  ;;  %v7793_v12 = vpop.eup %6579 }
 0x4f0   : > { %v1538_v38 = vsel %vm1471_vm2, %v7793_v12, 0.0 }
 0x4f5   : > { %6385 = vrot.lane.b32.xlu1 %v7595_v58, %s6882_s27 }
 0x4fb   : > { %6380 = vrot.lane.b32.xlu0 %v7619_v29, %s6881_s25 }
 0x519   : > { %1530 = vadd.xlane.f32.xlu1 %v1529_v26 }
 0x51a   : > { %1527 = vadd.xlane.f32.xlu0 %v1526_v0 }
 0x51d   : > { %1536 = vadd.xlane.f32.xlu1 %v1535_v13 }
 0x51e   : > { %1533 = vadd.xlane.f32.xlu0 %v1532_v23 }
 0x52e   : > { %6395 = vrot.lane.b32.xlu1 %v7607_v16, %s6882_s27 }
 0x534   : > { %6390 = vrot.lane.b32.xlu0 %v7627_v37, %s6881_s25 }
 0x538   : > { %1689 = vrot.lane.b32.xlu0 %v7575_v40, %s6881_s25 }
 0x53c   : > { %6400 = vrot.lane.b32.xlu0 %v7619_v29, %s6882_s27 }
 0x540   : > { %1695 = vrot.lane.b32.xlu0 %v7646_v30, %s6881_s25 }
 0x544   : > { %1697 = vrot.lane.b32.xlu0 %v7649_v45, %s6881_s25 }
 0x548   : > { %1701 = vrot.lane.b32.xlu0 %v7659_v39, %s6881_s25 }
 0x54c   : > { %2107 = vrot.lane.b32.xlu0 %v7575_v40, %s6882_s27 }
 0x550   : > { %2111 = vrot.lane.b32.xlu0 %v7639_v42, %s6882_s27 }
 0x552   : > { %1542 = vadd.xlane.f32.xlu1 %v1541_v19 }
 0x554   : > { %2115 = vrot.lane.b32.xlu0 %v7649_v45, %s6882_s27 }
 0x556   : > { %1539 = vadd.xlane.f32.xlu1 %v1538_v38 }
 0x558   : > { %2119 = vrot.lane.b32.xlu0 %v7659_v39, %s6882_s27 }
 0x567   : > { %1691 = vrot.lane.b32.xlu1 %v7635_v41, %s6881_s25 }
 0x56b   : > { %1693 = vrot.lane.b32.xlu1 %v7639_v42, %s6881_s25 }
 0x56f   : > { %6405 = vrot.lane.b32.xlu1 %v7627_v37, %s6882_s27 }
 0x571   : > { %v1525_v51 = vpop.xlane.xlu1 %1524 }
 0x572   : > { %6581 = vrcp.f32 %v1525_v51  ;;  %v1522_v52 = vpop.xlane.xlu0 %1521 }
 0x573   : > { %6583 = vrcp.f32 %v1522_v52  ;;  %1699 = vrot.lane.b32.xlu1 %v7656_v44, %s6881_s25 }
 0x575   : > { %v6386_v21 = vpop.permute.xlu1 %6385 }
 0x576   : > { %v6388_v56 = vunpack.i.h.bf16 %v6386_v21  ;;  %v6387_v60 = vunpack.i.l.bf16 %v6386_v21  ;;  %v6381_v18 = vpop.permute.xlu0 %6380 }
 0x577   : > { %1703 = vrot.lane.b32.xlu1 %v7666_v46, %s6881_s25 }
 0x578   : > { %v6099_v63 = vpack.c.bf16 %v6388_v56, %v6387_v60 }
 0x57a   : > { %6101 = vmatprep.subr.msk.bf16.mxu0 %vm7589_vm1, %v6099_v63 }
 0x57b   : > { %6104 = vmatpush3.bf16.xpose.msk.msra.mxu0 %vm7589_vm1, %v6099_v63  ;;  %2109 = vrot.lane.b32.xlu1 %v7635_v41, %s6882_s27 }
 0x57c   : > { %v6582_v2 = vpop.eup %6581 }
 0x57d   : > { %v6584_v5 = vpop.eup %6583  ;;  %v1553_v15 = vmul.f32 %v6582_v2, %v7736_v35  ;;  %v6383_v35 = vunpack.i.h.bf16 %v6381_v18 }
 0x57e   : > { %v1552_v10 = vmul.f32 %v6584_v5, %v7738_v36  ;;  %v6382_v36 = vunpack.i.l.bf16 %v6381_v18 }
 0x57f   : > { %2113 = vrot.lane.b32.xlu1 %v7646_v30, %s6882_s27 }
 0x580   : > { %5635 = vmatprep.mubr.msk.f32.mxu1 %vm1471_vm2, %v1552_v10  ;;  %v6071_v26 = vpack.c.bf16 %v6383_v35, %v6382_v36 }
 0x581   : > { %5636 = vmatmul.mubr.msk.f32.vlgmr.msra.gmra.mrb[8].mxu1 %vm1471_vm2, %v1553_v15 }
 0x582   : > { %6064 = vmatpush3.bf16.xpose.msk.msra.mxu1 %vm7589_vm1, %v7744_v59 }
 0x583   : > { %6067 = vmatprep.subr.msk.bf16.mxu1 %vm7589_vm1, %v6065_v17  ;;  %2117 = vrot.lane.b32.xlu1 %v7656_v44, %s6882_s27 }
 0x587   : > { %2121 = vrot.lane.b32.xlu1 %v7666_v46, %s6882_s27 }
 0x58a   : > { %6070 = vmatpush3.bf16.xpose.msk.msra.mxu1 %vm7589_vm1, %v6065_v17 }
 0x58b   : > { %6073 = vmatprep.subr.msk.bf16.mxu1 %vm7589_vm1, %v6071_v26 }
 0x592   : > { %6076 = vmatpush3.bf16.xpose.msk.msra.mxu1 %vm7589_vm1, %v6071_v26 }
 0x5a6   : > { %v1531_v59 = vpop.xlane.xlu1 %1530 }
 0x5a7   : > { %6585 = vrcp.f32 %v1531_v59  ;;  %v1528_v0 = vpop.xlane.xlu0 %1527 }
 0x5a8   : > { %6587 = vrcp.f32 %v1528_v0 }
 0x5aa   : > { %v1537_v13 = vpop.xlane.xlu1 %1536 }
 0x5ab   : > { %6589 = vrcp.f32 %v1537_v13  ;;  %v1534_v23 = vpop.xlane.xlu0 %1533 }
 0x5ac   : > { %6591 = vrcp.f32 %v1534_v23 }
 0x5ae   : > { %v6396_v27 = vpop.permute.xlu1 %6395 }
 0x5af   : > { %v6398_v31 = vunpack.i.h.bf16 %v6396_v27  ;;  %v6397_v28 = vunpack.i.l.bf16 %v6396_v27  ;;  %v6391_v33 = vpop.permute.xlu0 %6390 }
 0x5b0   : > { %v6393_v34 = vunpack.i.h.bf16 %v6391_v33  ;;  %v6392_v19 = vunpack.i.l.bf16 %v6391_v33 }
 0x5b1   : > { %v6586_v38 = vpop.eup %6585  ;;  %v6105_v50 = vpack.c.bf16 %v6398_v31, %v6397_v28 }
 0x5b2   : > { %v6588_v51 = vpop.eup %6587  ;;  %v6077_v52 = vpack.c.bf16 %v6393_v34, %v6392_v19  ;;  %v1555_v60 = vmul.f32 %v6586_v38, %v7753_v20 }
 0x5b3   : > { %6107 = vmatprep.subr.msk.bf16.mxu0 %vm7589_vm1, %v6105_v50  ;;  %v1690_v21 = vpop.permute.xlu0 %1689  ;;  %v1554_v56 = vmul.f32 %v6588_v51, %v7755_v24 }
 0x5b4   : > { %6079 = vmatprep.subr.msk.bf16.mxu1 %vm7589_vm1, %v6077_v52  ;;  %6110 = vmatpush3.bf16.xpose.msk.msra.mxu0 %vm7589_vm1, %v6105_v50 }
 0x5b5   : > { %v6590_v63 = vpop.eup %6589  ;;  %5638 = vmatprep.mubr.msk.f32.mxu1 %vm1471_vm2, %v1554_v56  ;;  %6082 = vmatpush3.bf16.xpose.msk.msra.mxu1 %vm7589_vm1, %v6077_v52 }
 0x5b6   : > { %v6592_v2 = vpop.eup %6591  ;;  %5639 = vmatmul.mubr.msk.f32.gmra.mrb[10].mxu1 %vm1471_vm2, %v1555_v60  ;;  %v1557_v10 = vmul.f32 %v6590_v63, %v7759_v61 }
 0x5b7   : > { %v6401_v5 = vpop.permute.xlu0 %6400  ;;  %v1556_v24 = vmul.f32 %v6592_v2, %v7763_v7 }
 0x5b8   : > { %v6403_v6 = vunpack.i.h.bf16 %v6401_v5  ;;  %v6402_v8 = vunpack.i.l.bf16 %v6401_v5 }
 0x5b9   : > { %5641 = vmatprep.mubr.msk.f32.mxu1 %vm1471_vm2, %v1556_v24 }
 0x5ba   : > { %v6111_v15 = vpack.c.bf16 %v6403_v6, %v6402_v8  ;;  %5642 = vmatmul.mubr.msk.f32.gmra.mrb[12].mxu1 %vm1471_vm2, %v1557_v10 }
 0x5bb   : > { %v1696_v20 = vpop.permute.xlu0 %1695 }
 0x5bc   : > { %6113 = vmatprep.subr.msk.bf16.mxu0 %vm7589_vm1, %v6111_v15 }
 0x5bd   : > { %6116 = vmatpush3.bf16.xpose.msk.msra.mxu0 %vm7589_vm1, %v6111_v15 }
 0x5bf   : > { %v1698_v17 = vpop.permute.xlu0 %1697 }
 0x5c3   : > { %v1702_v18 = vpop.permute.xlu0 %1701 }
 0x5c7   : > { %v2108_v35 = vpop.permute.xlu0 %2107 }
 0x5c8   : > { %5719 = vmatprep.mubr.msk.f32.mxu0 %vm1317_vm0, %v2108_v35 }
 0x5df   : > { %v1543_v7 = vpop.xlane.xlu1 %1542 }
 0x5e0   : > { %6593 = vrcp.f32 %v1543_v7 }
 0x5e3   : > { %v1540_v61 = vpop.xlane.xlu1 %1539 }
 0x5e4   : > { %6595 = vrcp.f32 %v1540_v61 }
 0x5e7   : > { %v1692_v36 = vpop.permute.xlu1 %1691 }
 0x5ea   : > { %v6594_v59 = vpop.eup %6593 }
 0x5eb   : > { %v1694_v26 = vpop.permute.xlu1 %1693  ;;  %v1559_v28 = vmul.f32 %v6594_v59, %v7787_v22  ;;  %v2112_v22 = vpop.permute.xlu0 %2111 }
 0x5ee   : > { %v6596_v0 = vpop.eup %6595 }
 0x5ef   : > { %v6406_v13 = vpop.permute.xlu1 %6405  ;;  %v1558_v23 = vmul.f32 %v6596_v0, %v7793_v12  ;;  %v2116_v38 = vpop.permute.xlu0 %2115 }
 0x5f0   : > { %v6408_v27 = vunpack.i.h.bf16 %v6406_v13  ;;  %v6407_v31 = vunpack.i.l.bf16 %v6406_v13 }
 0x5f1   : > { %5644 = vmatprep.mubr.msk.f32.mxu1 %vm1471_vm2, %v1558_v23 }
 0x5f2   : > { %v6117_v33 = vpack.c.bf16 %v6408_v27, %v6407_v31  ;;  %5645 = vmatmul.mubr.msk.f32.gmra.mrb[14].mxu1 %vm1471_vm2, %v1559_v28 }
 0x5f3   : > { %v1700_v34 = vpop.permute.xlu1 %1699  ;;  %5663 = vmatprep.mubr.msk.f32.mxu1 %vm1317_vm0, %v1690_v21  ;;  %v2120_v52 = vpop.permute.xlu0 %2119 }
 0x5f4   : > { %6119 = vmatprep.subr.msk.bf16.mxu0 %vm7589_vm1, %v6117_v33 }
 0x5f5   : > { %6122 = vmatpush3.bf16.xpose.msk.msra.mxu0 %vm7589_vm1, %v6117_v33 }
 0x5f6   : > { %5664 = vmatmul.mubr.msk.f32.vlgmr.msra.gmra.mrb[16].mxu1 %vm1317_vm0, %v1692_v36 }
 0x5f7   : > { %v1704_v12 = vpop.permute.xlu1 %1703  ;;  %5666 = vmatprep.mubr.msk.f32.mxu1 %vm1317_vm0, %v1694_v26 }
 0x5fa   : > { %5667 = vmatmul.mubr.msk.f32.gmra.mrb[18].mxu1 %vm1317_vm0, %v1696_v20 }
 0x5fb   : > { %v2110_v19 = vpop.permute.xlu1 %2109  ;;  %5669 = vmatprep.mubr.msk.f32.mxu1 %vm1317_vm0, %v1698_v17 }
 0x5fc   : > { %5720 = vmatmul.mubr.msk.f32.vlgmr.msra.gmra.mrb[24].mxu0 %vm1317_vm0, %v2110_v19 }
 0x5fd   : > { %5722 = vmatprep.mubr.msk.f32.mxu0 %vm1317_vm0, %v2112_v22 }
 0x5fe   : > { %5670 = vmatmul.mubr.msk.f32.gmra.mrb[20].mxu1 %vm1317_vm0, %v1700_v34 }
 0x5ff   : > { %v2114_v50 = vpop.permute.xlu1 %2113  ;;  %5672 = vmatprep.mubr.msk.f32.mxu1 %vm1317_vm0, %v1702_v18 }
 0x600   : > { %5723 = vmatmul.mubr.msk.f32.gmra.mrb[26].mxu0 %vm1317_vm0, %v2114_v50 }
 0x601   : > { %5725 = vmatprep.mubr.msk.f32.mxu0 %vm1317_vm0, %v2116_v38 }
 0x602   : > { %5673 = vmatmul.mubr.msk.f32.gmra.mrb[22].mxu1 %vm1317_vm0, %v1704_v12 }
 0x603   : > { %v2118_v51 = vpop.permute.xlu1 %2117 }
 0x604   : > { %5726 = vmatmul.mubr.msk.f32.gmra.mrb[28].mxu0 %vm1317_vm0, %v2118_v51 }
 0x605   : > { %5728 = vmatprep.mubr.msk.f32.mxu0 %vm1317_vm0, %v2120_v52 }
 0x607   : > { %v2122_v21 = vpop.permute.xlu1 %2121 }
 0x608   : > { %5729 = vmatmul.mubr.msk.f32.gmra.mrb[30].mxu0 %vm1317_vm0, %v2122_v21 }
 0x654   : > { %v7882_v56 = vpop.f32.mrb[8].mxu1 }
 0x655   : > { %v7884_v60 = vpop.f32.mrb[9].mxu1 }
 0x689   : > { %v7886_v63 = vpop.f32.mrb[10].mxu1 }
 0x68a   : > { %v7888_v2 = vpop.f32.mrb[11].mxu1 }
 0x68d   : > { %v7890_v5 = vpop.f32.mrb[12].mxu1 }
 0x68e   : > { %v7892_v24 = vpop.f32.mrb[13].mxu1 }
 0x6c5   : > { %v7894_v6 = vpop.f32.mrb[14].mxu1 }
 0x6c6   : > { %v7896_v8 = vpop.f32.mrb[15].mxu1 }
 0x6c9   : > { %v5665_v10 = vpop.f32.mrb[16].mxu1 }
 0x6ca   : > { %v1819_v15 = vpop.f32.mrb[17].mxu1 }
 0x6cd   : > { %v5668_v20 = vpop.f32.mrb[18].mxu1 }
 0x6ce   : > { %v1829_v17 = vpop.f32.mrb[19].mxu1 }
 0x6cf   : > { %v5721_v18 = vpop.f32.mrb[24].mxu0 }
 0x6d0   : > { %v7899_v35 = vadd.f32 %v5721_v18, %v7673_v47  ;;  %v2237_v7 = vpop.f32.mrb[25].mxu0 }
 0x6d1   : > { %v7902_v61 = vadd.f32 %v2237_v7, %v7678_v49  ;;  %v5671_v36 = vpop.f32.mrb[20].mxu1 }
 0x6d2   : > { %v1839_v26 = vpop.f32.mrb[21].mxu1  ;;  %v2279_v59 = vsel %vm1471_vm2, %v7899_v35, -inf }
 0x6d3   : > { %2280 = vmax.xlane.f32.xlu1 %v2279_v59  ;;  %v5724_v0 = vpop.f32.mrb[26].mxu0  ;;  %v2276_v13 = vsel %vm1471_vm2, %v7902_v61, -inf }
 0x6d4   : > { %v7909_v23 = vadd.f32 %v5724_v0, %v7685_v55  ;;  %v2247_v27 = vpop.f32.mrb[27].mxu0  ;;  %2277 = vmax.xlane.f32.xlu0 %v2276_v13 }
 0x6d5   : > { %v7912_v31 = vadd.f32 %v2247_v27, %v7691_v57  ;;  %v5674_v28 = vpop.f32.mrb[22].mxu1  ;;  %v7943_v27 = vadd.f32 %v5665_v10, %v7673_v47 }
 0x6d6   : > { %v1849_v33 = vpop.f32.mrb[23].mxu1  ;;  %v2285_v34 = vsel %vm1471_vm2, %v7909_v23, -inf }
 0x6d7   : > { %2286 = vmax.xlane.f32.xlu1 %v2285_v34  ;;  %v5727_v12 = vpop.f32.mrb[28].mxu0  ;;  %v2282_v22 = vsel %vm1471_vm2, %v7912_v31, -inf  ;;  %v7946_v34 = vadd.f32 %v1819_v15, %v7678_v49  ;;  %v7961_v49 = vadd.f32 %v1839_v26, %v7705_v4 }
 0x6d8   : > { %v7919_v19 = vadd.f32 %v5727_v12, %v7699_v1  ;;  %v2257_v38 = vpop.f32.mrb[29].mxu0  ;;  %2283 = vmax.xlane.f32.xlu0 %v2282_v22  ;;  %v1861_v12 = vsel %vm1471_vm2, %v7943_v27, -inf  ;;  %v7951_v22 = vadd.f32 %v5668_v20, %v7685_v55  ;;  %v7966_v55 = vadd.f32 %v1849_v33, %v7719_v11 }
 0x6d9   : > { %v7922_v50 = vadd.f32 %v2257_v38, %v7705_v4  ;;  %v1858_v38 = vsel %vm1471_vm2, %v7946_v34, -inf  ;;  %v1870_v15 = vsel %vm1471_vm2, %v7961_v49, -inf  ;;  %v7977_v4 = vadd.f32 %v5671_v36, %v7699_v1 }
 0x6da   : > { %v2291_v51 = vsel %vm1471_vm2, %v7919_v19, -inf  ;;  %v1867_v47 = vsel %vm1471_vm2, %v7951_v22, -inf }
 0x6db   : > { %2292 = vmax.xlane.f32.xlu1 %v2291_v51  ;;  %v5730_v52 = vpop.f32.mrb[30].mxu0  ;;  %v2288_v21 = vsel %vm1471_vm2, %v7922_v50, -inf  ;;  %v7956_v51 = vadd.f32 %v1829_v17, %v7691_v57  ;;  %v1876_v57 = vsel %vm1471_vm2, %v7966_v55, -inf  ;;  %v1873_v20 = vsel %vm1471_vm2, %v7977_v4, -inf }
 0x6dc   : > { %v7929_v18 = vadd.f32 %v5730_v52, %v7713_v9  ;;  %v2267_v7 = vpop.f32.mrb[31].mxu0  ;;  %2289 = vmax.xlane.f32.xlu0 %v2288_v21 }
 0x6dd   : > { %v7932_v59 = vadd.f32 %v2267_v7, %v7719_v11  ;;  %v1864_v10 = vsel %vm1471_vm2, %v7956_v51, -inf  ;;  %v7980_v11 = vadd.f32 %v5674_v28, %v7713_v9 }
 0x6de   : > { %v2297_v0 = vsel %vm1471_vm2, %v7929_v18, -inf }
 0x6df   : > { %2298 = vmax.xlane.f32.xlu1 %v2297_v0  ;;  %v2294_v13 = vsel %vm1471_vm2, %v7932_v59, -inf  ;;  %v1879_v17 = vsel %vm1471_vm2, %v7980_v11, -inf }
 0x6e0   : > { %2295 = vmax.xlane.f32.xlu0 %v2294_v13 }
 0x6f0   : > { %6410 = vrot.lane.b32.xlu1 %v7597_v62, %s6881_s25 }
 0x6f6   : > { %6415 = vrot.lane.b32.xlu0 %v7603_v3, %s6881_s25 }
 0x714   : > { %1862 = vmax.xlane.f32.xlu1 %v1861_v12 }
 0x715   : > { %1859 = vmax.xlane.f32.xlu0 %v1858_v38 }
 0x719   : > { %1868 = vmax.xlane.f32.xlu0 %v1867_v47 }
 0x71d   : > { %1865 = vmax.xlane.f32.xlu0 %v1864_v10 }
 0x721   : > { %1871 = vmax.xlane.f32.xlu0 %v1870_v15 }
 0x725   : > { %6420 = vrot.lane.b32.xlu1 %v7609_v14, %s6881_s25  ;;  %1877 = vmax.xlane.f32.xlu0 %v1876_v57 }
 0x73b   : > { %6425 = vrot.lane.b32.xlu0 %v7615_v25, %s6881_s25 }
 0x749   : > { %1874 = vmax.xlane.f32.xlu1 %v1873_v20 }
 0x74d   : > { %1880 = vmax.xlane.f32.xlu1 %v1879_v17 }
 0x760   : > { %v2281_v26 = vpop.xlane.xlu1 %2280 }
 0x761   : > { %v2301_v33 = vsub.f32 %v7899_v35, %v2281_v26  ;;  %v2278_v52 = vpop.xlane.xlu0 %2277 }
 0x762   : > { %v2300_v21 = vsub.f32 %v7902_v61, %v2278_v52 }
 0x763   : > { %v2310_v7 = vmul.f32 1.442695, %v2301_v33 }
 0x764   : > { %v2308_v1 = vmul.f32 1.442695, %v2300_v21  ;;  %v2287_v36 = vpop.xlane.xlu1 %2286 }
 0x765   : > { %6597 = vpow2.f32 %v2310_v7  ;;  %v2284_v9 = vpop.xlane.xlu0 %2283  ;;  %v2303_v21 = vsub.f32 %v7909_v23, %v2287_v36 }
 0x766   : > { %6599 = vpow2.f32 %v2308_v1  ;;  %v2302_v1 = vsub.f32 %v7912_v31, %v2284_v9 }
 0x767   : > { %v2314_v7 = vmul.f32 1.442695, %v2303_v21 }
 0x768   : > { %v2293_v28 = vpop.xlane.xlu1 %2292 }
 0x769   : > { %v2290_v0 = vpop.xlane.xlu0 %2289  ;;  %6601 = vpow2.f32 %v2314_v7 }
 0x76c   : > { %v7988_v13 = vpop.xlane.xlu1 %2298 }
 0x76d   : > { %v7990_v12 = vpop.xlane.xlu0 %2295 }
 0x76f   : > { %v7992_v38 = vpop.eup %6597 }
 0x770   : > { %v7994_v47 = vpop.eup %6599  ;;  %v6411_v35 = vpop.permute.xlu1 %6410  ;;  %v2327_v61 = vsel %vm1471_vm2, %v7992_v38, 0.0 }
 0x771   : > { %v6413_v10 = vunpack.i.h.bf16 %v6411_v35  ;;  %v6412_v15 = vunpack.i.l.bf16 %v6411_v35  ;;  %v6416_v57 = vpop.permute.xlu0 %6415  ;;  %2328 = vadd.xlane.f32.xlu0 %v2327_v61  ;;  %v2324_v20 = vsel %vm1471_vm2, %v7994_v47, 0.0  ;;  %v2312_v35 = vmul.f32 1.442695, %v2302_v1 }
 0x772   : > { %v6418_v17 = vunpack.i.h.bf16 %v6416_v57  ;;  %v6417_v26 = vunpack.i.l.bf16 %v6416_v57  ;;  %2325 = vadd.xlane.f32.xlu1 %v2324_v20  ;;  %v2304_v61 = vsub.f32 %v7922_v50, %v2290_v0 }
 0x773   : > { %v6083_v33 = vpack.c.bf16 %v6413_v10, %v6412_v15  ;;  %6603 = vpow2.f32 %v2312_v35  ;;  %v8011_v15 = vpop.eup %6601 }
 0x774   : > { %v6087_v52 = vpack.c.bf16 %v6418_v17, %v6417_v26  ;;  %v2316_v23 = vmul.f32 1.442695, %v2304_v61  ;;  %v2333_v31 = vsel %vm1471_vm2, %v8011_v15, 0.0 }
 0x775   : > { %6084 = vmatprep.subr.bf16.mxu1 %v6083_v33 }
 0x776   : > { %6086 = vmatpush3.bf16.msra.mxu1 %v6083_v33  ;;  %v2305_v33 = vsub.f32 %v7919_v19, %v2293_v28 }
 0x777   : > { %6088 = vmatprep.subr.bf16.mxu1 %v6087_v52 }
 0x778   : > { %v2318_v7 = vmul.f32 1.442695, %v2305_v33 }
 0x77a   : > { %6090 = vmatpush3.bf16.msra.mxu1 %v6087_v52 }
 0x77d   : > { %v8019_v28 = vpop.eup %6603 }
 0x783   : > { %6430 = vrot.lane.b32.xlu1 %v7597_v62, %s6882_s27 }
 0x787   : > { %6440 = vrot.lane.b32.xlu1 %v7609_v14, %s6882_s27  ;;  %6435 = vrot.lane.b32.xlu0 %v7603_v3, %s6882_s27 }
 0x78b   : > { %6445 = vrot.lane.b32.xlu1 %v7615_v25, %s6882_s27 }
 0x7a1   : > { %v1863_v10 = vpop.xlane.xlu1 %1862 }
 0x7a2   : > { %v1883_v57 = vsub.f32 %v7943_v27, %v1863_v10  ;;  %v1860_v20 = vpop.xlane.xlu0 %1859  ;;  %v2330_v10 = vsel %vm1471_vm2, %v8019_v28, 0.0 }
 0x7a3   : > { %v1882_v17 = vsub.f32 %v7946_v34, %v1860_v20 }
 0x7a4   : > { %v1892_v26 = vmul.f32 1.442695, %v1883_v57 }
 0x7a5   : > { %v1890_v36 = vmul.f32 1.442695, %v1882_v17  ;;  %v6421_v52 = vpop.permute.xlu1 %6420 }
 0x7a6   : > { %6605 = vpow2.f32 %v1892_v26  ;;  %v6423_v9 = vunpack.i.h.bf16 %v6421_v52  ;;  %v6422_v50 = vunpack.i.l.bf16 %v6421_v52  ;;  %2334 = vadd.xlane.f32.xlu0 %v2333_v31  ;;  %v1869_v0 = vpop.xlane.xlu0 %1868 }
 0x7a7   : > { %6607 = vpow2.f32 %v1890_v36  ;;  %v1885_v27 = vsub.f32 %v7951_v22, %v1869_v0 }
 0x7a8   : > { %v6091_v21 = vpack.c.bf16 %v6423_v9, %v6422_v50  ;;  %6609 = vpow2.f32 %v2316_v23 }
 0x7a9   : > { %v1896_v34 = vmul.f32 1.442695, %v1885_v27 }
 0x7aa   : > { %6092 = vmatprep.subr.bf16.mxu1 %v6091_v21  ;;  %v1866_v19 = vpop.xlane.xlu0 %1865 }
 0x7ab   : > { %6611 = vpow2.f32 %v1896_v34  ;;  %v1884_v1 = vsub.f32 %v7956_v51, %v1866_v19  ;;  %6094 = vmatpush3.bf16.msra.mxu1 %v6091_v21 }
 0x7ac   : > { %6613 = vpow2.f32 %v2318_v7 }
 0x7ad   : > { %v1894_v35 = vmul.f32 1.442695, %v1884_v1 }
 0x7ae   : > { %v1872_v61 = vpop.xlane.xlu0 %1871 }
 0x7af   : > { %6615 = vpow2.f32 %v1894_v35  ;;  %v1886_v22 = vsub.f32 %v7961_v49, %v1872_v61  ;;  %2331 = vadd.xlane.f32.xlu1 %v2330_v10  ;;  %v2306_v35 = vsub.f32 %v7932_v59, %v7990_v12 }
 0x7b0   : > { %v8025_v57 = vpop.eup %6605 }
 0x7b1   : > { %v8027_v20 = vpop.eup %6607  ;;  %v1898_v17 = vmul.f32 1.442695, %v1886_v22  ;;  %v1909_v26 = vsel %vm1471_vm2, %v8025_v57, 0.0  ;;  %v2307_v22 = vsub.f32 %v7929_v18, %v7988_v13 }
 0x7b2   : > { %v1878_v51 = vpop.xlane.xlu0 %1877  ;;  %v1906_v33 = vsel %vm1471_vm2, %v8027_v20, 0.0  ;;  %v8033_v23 = vpop.eup %6609 }
 0x7b3   : > { %6617 = vpow2.f32 %v1898_v17  ;;  %1910 = vadd.xlane.f32.xlu1 %v1909_v26  ;;  %1907 = vadd.xlane.f32.xlu0 %v1906_v33  ;;  %v2336_v52 = vsel %vm1471_vm2, %v8033_v23, 0.0  ;;  %v2320_v17 = vmul.f32 1.442695, %v2306_v35  ;;  %v1888_v26 = vsub.f32 %v7966_v55, %v1878_v51 }
 0x7b5   : > { %v8035_v36 = vpop.eup %6611 }
 0x7b6   : > { %v6426_v49 = vpop.permute.xlu0 %6425  ;;  %v1915_v31 = vsel %vm1471_vm2, %v8035_v36, 0.0  ;;  %v8041_v9 = vpop.eup %6613 }
 0x7b7   : > { %v6428_v50 = vunpack.i.h.bf16 %v6426_v49  ;;  %v6427_v0 = vunpack.i.l.bf16 %v6426_v49  ;;  %2337 = vadd.xlane.f32.xlu1 %v2336_v52  ;;  %1916 = vadd.xlane.f32.xlu0 %v1915_v31  ;;  %v2339_v7 = vsel %vm1471_vm2, %v8041_v9, 0.0  ;;  %v2322_v31 = vmul.f32 1.442695, %v2307_v22 }
 0x7b9   : > { %v8043_v27 = vpop.eup %6615  ;;  %v6095_v21 = vpack.c.bf16 %v6428_v50, %v6427_v0  ;;  %v1902_v50 = vmul.f32 1.442695, %v1888_v26 }
 0x7ba   : > { %v1912_v34 = vsel %vm1471_vm2, %v8043_v27, 0.0 }
 0x7bb   : > { %2340 = vadd.xlane.f32.xlu1 %v2339_v7  ;;  %1913 = vadd.xlane.f32.xlu0 %v1912_v34 }
 0x7bc   : > { %6096 = vmatprep.subr.bf16.mxu1 %v6095_v21 }
 0x7bd   : > { %v8049_v19 = vpop.eup %6617  ;;  %6098 = vmatpush3.bf16.msra.mxu1 %v6095_v21 }
 0x7be   : > { %v1918_v1 = vsel %vm1471_vm2, %v8049_v19, 0.0 }
 0x7bf   : > { %1919 = vadd.xlane.f32.xlu0 %v1918_v1 }
 0x7d6   : > { %v1875_v61 = vpop.xlane.xlu1 %1874 }
 0x7d7   : > { %v1887_v10 = vsub.f32 %v7977_v4, %v1875_v61 }
 0x7d9   : > { %v1900_v33 = vmul.f32 1.442695, %v1887_v10 }
 0x7da   : > { %v1881_v49 = vpop.xlane.xlu1 %1880 }
 0x7db   : > { %6619 = vpow2.f32 %v1900_v33  ;;  %v1889_v52 = vsub.f32 %v7980_v11, %v1881_v49 }
 0x7dc   : > { %6621 = vpow2.f32 %v2320_v17 }
 0x7dd   : > { %v1904_v0 = vmul.f32 1.442695, %v1889_v52 }
 0x7df   : > { %6623 = vpow2.f32 %v1904_v0 }
 0x7e0   : > { %6625 = vpow2.f32 %v2322_v31 }
 0x7e1   : > { %6627 = vpow2.f32 %v1902_v50 }
 0x7e5   : > { %v8060_v59 = vpop.eup %6619 }
 0x7e6   : > { %v1921_v18 = vsel %vm1471_vm2, %v8060_v59, 0.0  ;;  %v8064_v4 = vpop.eup %6621 }
 0x7e7   : > { %1922 = vadd.xlane.f32.xlu1 %v1921_v18  ;;  %v2342_v11 = vsel %vm1471_vm2, %v8064_v4, 0.0 }
 0x7e9   : > { %v8066_v55 = vpop.eup %6623 }
 0x7ea   : > { %v8068_v13 = vpop.eup %6625  ;;  %v1927_v12 = vsel %vm1471_vm2, %v8066_v55, 0.0 }
 0x7eb   : > { %v8074_v51 = vpop.eup %6627  ;;  %2343 = vadd.xlane.f32.xlu1 %v2342_v11  ;;  %1928 = vadd.xlane.f32.xlu0 %v1927_v12  ;;  %v2345_v21 = vsel %vm1471_vm2, %v8068_v13, 0.0 }
 0x7ec   : > { %v1924_v7 = vsel %vm1471_vm2, %v8074_v51, 0.0 }
 0x7ef   : > { %2346 = vadd.xlane.f32.xlu1 %v2345_v21  ;;  %1925 = vadd.xlane.f32.xlu0 %v1924_v7 }
 0x7ff   : > { %v8080_v34 = vpop.xlane.xlu1 %2325 }
 0x800   : > { %6455 = vrot.lane.b32.xlu1 %v7607_v16, %s6883_s28 }
 0x803   : > { %v6431_v1 = vpop.permute.xlu1 %6430 }
 0x804   : > { %v6433_v35 = vunpack.i.h.bf16 %v6431_v1  ;;  %v6432_v61 = vunpack.i.l.bf16 %v6431_v1  ;;  %6465 = vrot.lane.b32.xlu1 %v7627_v37, %s6883_s28 }
 0x805   : > { %6450 = vrot.lane.b32.xlu0 %v7595_v58, %s6883_s28  ;;  %v2329_v58 = vpop.xlane.xlu0 %2328 }
 0x806   : > { %v6123_v10 = vpack.c.bf16 %v6433_v35, %v6432_v61 }
 0x807   : > { %v6441_v16 = vpop.permute.xlu1 %6440 }
 0x808   : > { %2519 = vrot.lane.b32.xlu1 %v7635_v41, %s6883_s28  ;;  %6124 = vmatprep.subr.bf16.mxu1 %v6123_v10  ;;  %v6443_v31 = vunpack.i.h.bf16 %v6441_v16  ;;  %v6442_v50 = vunpack.i.l.bf16 %v6441_v16 }
 0x809   : > { %6460 = vrot.lane.b32.xlu0 %v7619_v29, %s6883_s28  ;;  %v6436_v29 = vpop.permute.xlu0 %6435 }
 0x80a   : > { %v6438_v17 = vunpack.i.h.bf16 %v6436_v29  ;;  %v6437_v26 = vunpack.i.l.bf16 %v6436_v29  ;;  %v6131_v11 = vpack.c.bf16 %v6443_v31, %v6442_v50 }
 0x80b   : > { %v6446_v37 = vpop.permute.xlu1 %6445 }
 0x80c   : > { %2523 = vrot.lane.b32.xlu1 %v7646_v30, %s6883_s28  ;;  %v6127_v52 = vpack.c.bf16 %v6438_v17, %v6437_v26  ;;  %v6448_v12 = vunpack.i.h.bf16 %v6446_v37  ;;  %v6447_v21 = vunpack.i.l.bf16 %v6446_v37 }
 0x80d   : > { %2517 = vrot.lane.b32.xlu0 %v7575_v40, %s6883_s28 }
 0x80e   : > { %v6135_v1 = vpack.c.bf16 %v6448_v12, %v6447_v21 }
 0x810   : > { %2527 = vrot.lane.b32.xlu1 %v7656_v44, %s6883_s28 }
 0x811   : > { %2521 = vrot.lane.b32.xlu0 %v7639_v42, %s6883_s28 }
 0x814   : > { %2531 = vrot.lane.b32.xlu1 %v7666_v46, %s6883_s28 }
 0x815   : > { %2525 = vrot.lane.b32.xlu0 %v7649_v45, %s6883_s28 }
 0x819   : > { %2529 = vrot.lane.b32.xlu0 %v7659_v39, %s6883_s28 }
 0x833   : > { %v8106_v40 = vpop.xlane.xlu0 %2334 }
 0x83c   : > { %v2332_v41 = vpop.xlane.xlu1 %2331 }
 0x840   : > { %v1911_v30 = vpop.xlane.xlu1 %1910  ;;  %v1908_v44 = vpop.xlane.xlu0 %1907 }
 0x841   : > { %6629 = vrcp.f32 %v1911_v30 }
 0x842   : > { %6631 = vrcp.f32 %v1908_v44 }
 0x844   : > { %v1917_v42 = vpop.xlane.xlu0 %1916  ;;  %v2338_v61 = vpop.xlane.xlu1 %2337 }
 0x845   : > { %6633 = vrcp.f32 %v1917_v42 }
 0x848   : > { %v1914_v22 = vpop.xlane.xlu0 %1913 }
 0x849   : > { %6635 = vrcp.f32 %v1914_v22 }
 0x84b   : > { %v6630_v46 = vpop.eup %6629 }
 0x84c   : > { %v6632_v45 = vpop.eup %6631  ;;  %v1939_v39 = vmul.f32 %v6630_v46, %v8025_v57  ;;  %v1920_v33 = vpop.xlane.xlu0 %1919 }
 0x84d   : > { %6637 = vrcp.f32 %v1920_v33  ;;  %v1938_v49 = vmul.f32 %v6632_v45, %v8027_v20 }
 0x84f   : > { %5691 = vmatprep.mubr.msk.f32.mxu1 %vm1471_vm2, %v1938_v49  ;;  %v6634_v0 = vpop.eup %6633 }
 0x850   : > { %5692 = vmatmul.mubr.msk.f32.vlgmr.msra.gmra.mrb[24].mxu1 %vm1471_vm2, %v1939_v39  ;;  %v1941_v20 = vmul.f32 %v6634_v0, %v8035_v36 }
 0x851   : > { %6126 = vmatpush3.bf16.msra.mxu1 %v6123_v10  ;;  %v2341_v10 = vpop.xlane.xlu1 %2340 }
 0x852   : > { %6128 = vmatprep.subr.bf16.mxu1 %v6127_v52 }
 0x853   : > { %v6636_v18 = vpop.eup %6635 }
 0x854   : > { %v1940_v57 = vmul.f32 %v6636_v18, %v8043_v27 }
 0x855   : > { %6130 = vmatpush3.bf16.msra.mxu1 %v6127_v52 }
 0x856   : > { %6132 = vmatprep.subr.bf16.mxu1 %v6131_v11  ;;  %5694 = vmatprep.mubr.msk.f32.mxu1 %vm1471_vm2, %v1940_v57 }
 0x857   : > { %v6638_v7 = vpop.eup %6637  ;;  %5695 = vmatmul.mubr.msk.f32.gmra.mrb[26].mxu1 %vm1471_vm2, %v1941_v20 }
 0x858   : > { %v1942_v35 = vmul.f32 %v6638_v7, %v8049_v19 }
 0x859   : > { %6134 = vmatpush3.bf16.msra.mxu1 %v6131_v11 }
 0x85a   : > { %6136 = vmatprep.subr.bf16.mxu1 %v6135_v1  ;;  %5697 = vmatprep.mubr.msk.f32.mxu1 %vm1471_vm2, %v1942_v35 }
 0x85d   : > { %6138 = vmatpush3.bf16.msra.mxu1 %v6135_v1 }
 0x874   : > { %v1923_v16 = vpop.xlane.xlu1 %1922 }
 0x875   : > { %6639 = vrcp.f32 %v1923_v16 }
 0x876   : > { %6641 = vrcp.f32 %v8080_v34 }
 0x878   : > { %v1929_v27 = vpop.xlane.xlu0 %1928  ;;  %v2344_v29 = vpop.xlane.xlu1 %2343 }
 0x879   : > { %6643 = vrcp.f32 %v1929_v27 }
 0x87c   : > { %v1926_v36 = vpop.xlane.xlu0 %1925  ;;  %v2347_v22 = vpop.xlane.xlu1 %2346 }
 0x87d   : > { %6645 = vrcp.f32 %v1926_v36 }
 0x87e   : > { %6647 = vrcp.f32 %v2329_v58 }
 0x87f   : > { %v6640_v37 = vpop.eup %6639  ;;  %6649 = vrcp.f32 %v2332_v41 }
 0x880   : > { %v6451_v30 = vpop.permute.xlu0 %6450  ;;  %v1943_v19 = vmul.f32 %v6640_v37, %v8060_v59  ;;  %6651 = vrcp.f32 %v8106_v40  ;;  %v6642_v34 = vpop.eup %6641 }
 0x881   : > { %v6453_v44 = vunpack.i.h.bf16 %v6451_v30  ;;  %v6452_v42 = vunpack.i.l.bf16 %v6451_v30  ;;  %6653 = vrcp.f32 %v2338_v61  ;;  %v6456_v26 = vpop.permute.xlu1 %6455  ;;  %v2356_v39 = vmul.f32 %v6642_v34, %v7994_v47 }
 0x882   : > { %5698 = vmatmul.mubr.msk.f32.gmra.mrb[28].mxu1 %vm1471_vm2, %v1943_v19  ;;  %6655 = vrcp.f32 %v2341_v10  ;;  %v6458_v33 = vunpack.i.h.bf16 %v6456_v26  ;;  %v6457_v49 = vunpack.i.l.bf16 %v6456_v26 }
 0x883   : > { %v6139_v46 = vpack.c.bf16 %v6453_v44, %v6452_v42  ;;  %v6644_v45 = vpop.eup %6643  ;;  %6657 = vrcp.f32 %v2344_v29 }
 0x884   : > { %v1945_v58 = vmul.f32 %v6644_v45, %v8066_v55  ;;  %6659 = vrcp.f32 %v2347_v22  ;;  %v6145_v55 = vpack.c.bf16 %v6458_v33, %v6457_v49  ;;  %v6461_v0 = vpop.permute.xlu0 %6460 }
 0x885   : > { %6141 = vmatprep.subr.msk.bf16.mxu1 %vm7589_vm1, %v6139_v46  ;;  %v6462_v12 = vunpack.i.l.bf16 %v6461_v0  ;;  %v6466_v1 = vpop.permute.xlu1 %6465 }
 0x886   : > { %v6467_v35 = vunpack.i.l.bf16 %v6466_v1 }
 0x887   : > { %v6646_v17 = vpop.eup %6645 }
 0x888   : > { %v1944_v59 = vmul.f32 %v6646_v17, %v8074_v51  ;;  %v6648_v41 = vpop.eup %6647 }
 0x889   : > { %v6650_v40 = vpop.eup %6649  ;;  %v2357_v52 = vmul.f32 %v6648_v41, %v7992_v38  ;;  %v2520_v61 = vpop.permute.xlu1 %2519 }
 0x88a   : > { %5700 = vmatprep.mubr.msk.f32.mxu1 %vm1471_vm2, %v1944_v59  ;;  %v6652_v31 = vpop.eup %6651  ;;  %v2358_v51 = vmul.f32 %v6650_v40, %v8019_v28  ;;  %v6463_v28 = vunpack.i.h.bf16 %v6461_v0 }
 0x88b   : > { %5701 = vmatmul.mubr.msk.f32.gmra.mrb[30].mxu1 %vm1471_vm2, %v1945_v58  ;;  %v6654_v50 = vpop.eup %6653  ;;  %v2359_v47 = vmul.f32 %v6652_v31, %v8011_v15 }
 0x88c   : > { %5747 = vmatprep.mubr.msk.f32.mxu1 %vm1471_vm2, %v2356_v39  ;;  %v6656_v18 = vpop.eup %6655  ;;  %v2360_v38 = vmul.f32 %v6654_v50, %v8033_v23  ;;  %v6151_v7 = vpack.c.bf16 %v6463_v28, %v6462_v12  ;;  %v6468_v23 = vunpack.i.h.bf16 %v6466_v1 }
 0x88d   : > { %v6658_v11 = vpop.eup %6657  ;;  %v2361_v21 = vmul.f32 %v6656_v18, %v8041_v9  ;;  %v2518_v9 = vpop.permute.xlu0 %2517 }
 0x88e   : > { %v6660_v57 = vpop.eup %6659  ;;  %v2362_v20 = vmul.f32 %v6658_v11, %v8064_v4  ;;  %v6157_v4 = vpack.c.bf16 %v6468_v23, %v6467_v35  ;;  %v6838_v11 = vld [vmem:[%s9455_s3] sm:$0xff]  ;;  %v6840_v23 = vld [vmem:[%s9455_s3 + $0x10] sm:$0xff] }
 0x88f   : > { %5748 = vmatmul.mubr.msk.f32.vlgmr.msra.gmra.mrb[32].mxu1 %vm1471_vm2, %v2357_v52  ;;  %v2363_v15 = vmul.f32 %v6660_v57, %v8068_v13  ;;  %v2524_v13 = vpop.permute.xlu1 %2523 }
 0x890   : > { %6144 = vmatpush3.bf16.xpose.msk.msra.mxu1 %vm7589_vm1, %v6139_v46  ;;  %5750 = vmatprep.mubr.msk.f32.mxu1 %vm1471_vm2, %v2358_v51 }
 0x891   : > { %6147 = vmatprep.subr.msk.bf16.mxu1 %vm7589_vm1, %v6145_v55  ;;  %v2522_v10 = vpop.permute.xlu0 %2521 }
 0x893   : > { %5751 = vmatmul.mubr.msk.f32.gmra.mrb[34].mxu1 %vm1471_vm2, %v2359_v47  ;;  %v2528_v27 = vpop.permute.xlu1 %2527  ;;  %v6837_v47 = vld [vmem:[%s9455_s3 + $0x8] sm:$0xff] }
 0x894   : > { %5753 = vmatprep.mubr.msk.f32.mxu1 %vm1471_vm2, %v2360_v38 }
 0x895   : > { %v2526_v16 = vpop.permute.xlu0 %2525 }
 0x897   : > { %5754 = vmatmul.mubr.msk.f32.gmra.mrb[36].mxu1 %vm1471_vm2, %v2361_v21  ;;  %v2532_v29 = vpop.permute.xlu1 %2531 }
 0x898   : > { %6150 = vmatpush3.bf16.xpose.msk.msra.mxu1 %vm7589_vm1, %v6145_v55  ;;  %5756 = vmatprep.mubr.msk.f32.mxu1 %vm1471_vm2, %v2362_v20  ;;  %v6839_v20 = vld [vmem:[%s9455_s3 + $0x18] sm:$0xff] }
 0x899   : > { %6153 = vmatprep.subr.msk.bf16.mxu1 %vm7589_vm1, %v6151_v7  ;;  %v2530_v36 = vpop.permute.xlu0 %2529 }
 0x89b   : > { %5757 = vmatmul.mubr.msk.f32.gmra.mrb[38].mxu1 %vm1471_vm2, %v2363_v15 }
 0x89c   : > { %5775 = vmatprep.mubr.msk.f32.mxu1 %vm1317_vm0, %v2518_v9 }
 0x8a0   : > { %6156 = vmatpush3.bf16.xpose.msk.msra.mxu1 %vm7589_vm1, %v6151_v7 }
 0x8a1   : > { %6159 = vmatprep.subr.msk.bf16.mxu1 %vm7589_vm1, %v6157_v4 }
 0x8a8   : > { %6162 = vmatpush3.bf16.xpose.msk.msra.mxu1 %vm7589_vm1, %v6157_v4  ;;  %v6841_v4 = vld [vmem:[%s9455_s3 + $0x28] sm:$0xff] }
 0x8af   : > { %5776 = vmatmul.mubr.msk.f32.vlgmr.msra.gmra.mrb[40].mxu1 %vm1317_vm0, %v2520_v61 }
 0x8b0   : > { %5778 = vmatprep.mubr.msk.f32.mxu1 %vm1317_vm0, %v2522_v10 }
 0x8b3   : > { %5779 = vmatmul.mubr.msk.f32.gmra.mrb[42].mxu1 %vm1317_vm0, %v2524_v13 }
 0x8b4   : > { %5781 = vmatprep.mubr.msk.f32.mxu1 %vm1317_vm0, %v2526_v16  ;;  %v6842_v16 = vld [vmem:[%s9455_s3 + $0x20] sm:$0xff] }
 0x8b7   : > { %5782 = vmatmul.mubr.msk.f32.gmra.mrb[44].mxu1 %vm1317_vm0, %v2528_v27 }
 0x8b8   : > { %5784 = vmatprep.mubr.msk.f32.mxu1 %vm1317_vm0, %v2530_v36 }
 0x8bb   : > { %5785 = vmatmul.mubr.msk.f32.gmra.mrb[46].mxu1 %vm1317_vm0, %v2532_v29 }
 0x8bc   : > { %3445 = vmatprep.mubr.f32.mxu1 %v6880_v32 }
 0x923   : > { %v8167_v53 = vpop.f32.mrb[24].mxu1 }
 0x924   : > { %v8169_v37 = vpop.f32.mrb[25].mxu1 }
 0x925   : > { %v6489_v30 = vpack.i.bf16 %v8167_v53, %v8169_v37 }
 0x92a   : > { %v8173_v19 = vpop.f32.mrb[26].mxu1 }
 0x92b   : > { %v8175_v44 = vpop.f32.mrb[27].mxu1 }
 0x92c   : > { %v6504_v42 = vpack.i.bf16 %v8173_v19, %v8175_v44 }
 0x955   : > { %v8179_v22 = vpop.f32.mrb[28].mxu1 }
 0x956   : > { %v8181_v46 = vpop.f32.mrb[29].mxu1 }
 0x957   : > { %v6519_v34 = vpack.i.bf16 %v8179_v22, %v8181_v46 }
 0x95e   : > { %v8185_v45 = vpop.f32.mrb[30].mxu1 }
 0x95f   : > { %v8187_v17 = vpop.f32.mrb[31].mxu1 }
 0x960   : > { %v6534_v26 = vpack.i.bf16 %v8185_v45, %v8187_v17 }
 0x962   : > { %v8191_v59 = vpop.f32.mrb[32].mxu1 }
 0x963   : > { %v8193_v58 = vpop.f32.mrb[33].mxu1 }
 0x964   : > { %v6494_v41 = vpack.i.bf16 %v8191_v59, %v8193_v58 }
 0x966   : > { %v8197_v39 = vpop.f32.mrb[34].mxu1 }
 0x967   : > { %v8199_v40 = vpop.f32.mrb[35].mxu1 }
 0x968   : > { %v6509_v33 = vpack.i.bf16 %v8197_v39, %v8199_v40 }
 0x96a   : > { %v8203_v49 = vpop.f32.mrb[36].mxu1 }
 0x96b   : > { %v8205_v52 = vpop.f32.mrb[37].mxu1 }
 0x96c   : > { %v6524_v31 = vpack.i.bf16 %v8203_v49, %v8205_v52 }
 0x96e   : > { %v8209_v51 = vpop.f32.mrb[38].mxu1 }
 0x96f   : > { %v8211_v50 = vpop.f32.mrb[39].mxu1 }
 0x970   : > { %v6539_v55 = vpack.i.bf16 %v8209_v51, %v8211_v50 }
 0x982   : > { %v5777_v0 = vpop.f32.mrb[40].mxu1 }
 0x983   : > { %v2653_v18 = vadd.f32 %v6837_v47, %v5777_v0  ;;  %v2647_v38 = vpop.f32.mrb[41].mxu1  ;;  %v6843_v0 = vld [vmem:[%s9455_s3 + $0x38] sm:$0xff] }
 0x984   : > { %v2648_v28 = vadd.f32 %v6838_v11, %v2647_v38 }
 0x985   : > { %v2689_v12 = vsel %vm1471_vm2, %v2653_v18, -inf }
 0x986   : > { %2690 = vmax.xlane.f32.xlu1 %v2689_v12  ;;  %v5780_v21 = vpop.f32.mrb[42].mxu1  ;;  %v2686_v57 = vsel %vm1471_vm2, %v2648_v28, -inf  ;;  %v6844_v12 = vld [vmem:[%s9455_s3 + $0x30] sm:$0xff] }
 0x987   : > { %v2663_v7 = vadd.f32 %v6839_v20, %v5780_v21  ;;  %v2657_v1 = vpop.f32.mrb[43].mxu1  ;;  %2687 = vmax.xlane.f32.xlu0 %v2686_v57 }
 0x988   : > { %v2658_v35 = vadd.f32 %v6840_v23, %v2657_v1 }
 0x989   : > { %v2695_v15 = vsel %vm1471_vm2, %v2663_v7, -inf }
 0x98a   : > { %v5783_v9 = vpop.f32.mrb[44].mxu1  ;;  %v2692_v29 = vsel %vm1471_vm2, %v2658_v35, -inf }
 0x98b   : > { %v2673_v61 = vadd.f32 %v6841_v4, %v5783_v9  ;;  %v2667_v10 = vpop.f32.mrb[45].mxu1  ;;  %2696 = vmax.xlane.f32.xlu0 %v2695_v15 }
 0x98c   : > { %v2668_v27 = vadd.f32 %v6842_v16, %v2667_v10 }
 0x98d   : > { %v2701_v13 = vsel %vm1471_vm2, %v2673_v61, -inf }
 0x98e   : > { %2702 = vmax.xlane.f32.xlu1 %v2701_v13  ;;  %v5786_v36 = vpop.f32.mrb[46].mxu1  ;;  %v2698_v57 = vsel %vm1471_vm2, %v2668_v27, -inf }
 0x98f   : > { %v8241_v47 = vadd.f32 %v6843_v0, %v5786_v36  ;;  %v2677_v38 = vpop.f32.mrb[47].mxu1  ;;  %2693 = vmax.xlane.f32.xlu0 %v2692_v29 }
 0x990   : > { %v8248_v21 = vadd.f32 %v6844_v12, %v2677_v38 }
 0x991   : > { %v2707_v11 = vsel %vm1471_vm2, %v8241_v47, -inf }
 0x992   : > { %2708 = vmax.xlane.f32.xlu1 %v2707_v11  ;;  %v2704_v20 = vsel %vm1471_vm2, %v8248_v21, -inf }
 0x993   : > { %2699 = vmax.xlane.f32.xlu0 %v2698_v57 }
 0x997   : > { %2705 = vmax.xlane.f32.xlu0 %v2704_v20 }
 0x9a3   : > { %6475 = vrot.lane.b32.xlu1 %v7603_v3, %s6883_s28 }
 0x9ad   : > { %6470 = vrot.lane.b32.xlu0 %v7597_v62, %s6883_s28 }
 0xa13   : > { %v2691_v1 = vpop.xlane.xlu1 %2690 }
 0xa14   : > { %v2711_v15 = vsub.f32 %v2653_v18, %v2691_v1  ;;  %v2688_v23 = vpop.xlane.xlu0 %2687 }
 0xa15   : > { %v2710_v9 = vsub.f32 %v2648_v28, %v2688_v23 }
 0xa16   : > { %v2720_v4 = vmul.f32 1.442695, %v2711_v15 }
 0xa17   : > { %v2718_v10 = vmul.f32 1.442695, %v2710_v9 }
 0xa18   : > { %6661 = vpow2.f32 %v2720_v4  ;;  %v2697_v13 = vpop.xlane.xlu0 %2696 }
 0xa19   : > { %6663 = vpow2.f32 %v2718_v10  ;;  %v2713_v16 = vsub.f32 %v2663_v7, %v2697_v13 }
 0xa1b   : > { %v2724_v36 = vmul.f32 1.442695, %v2713_v16  ;;  %v2703_v29 = vpop.xlane.xlu1 %2702 }
 0xa1c   : > { %v2715_v0 = vsub.f32 %v2673_v61, %v2703_v29  ;;  %v2694_v38 = vpop.xlane.xlu0 %2693 }
 0xa1d   : > { %6665 = vpow2.f32 %v2724_v36  ;;  %v2712_v11 = vsub.f32 %v2658_v35, %v2694_v38 }
 0xa1e   : > { %v2728_v3 = vmul.f32 1.442695, %v2715_v0 }
 0xa1f   : > { %v2722_v12 = vmul.f32 1.442695, %v2712_v11  ;;  %v2709_v57 = vpop.xlane.xlu1 %2708 }
 0xa20   : > { %v2700_v62 = vpop.xlane.xlu0 %2699 }
 0xa21   : > { %6667 = vpow2.f32 %v2722_v12  ;;  %v2714_v18 = vsub.f32 %v2668_v27, %v2700_v62 }
 0xa22   : > { %v8257_v20 = vpop.eup %6661  ;;  %6669 = vpow2.f32 %v2728_v3 }
 0xa23   : > { %v6664_v28 = vpop.eup %6663  ;;  %v2726_v1 = vmul.f32 1.442695, %v2714_v18  ;;  %v2737_v7 = vsel %vm1471_vm2, %v8257_v20, 0.0  ;;  %v6476_v35 = vpop.permute.xlu1 %6475  ;;  %v2717_v18 = vsub.f32 %v8241_v47, %v2709_v57 }
 0xa24   : > { %2738 = vadd.xlane.f32.xlu1 %v2737_v7  ;;  %v2706_v15 = vpop.xlane.xlu0 %2705  ;;  %v2734_v61 = vsel %vm1471_vm2, %v6664_v28, 0.0  ;;  %v6478_v4 = vunpack.i.h.bf16 %v6476_v35  ;;  %v6477_v10 = vunpack.i.l.bf16 %v6476_v35 }
 0xa25   : > { %6671 = vpow2.f32 %v2726_v1  ;;  %2735 = vadd.xlane.f32.xlu0 %v2734_v61  ;;  %v2716_v1 = vsub.f32 %v8248_v21, %v2706_v15  ;;  %v2732_v7 = vmul.f32 1.442695, %v2717_v18 }
 0xa26   : > { %v6167_v11 = vpack.c.bf16 %v6478_v4, %v6477_v10 }
 0xa27   : > { %v8262_v23 = vpop.eup %6665  ;;  %v2730_v61 = vmul.f32 1.442695, %v2716_v1  ;;  %6673 = vpow2.f32 %v2732_v7  ;;  %v3049_v1 = vld [vmem:[%s6950_s16 + $0x8] sm:$0xff]  ;;  %v3050_v7 = vld [vmem:[%s6950_s16 + $0x10] sm:$0xff] }
 0xa28   : > { %v6471_v9 = vpop.permute.xlu0 %6470  ;;  %v2743_v27 = vsel %vm1471_vm2, %v8262_v23, 0.0 }
 0xa29   : > { %v6473_v13 = vunpack.i.h.bf16 %v6471_v9  ;;  %v6472_v16 = vunpack.i.l.bf16 %v6471_v9  ;;  %2744 = vadd.xlane.f32.xlu1 %v2743_v27  ;;  %6675 = vpow2.f32 %v2730_v61 }
 0xa2b   : > { %v8266_v36 = vpop.eup %6667  ;;  %v6163_v29 = vpack.c.bf16 %v6473_v13, %v6472_v16 }
 0xa2c   : > { %v2740_v0 = vsel %vm1471_vm2, %v8266_v36, 0.0  ;;  %v8270_v38 = vpop.eup %6669 }
 0xa2d   : > { %2741 = vadd.xlane.f32.xlu0 %v2740_v0  ;;  %6164 = vmatprep.subr.bf16.mxu0 %v6163_v29  ;;  %v2749_v12 = vsel %vm1471_vm2, %v8270_v38, 0.0 }
 0xa2e   : > { %6166 = vmatpush3.bf16.msra.mxu0 %v6163_v29 }
 0xa2f   : > { %v6672_v3 = vpop.eup %6671  ;;  %6168 = vmatprep.subr.bf16.mxu0 %v6167_v11 }
 0xa30   : > { %v2746_v62 = vsel %vm1471_vm2, %v6672_v3, 0.0 }
 0xa31   : > { %2750 = vadd.xlane.f32.xlu0 %v2749_v12  ;;  %2747 = vadd.xlane.f32.xlu1 %v2746_v62  ;;  %v6674_v35 = vpop.eup %6673 }
 0xa32   : > { %6170 = vmatpush3.bf16.msra.mxu0 %v6167_v11  ;;  %v2755_v27 = vsel %vm1471_vm2, %v6674_v35, 0.0 }
 0xa33   : > { %v6676_v9 = vpop.eup %6675 }
 0xa34   : > { %v2752_v4 = vsel %vm1471_vm2, %v6676_v9, 0.0 }
 0xa42   : > { %6485 = vrot.lane.b32.xlu1 %v7615_v25, %s6883_s28 }
 0xa47   : > { %6480 = vrot.lane.b32.xlu0 %v7609_v14, %s6883_s28 }
 0xa66   : > { %2756 = vadd.xlane.f32.xlu0 %v2755_v27  ;;  %2753 = vadd.xlane.f32.xlu1 %v2752_v4  ;;  %v3051_v27 = vld [vmem:[%s6950_s16 + $0x18] sm:$0xff] }
 0xa67   : > { %v6183_v4 = vpack.c.bf16 %v3051_v27, %v3050_v7 }
 0xa77   : > { %6495 = vrot.lane.b32.xlu1 %v6494_v41, %s6882_s27 }
 0xa7c   : > { %6490 = vrot.lane.b32.xlu0 %v6489_v30, %s6883_s28 }
 0xa80   : > { %6510 = vrot.lane.b32.xlu0 %v6509_v33, %s6882_s27 }
 0xa84   : > { %6520 = vrot.lane.b32.xlu0 %v6519_v34, %s6883_s28 }
 0xab1   : > { %v2739_v25 = vpop.xlane.xlu1 %2738 }
 0xab2   : > { %v2736_v14 = vpop.xlane.xlu0 %2735 }
 0xab3   : > { %6677 = vrcp.f32 %v2736_v14  ;;  %v3052_v14 = vld [vmem:[%s6950_s16 + $0x20] sm:$0xff] }
 0xab4   : > { %6679 = vrcp.f32 %v2739_v25  ;;  %v3053_v25 = vld [vmem:[%s6950_s16 + $0x28] sm:$0xff] }
 0xab6   : > { %v2745_v59 = vpop.xlane.xlu1 %2744 }
 0xaba   : > { %v2742_v58 = vpop.xlane.xlu0 %2741 }
 0xabb   : > { %6681 = vrcp.f32 %v2742_v58 }
 0xabc   : > { %6683 = vrcp.f32 %v2745_v59  ;;  %v3055_v59 = vld [vmem:[%s6950_s16 + $0x38] sm:$0xff] }
 0xabd   : > { %v6678_v41 = vpop.eup %6677 }
 0xabe   : > { %v2748_v47 = vpop.xlane.xlu1 %2747  ;;  %v2751_v21 = vpop.xlane.xlu0 %2750  ;;  %v2766_v53 = vmul.f32 %v6678_v41, %v6664_v28  ;;  %v3056_v41 = vld [vmem:[%s6950_s16 + $0x40] sm:$0xff] }
 0xabf   : > { %6685 = vrcp.f32 %v2748_v47  ;;  %v6680_v57 = vpop.eup %6679  ;;  %v3057_v47 = vld [vmem:[%s6950_s16 + $0x48] sm:$0xff] }
 0xac0   : > { %5803 = vmatprep.mubr.msk.f32.mxu0 %vm1471_vm2, %v2766_v53  ;;  %6687 = vrcp.f32 %v2751_v21  ;;  %v2767_v15 = vmul.f32 %v6680_v57, %v8257_v20  ;;  %v6195_v21 = vpack.c.bf16 %v3057_v47, %v3056_v41  ;;  %v3058_v53 = vld [vmem:[%s6950_s16 + $0x50] sm:$0xff] }
 0xac2   : > { %v6486_v37 = vpop.permute.xlu1 %6485  ;;  %v6481_v30 = vpop.permute.xlu0 %6480 }
 0xac3   : > { %v6488_v39 = vunpack.i.h.bf16 %v6486_v37  ;;  %v6487_v40 = vunpack.i.l.bf16 %v6486_v37  ;;  %v6483_v33 = vunpack.i.h.bf16 %v6481_v30  ;;  %v6482_v22 = vunpack.i.l.bf16 %v6481_v30  ;;  %v3059_v37 = vld [vmem:[%s6950_s16 + $0x58] sm:$0xff] }
 0xac4   : > { %v6199_v30 = vpack.c.bf16 %v3059_v37, %v3058_v53 }
 0xac5   : > { %v6171_v46 = vpack.c.bf16 %v6483_v33, %v6482_v22  ;;  %v6175_v34 = vpack.c.bf16 %v6488_v39, %v6487_v40  ;;  %v6682_v28 = vpop.eup %6681  ;;  %v3060_v39 = vld [vmem:[%s6950_s16 + $0x60] sm:$0xff]  ;;  %v3061_v40 = vld [vmem:[%s6950_s16 + $0x68] sm:$0xff]  ;;  %v3062_v22 = vld [vmem:[%s6950_s16 + $0x70] sm:$0xff] }
 0xac6   : > { %v6684_v10 = vpop.eup %6683  ;;  %v2768_v13 = vmul.f32 %v6682_v28, %v8266_v36  ;;  %v6203_v33 = vpack.c.bf16 %v3061_v40, %v3060_v39 }
 0xac7   : > { %6172 = vmatprep.subr.bf16.mxu0 %v6171_v46  ;;  %v2769_v29 = vmul.f32 %v6684_v10, %v8262_v23 }
 0xac8   : > { %6174 = vmatpush3.bf16.msra.mxu0 %v6171_v46  ;;  %v3063_v46 = vld [vmem:[%s6950_s16 + $0x78] sm:$0xff] }
 0xac9   : > { %6176 = vmatprep.subr.bf16.mxu0 %v6175_v34  ;;  %v6686_v16 = vpop.eup %6685 }
 0xaca   : > { %v6688_v0 = vpop.eup %6687  ;;  %v2770_v11 = vmul.f32 %v6686_v16, %v6672_v3 }
 0xacb   : > { %v2771_v20 = vmul.f32 %v6688_v0, %v8270_v38  ;;  %v3048_v38 = vld [vmem:[%s6950_s16] sm:$0xff] }
 0xacc   : > { %6178 = vmatpush3.bf16.msra.mxu0 %v6175_v34  ;;  %v6179_v61 = vpack.c.bf16 %v3049_v1, %v3048_v38  ;;  %v6207_v34 = vpack.c.bf16 %v3063_v46, %v3062_v22 }
 0xace   : > { %6180 = vmatprep.subr.bf16.mxu0 %v6179_v61 }
 0xacf   : > { %5804 = vmatmul.mubr.msk.f32.vlgmr.msra.gmra.mrb[32].mxu0 %vm1471_vm2, %v2767_v15 }
 0xad0   : > { %5806 = vmatprep.mubr.msk.f32.mxu0 %vm1471_vm2, %v2768_v13  ;;  %6182 = vmatpush3.bf16.msra.mxu0 %v6179_v61 }
 0xad1   : > { %6184 = vmatprep.subr.bf16.mxu0 %v6183_v4 }
 0xad3   : > { %5807 = vmatmul.mubr.msk.f32.gmra.mrb[34].mxu0 %vm1471_vm2, %v2769_v29 }
 0xad4   : > { %5809 = vmatprep.mubr.msk.f32.mxu0 %vm1471_vm2, %v2770_v11  ;;  %6186 = vmatpush3.bf16.msra.mxu0 %v6183_v4 }
 0xad7   : > { %5810 = vmatmul.mubr.msk.f32.gmra.mrb[36].mxu0 %vm1471_vm2, %v2771_v20 }
 0xaf3   : > { %v2754_v36 = vpop.xlane.xlu1 %2753  ;;  %v2757_v12 = vpop.xlane.xlu0 %2756 }
 0xaf4   : > { %6689 = vrcp.f32 %v2754_v36 }
 0xaf5   : > { %6691 = vrcp.f32 %v2757_v12 }
 0xaf7   : > { %v6491_v20 = vpop.permute.xlu0 %6490  ;;  %v6496_v36 = vpop.permute.xlu1 %6495 }
 0xaf8   : > { %v6493_v12 = vunpack.i.h.bf16 %v6491_v20  ;;  %v6492_v49 = vunpack.i.l.bf16 %v6491_v20  ;;  %v6498_v52 = vunpack.i.h.bf16 %v6496_v36 }
 0xafa   : > { %v3024_v51 = vsel %vm1317_vm0, %v7882_v56, %v6493_v12  ;;  %v3023_v50 = vsel %vm1317_vm0, %v7884_v60, %v6492_v49 }
 0xafb   : > { %v6511_v45 = vpop.permute.xlu0 %6510 }
 0xafc   : > { %v6513_v27 = vunpack.i.h.bf16 %v6511_v45  ;;  %v6512_v4 = vunpack.i.l.bf16 %v6511_v45 }
 0xafe   : > { %v6690_v23 = vpop.eup %6689 }
 0xaff   : > { %v6692_v62 = vpop.eup %6691  ;;  %v2772_v3 = vmul.f32 %v6690_v23, %v6676_v9  ;;  %v3054_v9 = vld [vmem:[%s6950_s16 + $0x30] sm:$0xff]  ;;  %v6521_v7 = vpop.permute.xlu0 %6520 }
 0xb00   : > { %v2773_v18 = vmul.f32 %v6692_v62, %v6674_v35  ;;  %v6187_v35 = vpack.c.bf16 %v3053_v25, %v3052_v14  ;;  %v6191_v58 = vpack.c.bf16 %v3055_v59, %v3054_v9  ;;  %v3032_v62 = vsel %vm1471_vm2, %v3024_v51, %v6498_v52  ;;  %v6846_v52 = vld [vmem:[#allocation2 + $0x8] sm:$0xff] }
 0xb01   : > { %5812 = vmatprep.mubr.msk.f32.mxu0 %vm1471_vm2, %v2772_v3  ;;  %v6523_v9 = vunpack.i.h.bf16 %v6521_v7  ;;  %v6522_v59 = vunpack.i.l.bf16 %v6521_v7  ;;  %v6850_v7 = vld [vmem:[#allocation2 + $0x28] sm:$0xff] }
 0xb02   : > { %5813 = vmatmul.mubr.msk.f32.gmra.mrb[38].mxu0 %vm1471_vm2, %v2773_v18  ;;  %6188 = vmatprep.subr.bf16.mxu0 %v6187_v35 }
 0xb03   : > { %6190 = vmatpush3.bf16.msra.mxu0 %v6187_v35  ;;  %v3027_v40 = vsel %vm1317_vm0, %v7892_v24, %v6522_v59  ;;  %v6852_v59 = vld [vmem:[#allocation2 + $0x38] sm:$0xff] }
 0xb04   : > { %6192 = vmatprep.subr.bf16.mxu0 %v6191_v58 }
 0xb07   : > { %6194 = vmatpush3.bf16.msra.mxu0 %v6191_v58 }
 0xb08   : > { %6196 = vmatprep.subr.bf16.mxu0 %v6195_v21 }
 0xb0b   : > { %6198 = vmatpush3.bf16.msra.mxu0 %v6195_v21 }
 0xb0c   : > { %6200 = vmatprep.subr.bf16.mxu0 %v6199_v30 }
 0xb0f   : > { %6202 = vmatpush3.bf16.msra.mxu0 %v6199_v30 }
 0xb10   : > { %6204 = vmatprep.subr.bf16.mxu0 %v6203_v33 }
 0xb13   : > { %6206 = vmatpush3.bf16.msra.mxu0 %v6203_v33  ;;  %v3028_v33 = vsel %vm1317_vm0, %v7890_v5, %v6523_v9 }
 0xb14   : > { %6208 = vmatprep.subr.bf16.mxu0 %v6207_v34 }
 0xb17   : > { %6210 = vmatpush3.bf16.msra.mxu0 %v6207_v34 }
 0xba2   : > { %v5805_v57 = vpop.f32.mrb[32].mxu0 }
 0xba3   : > { %v2888_v28 = vpop.f32.mrb[33].mxu0 }
 0xba4   : > { %v6499_v15 = vpack.i.bf16 %v5805_v57, %v2888_v28 }
 0xba6   : > { %6500 = vrot.lane.b32.xlu1 %v6499_v15, %s6881_s25  ;;  %v5808_v10 = vpop.f32.mrb[34].mxu0 }
 0xba7   : > { %v2898_v13 = vpop.f32.mrb[35].mxu0 }
 0xba8   : > { %v6514_v16 = vpack.i.bf16 %v5808_v10, %v2898_v13 }
 0xbaa   : > { %6505 = vrot.lane.b32.xlu1 %v6504_v42, %s6883_s28  ;;  %v5811_v29 = vpop.f32.mrb[36].mxu0 }
 0xbab   : > { %v2908_v0 = vpop.f32.mrb[37].mxu0 }
 0xbac   : > { %v6529_v11 = vpack.i.bf16 %v5811_v29, %v2908_v0 }
 0xbae   : > { %6515 = vrot.lane.b32.xlu1 %v6514_v16, %s6881_s25  ;;  %6530 = vrot.lane.b32.xlu0 %v6529_v11, %s6881_s25 }
 0xbb2   : > { %6525 = vrot.lane.b32.xlu1 %v6524_v31, %s6882_s27  ;;  %6540 = vrot.lane.b32.xlu0 %v6539_v55, %s6882_s27  ;;  %v6497_v31 = vunpack.i.l.bf16 %v6496_v36 }
 0xbb4   : > { %v3031_v23 = vsel %vm1471_vm2, %v3023_v50, %v6497_v31  ;;  %v6847_v50 = vld [vmem:[#allocation2] sm:$0xff] }
 0xbb6   : > { %6535 = vrot.lane.b32.xlu1 %v6534_v26, %s6883_s28 }
 0xbd5   : > { %v5814_v19 = vpop.f32.mrb[38].mxu0 }
 0xbd6   : > { %v2918_v44 = vpop.f32.mrb[39].mxu0 }
 0xbd7   : > { %v6544_v42 = vpack.i.bf16 %v5814_v19, %v2918_v44 }
 0xbd9   : > { %6545 = vrot.lane.b32.xlu1 %v6544_v42, %s6881_s25 }
 0xc18   : > { %v6501_v55 = vpop.permute.xlu1 %6500 }
 0xc19   : > { %v6503_v17 = vunpack.i.h.bf16 %v6501_v55  ;;  %v6502_v26 = vunpack.i.l.bf16 %v6501_v55 }
 0xc1b   : > { %v3040_v3 = vsel %vm3039_vm3, %v3031_v23, %v6502_v26  ;;  %v3041_v18 = vsel %vm3039_vm3, %v3032_v62, %v6503_v17  ;;  %v6848_v62 = vld [vmem:[#allocation2 + $0x10] sm:$0xff] }
 0xc1c   : > { %v6506_v38 = vpop.permute.xlu1 %6505  ;;  %5847 = vmatprep.mubr.f32.mxu0 %v3040_v3 }
 0xc1d   : > { %v6508_v1 = vunpack.i.h.bf16 %v6506_v38  ;;  %v6507_v56 = vunpack.i.l.bf16 %v6506_v38  ;;  %5848 = vmatmul.mubr.f32.vlgmr.msra.gmra.mrb[40].mxu0 %v3041_v18  ;;  %v6849_v18 = vld [vmem:[#allocation2 + $0x18] sm:$0xff] }
 0xc1f   : > { %v3025_v60 = vsel %vm1317_vm0, %v7888_v2, %v6507_v56  ;;  %v3026_v61 = vsel %vm1317_vm0, %v7886_v63, %v6508_v1 }
 0xc20   : > { %v6516_v14 = vpop.permute.xlu1 %6515  ;;  %v3033_v58 = vsel %vm1471_vm2, %v3025_v60, %v6512_v4  ;;  %v3034_v41 = vsel %vm1471_vm2, %v3026_v61, %v6513_v27  ;;  %v6531_v47 = vpop.permute.xlu0 %6530 }
 0xc21   : > { %v6518_v25 = vunpack.i.h.bf16 %v6516_v14  ;;  %v6517_v35 = vunpack.i.l.bf16 %v6516_v14  ;;  %v6533_v30 = vunpack.i.h.bf16 %v6531_v47  ;;  %v6532_v39 = vunpack.i.l.bf16 %v6531_v47  ;;  %v6851_v14 = vld [vmem:[#allocation2 + $0x20] sm:$0xff]  ;;  %v6853_v47 = vld [vmem:[#allocation2 + $0x30] sm:$0xff] }
 0xc23   : > { %v3042_v21 = vsel %vm3039_vm3, %v3033_v58, %v6517_v35  ;;  %v3043_v53 = vsel %vm3039_vm3, %v3034_v41, %v6518_v25 }
 0xc24   : > { %v6526_v2 = vpop.permute.xlu1 %6525  ;;  %5850 = vmatprep.mubr.f32.mxu0 %v3042_v21  ;;  %v6541_v13 = vpop.permute.xlu0 %6540 }
 0xc25   : > { %v6528_v37 = vunpack.i.h.bf16 %v6526_v2  ;;  %v6527_v63 = vunpack.i.l.bf16 %v6526_v2  ;;  %5851 = vmatmul.mubr.f32.gmra.mrb[42].mxu0 %v3043_v53  ;;  %v6543_v16 = vunpack.i.h.bf16 %v6541_v13  ;;  %v6542_v29 = vunpack.i.l.bf16 %v6541_v13  ;;  %v3314_v13 = vld [vmem:[%s6960_s23 + $0x68] sm:$0xff] }
 0xc27   : > { %v3035_v22 = vsel %vm1471_vm2, %v3027_v40, %v6527_v63  ;;  %v3036_v46 = vsel %vm1471_vm2, %v3028_v33, %v6528_v37  ;;  %v3302_v37 = vld [vmem:[%s6960_s23 + $0x8] sm:$0xff]  ;;  %v3308_v40 = vld [vmem:[%s6960_s23 + $0x38] sm:$0xff]  ;;  %v3301_v33 = vld [vmem:[%s6960_s23] sm:$0xff] }
 0xc28   : > { %v3044_v34 = vsel %vm3039_vm3, %v3035_v22, %v6532_v39  ;;  %v3045_v57 = vsel %vm3039_vm3, %v3036_v46, %v6533_v30  ;;  %v6536_v28 = vpop.permute.xlu1 %6535  ;;  %v3306_v63 = vld [vmem:[%s6960_s23 + $0x28] sm:$0xff]  ;;  %v3304_v30 = vld [vmem:[%s6960_s23 + $0x18] sm:$0xff]  ;;  %v3305_v22 = vld [vmem:[%s6960_s23 + $0x20] sm:$0xff] }
 0xc29   : > { %5853 = vmatprep.mubr.f32.mxu0 %v3044_v34  ;;  %v6538_v15 = vunpack.i.h.bf16 %v6536_v28  ;;  %v6537_v10 = vunpack.i.l.bf16 %v6536_v28  ;;  %v6211_v39 = vpack.c.bf16 %v3306_v63, %v3302_v37  ;;  %v6243_v46 = vpack.c.bf16 %v3308_v40, %v3304_v30  ;;  %v3307_v28 = vld [vmem:[%s6960_s23 + $0x30] sm:$0xff] }
 0xc2a   : > { %5854 = vmatmul.mubr.f32.gmra.mrb[44].mxu0 %v3045_v57  ;;  %v6213_v34 = vpack.c.bf16 %v3305_v22, %v3301_v33  ;;  %v3303_v57 = vld [vmem:[%s6960_s23 + $0x10] sm:$0xff] }
 0xc2b   : > { %v3029_v24 = vsel %vm1317_vm0, %v7896_v8, %v6537_v10  ;;  %v3030_v5 = vsel %vm1317_vm0, %v7894_v6, %v6538_v15  ;;  %v3179_v8 = vsub.s32 4, %v7538_v43  ;;  %v8382_v6 = vld [vmem:[%s6970_s13] sm:$0xff]  ;;  %v3310_v15 = vld [vmem:[%s6960_s23 + $0x48] sm:$0xff]  ;;  %6212 = vmatprep.subr.bf16.mxu1 %v6211_v39  ;;  %v6245_v10 = vpack.c.bf16 %v3307_v28, %v3303_v57  ;;  %6244 = vmatprep.subr.bf16.mxu0 %v6243_v46  ;;  %v3328_v57 = vld [vmem:[%s6960_s23 + $0xd8] sm:$0xff] }
 0xc2c   : > { %v3037_v44 = vsel %vm1471_vm2, %v3029_v24, %v6542_v29  ;;  %v3038_v42 = vsel %vm1471_vm2, %v3030_v5, %v6543_v16  ;;  %v3312_v24 = vld [vmem:[%s6960_s23 + $0x58] sm:$0xff]  ;;  %6214 = vmatpush1.bf16.msra.mxu1 %v6213_v34  ;;  %v6215_v16 = vpack.c.bf16 %v3314_v13, %v3310_v15  ;;  %v3326_v46 = vld [vmem:[%s6960_s23 + $0xc8] sm:$0xff] }
 0xc2d   : > { %v3180_v12 = vrot.slane %v8382_v6, %v3179_v8  ;;  %v3316_v5 = vld [vmem:[%s6960_s23 + $0x78] sm:$0xff]  ;;  %6246 = vmatpush1.bf16.msra.mxu0 %v6245_v10  ;;  %v3330_v34 = vld [vmem:[%s6960_s23 + $0xe8] sm:$0xff] }
 0xc2e   : > { %v6247_v29 = vpack.c.bf16 %v3316_v5, %v3312_v24  ;;  %6216 = vmatprep.subr.bf16.mxu1 %v6215_v16  ;;  %v6223_v10 = vpack.c.bf16 %v3330_v34, %v3326_v46  ;;  %v3332_v13 = vld [vmem:[%s6960_s23 + $0xf8] sm:$0xff]  ;;  %v3325_v24 = vld [vmem:[%s6960_s23 + $0xc0] sm:$0xff] }
 0xc2f   : > { %v3329_v5 = vld [vmem:[%s6960_s23 + $0xe0] sm:$0xff]  ;;  %v6255_v16 = vpack.c.bf16 %v3332_v13, %v3328_v57  ;;  %v3351_v57 = vld [vmem:[%s6960_s23 + $0x190] sm:$0xff]  ;;  %v3362_v13 = vld [vmem:[%s6960_s23 + $0x1e8] sm:$0xff] }
 0xc30   : > { %6248 = vmatprep.subr.bf16.mxu0 %v6247_v29  ;;  %v6225_v29 = vpack.c.bf16 %v3329_v5, %v3325_v24  ;;  %v3360_v24 = vld [vmem:[%s6960_s23 + $0x1d8] sm:$0xff] }
 0xc4b   : > { %v6546_v0 = vpop.permute.xlu1 %6545 }
 0xc4c   : > { %v6548_v11 = vunpack.i.h.bf16 %v6546_v0  ;;  %v6547_v19 = vunpack.i.l.bf16 %v6546_v0  ;;  %v3309_v0 = vld [vmem:[%s6960_s23 + $0x40] sm:$0xff] }
 0xc4e   : > { %v3046_v20 = vsel %vm3039_vm3, %v3037_v44, %v6547_v19  ;;  %v3047_v36 = vsel %vm3039_vm3, %v3038_v42, %v6548_v11  ;;  %v3313_v11 = vld [vmem:[%s6960_s23 + $0x60] sm:$0xff]  ;;  %v3311_v19 = vld [vmem:[%s6960_s23 + $0x50] sm:$0xff] }
 0xc4f   : > { %5856 = vmatprep.mubr.f32.mxu0 %v3046_v20  ;;  %v6217_v44 = vpack.c.bf16 %v3313_v11, %v3309_v0  ;;  %v3315_v42 = vld [vmem:[%s6960_s23 + $0x70] sm:$0xff]  ;;  %v3318_v20 = vld [vmem:[%s6960_s23 + $0x88] sm:$0xff] }
 0xc50   : > { %5857 = vmatmul.mubr.f32.gmra.mrb[46].mxu0 %v3047_v36  ;;  %v3322_v36 = vld [vmem:[%s6960_s23 + $0xa8] sm:$0xff]  ;;  %v6249_v8 = vpack.c.bf16 %v3315_v42, %v3311_v19  ;;  %v3327_v0 = vld [vmem:[%s6960_s23 + $0xd0] sm:$0xff] }
 0xc51   : > { %3558 = vmatprep.mubr.f32.mxu0 %v6880_v32  ;;  %6218 = vmatpush1.bf16.msra.mxu1 %v6217_v44  ;;  %v3331_v11 = vld [vmem:[%s6960_s23 + $0xf0] sm:$0xff]  ;;  %v3334_v44 = vld [vmem:[%s6960_s23 + $0x108] sm:$0xff] }
 0xc52   : > { %6250 = vmatpush1.bf16.msra.mxu0 %v6249_v8  ;;  %v6257_v19 = vpack.c.bf16 %v3331_v11, %v3327_v0  ;;  %v3338_v42 = vld [vmem:[%s6960_s23 + $0x128] sm:$0xff]  ;;  %v3340_v8 = vld [vmem:[%s6960_s23 + $0x138] sm:$0xff]  ;;  %v3361_v0 = vld [vmem:[%s6960_s23 + $0x1e0] sm:$0xff] }
 0xcf0   : > { %v5849_v49 = vpop.f32.mrb[40].mxu0 }
 0xcf1   : > { %v3170_v31 = vadd.f32 %v6846_v52, %v5849_v49  ;;  %v3130_v51 = vpop.f32.mrb[41].mxu0  ;;  %v3320_v49 = vld [vmem:[%s6960_s23 + $0x98] sm:$0xff] }
 0xcf2   : > { %v3169_v55 = vadd.f32 %v6847_v50, %v3130_v51  ;;  %v3324_v52 = vld [vmem:[%s6960_s23 + $0xb8] sm:$0xff]  ;;  %v3321_v50 = vld [vmem:[%s6960_s23 + $0xa0] sm:$0xff] }
 0xcf3   : > { %v8385_v45 = vadd.f32 %v3180_v12, %v3170_v31  ;;  %v3317_v31 = vld [vmem:[%s6960_s23 + $0x80] sm:$0xff]  ;;  %v6251_v51 = vpack.c.bf16 %v3324_v52, %v3320_v49 }
 0xcf4   : > { %v8387_v17 = vadd.f32 %v3180_v12, %v3169_v55  ;;  %v3319_v55 = vld [vmem:[%s6960_s23 + $0x90] sm:$0xff]  ;;  %v3337_v49 = vld [vmem:[%s6960_s23 + $0x120] sm:$0xff] }
 0xcf5   : > { %9492 = vst [vmem:[#allocation6_spill] sm:$0xff] %v8385_v45  ;;  %3191 = vadd.xlane.f32.xlu1 %v8385_v45  ;;  %6252 = vmatprep.subr.bf16.mxu0 %v6251_v51  ;;  %v3335_v51 = vld [vmem:[%s6960_s23 + $0x110] sm:$0xff] }
 0xcf6   : > { %9493 = vst [vmem:[#allocation7_spill] sm:$0xff] %v8387_v17  ;;  %3189 = vadd.xlane.f32.xlu0 %v8387_v17 }
 0xcf8   : > { %v5852_v26 = vpop.f32.mrb[42].mxu0 }
 0xcf9   : > { %v3140_v23 = vpop.f32.mrb[43].mxu0  ;;  %v3172_v38 = vadd.f32 %v6849_v18, %v5852_v26  ;;  %v3323_v26 = vld [vmem:[%s6960_s23 + $0xb0] sm:$0xff] }
 0xcfa   : > { %v3171_v3 = vadd.f32 %v6848_v62, %v3140_v23  ;;  %v6221_v23 = vpack.c.bf16 %v3321_v50, %v3317_v31  ;;  %v6253_v62 = vpack.c.bf16 %v3323_v26, %v3319_v55  ;;  %v3339_v50 = vld [vmem:[%s6960_s23 + $0x130] sm:$0xff]  ;;  %v3342_v26 = vld [vmem:[%s6960_s23 + $0x148] sm:$0xff] }
 0xcfb   : > { %v8394_v27 = vadd.f32 %v3180_v12, %v3172_v38  ;;  %v6261_v55 = vpack.c.bf16 %v3339_v50, %v3335_v51 }
 0xcfc   : > { %v8391_v1 = vadd.f32 %v3180_v12, %v3171_v3  ;;  %6254 = vmatpush1.bf16.msra.mxu0 %v6253_v62  ;;  %v3344_v62 = vld [vmem:[%s6960_s23 + $0x158] sm:$0xff] }
 0xcfd   : > { %v5855_v56 = vpop.f32.mrb[44].mxu0  ;;  %9495 = vst [vmem:[#allocation9_spill] sm:$0xff] %v8394_v27  ;;  %6256 = vmatprep.subr.bf16.mxu0 %v6255_v16  ;;  %v3364_v16 = vld [vmem:[%s6960_s23 + $0x1f8] sm:$0xff] }
 0xcfe   : > { %9494 = vst [vmem:[#allocation8_spill] sm:$0xff] %v8391_v1  ;;  %v3174_v60 = vadd.f32 %v6850_v7, %v5855_v56  ;;  %3193 = vadd.xlane.f32.xlu0 %v8391_v1  ;;  %v3150_v61 = vpop.f32.mrb[45].mxu0  ;;  %v6271_v11 = vpack.c.bf16 %v3364_v16, %v3360_v24 }
 0xcff   : > { %v3173_v25 = vadd.f32 %v6851_v14, %v3150_v61 }
 0xd00   : > { %v8396_v4 = vadd.f32 %v3180_v12, %v3174_v60  ;;  %6258 = vmatpush1.bf16.msra.mxu0 %v6257_v19 }
 0xd01   : > { %v8400_v35 = vadd.f32 %v3180_v12, %v3173_v25 }
 0xd02   : > { %9496 = vst [vmem:[#allocation10_spill] sm:$0xff] %v8396_v4  ;;  %3195 = vadd.xlane.f32.xlu0 %v8394_v27  ;;  %3199 = vadd.xlane.f32.xlu1 %v8396_v4 }
 0xd03   : > { %9497 = vst [vmem:[#allocation11_spill] sm:$0xff] %v8400_v35 }
 0xd06   : > { %3197 = vadd.xlane.f32.xlu0 %v8400_v35 }
 0xd23   : > { %v5858_v9 = vpop.f32.mrb[46].mxu0 }
 0xd24   : > { %v3176_v58 = vadd.f32 %v6852_v59, %v5858_v9  ;;  %v3160_v41 = vpop.f32.mrb[47].mxu0 }
 0xd25   : > { %v3175_v21 = vadd.f32 %v6853_v47, %v3160_v41 }
 0xd26   : > { %v8403_v53 = vadd.f32 %v3180_v12, %v3176_v58 }
 0xd27   : > { %v8405_v2 = vadd.f32 %v3180_v12, %v3175_v21  ;;  %v6219_v12 = vpack.c.bf16 %v3322_v36, %v3318_v20  ;;  %v3336_v20 = vld [vmem:[%s6960_s23 + $0x118] sm:$0xff]  ;;  %v6227_v36 = vpack.c.bf16 %v3338_v42, %v3334_v44  ;;  %v3359_v44 = vld [vmem:[%s6960_s23 + $0x1d0] sm:$0xff] }
 0xd28   : > { %9498 = vst [vmem:[#allocation12_spill] sm:$0xff] %v8403_v53  ;;  %3203 = vadd.xlane.f32.xlu1 %v8403_v53  ;;  %v6259_v52 = vpack.c.bf16 %v3340_v8, %v3336_v20  ;;  %v3363_v42 = vld [vmem:[%s6960_s23 + $0x1f0] sm:$0xff] }
 0xd29   : > { %9499 = vst [vmem:[#allocation13_spill] sm:$0xff] %v8405_v2  ;;  %3201 = vadd.xlane.f32.xlu0 %v8405_v2  ;;  %6220 = vmatprep.subr.bf16.mxu1 %v6219_v12  ;;  %v3333_v12 = vld [vmem:[%s6960_s23 + $0x100] sm:$0xff]  ;;  %v6273_v20 = vpack.c.bf16 %v3363_v42, %v3359_v44 }
 0xd2a   : > { %6222 = vmatpush1.bf16.msra.mxu1 %v6221_v23  ;;  %v6229_v31 = vpack.c.bf16 %v3337_v49, %v3333_v12  ;;  %6260 = vmatprep.subr.bf16.mxu0 %v6259_v52  ;;  %v3346_v23 = vld [vmem:[%s6960_s23 + $0x168] sm:$0xff] }
 0xd2b   : > { %6224 = vmatprep.subr.bf16.mxu1 %v6223_v10  ;;  %6262 = vmatpush1.bf16.msra.mxu0 %v6261_v55  ;;  %v3358_v10 = vld [vmem:[%s6960_s23 + $0x1c8] sm:$0xff] }
 0xd2c   : > { %v6239_v5 = vpack.c.bf16 %v3362_v13, %v3358_v10 }
 0xd2e   : > { %6226 = vmatpush1.bf16.msra.mxu1 %v6225_v29  ;;  %v3357_v29 = vld [vmem:[%s6960_s23 + $0x1c0] sm:$0xff] }
 0xd2f   : > { %6228 = vmatprep.subr.bf16.mxu1 %v6227_v36  ;;  %v6241_v19 = vpack.c.bf16 %v3361_v0, %v3357_v29 }
 0xd32   : > { %6230 = vmatpush1.bf16.msra.mxu1 %v6229_v31 }
 0xd82   : > { %v3192_v3 = vpop.xlane.xlu1 %3191 }
 0xd83   : > { %v3206_v18 = vmul.f32 0.0078125, %v3192_v3  ;;  %v3190_v38 = vpop.xlane.xlu0 %3189  ;;  %v6231_v3 = vpack.c.bf16 %v3346_v23, %v3342_v26 }
 0xd84   : > { %v3205_v56 = vmul.f32 0.0078125, %v3190_v38  ;;  %v3341_v38 = vld [vmem:[%s6960_s23 + $0x140] sm:$0xff] }
 0xd85   : > { %v8434_v7 = vsub.f32 %v8385_v45, %v3206_v18  ;;  %v3348_v18 = vld [vmem:[%s6960_s23 + $0x178] sm:$0xff]  ;;  %6232 = vmatprep.subr.bf16.mxu1 %v6231_v3 }
 0xd86   : > { %v8437_v60 = vsub.f32 %v8387_v17, %v3205_v56  ;;  %v3345_v56 = vld [vmem:[%s6960_s23 + $0x160] sm:$0xff] }
 0xd87   : > { %v3222_v61 = vmul.f32 %v8434_v7, %v8434_v7 }
 0xd88   : > { %v3221_v14 = vmul.f32 %v8437_v60, %v8437_v60 }
 0xd89   : > { %3231 = vadd.xlane.f32.xlu1 %v3222_v61  ;;  %v6263_v61 = vpack.c.bf16 %v3348_v18, %v3344_v62 }
 0xd8a   : > { %3229 = vadd.xlane.f32.xlu0 %v3221_v14  ;;  %v6233_v14 = vpack.c.bf16 %v3345_v56, %v3341_v38 }
 0xd8b   : > { %v3194_v25 = vpop.xlane.xlu0 %3193  ;;  %6264 = vmatprep.subr.bf16.mxu0 %v6263_v61  ;;  %v3279_v61 = vsub.s32 2, %v7538_v43 }
 0xd8c   : > { %v3207_v9 = vmul.f32 0.0078125, %v3194_v25  ;;  %v3343_v25 = vld [vmem:[%s6960_s23 + $0x150] sm:$0xff]  ;;  %6234 = vmatpush1.bf16.msra.mxu1 %v6233_v14 }
 0xd8e   : > { %v8444_v59 = vsub.f32 %v8391_v1, %v3207_v9  ;;  %v3347_v9 = vld [vmem:[%s6960_s23 + $0x170] sm:$0xff] }
 0xd8f   : > { %v3196_v58 = vpop.xlane.xlu0 %3195  ;;  %v3200_v41 = vpop.xlane.xlu1 %3199 }
 0xd90   : > { %v3208_v47 = vmul.f32 0.0078125, %v3196_v58  ;;  %v3210_v21 = vmul.f32 0.0078125, %v3200_v41  ;;  %v3223_v37 = vmul.f32 %v8444_v59, %v8444_v59  ;;  %v6265_v58 = vpack.c.bf16 %v3347_v9, %v3343_v25  ;;  %v3350_v41 = vld [vmem:[%s6960_s23 + $0x188] sm:$0xff] }
 0xd91   : > { %v3291_v9 = vsub.s32 3, %v7538_v43 }
 0xd92   : > { %v8449_v63 = vsub.f32 %v8394_v27, %v3208_v47  ;;  %3233 = vadd.xlane.f32.xlu0 %v3223_v37  ;;  %v8452_v39 = vsub.f32 %v8396_v4, %v3210_v21  ;;  %v3354_v47 = vld [vmem:[%s6960_s23 + $0x1a8] sm:$0xff]  ;;  %v3352_v21 = vld [vmem:[%s6960_s23 + $0x198] sm:$0xff]  ;;  %6266 = vmatpush1.bf16.msra.mxu0 %v6265_v58 }
 0xd93   : > { %v3198_v30 = vpop.xlane.xlu0 %3197  ;;  %v6235_v37 = vpack.c.bf16 %v3354_v47, %v3350_v41  ;;  %v8516_v47 = vrot.slane %v8382_v6, %v3279_v61 }
 0xd94   : > { %v3209_v40 = vmul.f32 0.0078125, %v3198_v30  ;;  %v3224_v33 = vmul.f32 %v8449_v63, %v8449_v63  ;;  %v3226_v28 = vmul.f32 %v8452_v39, %v8452_v39  ;;  %v3356_v30 = vld [vmem:[%s6960_s23 + $0x1b8] sm:$0xff] }
 0xd95   : > { %v6267_v46 = vpack.c.bf16 %v3356_v30, %v3352_v21  ;;  %6236 = vmatprep.subr.bf16.mxu1 %v6235_v37 }
 0xd96   : > { %v8457_v22 = vsub.f32 %v8400_v35, %v3209_v40  ;;  %3235 = vadd.xlane.f32.xlu1 %v3224_v33  ;;  %v3349_v40 = vld [vmem:[%s6960_s23 + $0x180] sm:$0xff]  ;;  %v9504_v35 = vmov -1.0  }
 0xd97   : > { %v3353_v33 = vld [vmem:[%s6960_s23 + $0x1a0] sm:$0xff]  ;;  %6268 = vmatprep.subr.bf16.mxu0 %v6267_v46  ;;  %v8520_v46 = vrot.slane %v8382_v6, %v3291_v9 }
 0xd98   : > { %v3225_v15 = vmul.f32 %v8457_v22, %v8457_v22  ;;  %v6237_v34 = vpack.c.bf16 %v3353_v33, %v3349_v40 }
 0xd9a   : > { %3239 = vadd.xlane.f32.xlu1 %v3226_v28  ;;  %3237 = vadd.xlane.f32.xlu0 %v3225_v15  ;;  %v3355_v28 = vld [vmem:[%s6960_s23 + $0x1b0] sm:$0xff] }
 0xd9b   : > { %v6269_v15 = vpack.c.bf16 %v3355_v28, %v3351_v57  ;;  %6238 = vmatpush1.bf16.msra.mxu1 %v6237_v34 }
 0xd9c   : > { %6240 = vmatprep.subr.bf16.mxu1 %v6239_v5 }
 0xd9d   : > { %6270 = vmatpush1.bf16.msra.mxu0 %v6269_v15 }
 0xd9e   : > { %6272 = vmatprep.subr.bf16.mxu0 %v6271_v11 }
 0xd9f   : > { %6242 = vmatpush1.bf16.msra.mxu1 %v6241_v19 }
 0xda1   : > { %6274 = vmatpush1.bf16.msra.mxu0 %v6273_v20 }
 0xdb5   : > { %v3204_v36 = vpop.xlane.xlu1 %3203 }
 0xdb6   : > { %v3212_v8 = vmul.f32 0.0078125, %v3204_v36  ;;  %v3202_v12 = vpop.xlane.xlu0 %3201 }
 0xdb7   : > { %v3211_v49 = vmul.f32 0.0078125, %v3202_v12 }
 0xdb8   : > { %v8504_v52 = vsub.f32 %v8403_v53, %v3212_v8 }
 0xdb9   : > { %v8507_v31 = vsub.f32 %v8405_v2, %v3211_v49 }
 0xdba   : > { %v3228_v51 = vmul.f32 %v8504_v52, %v8504_v52 }
 0xdbb   : > { %v3227_v50 = vmul.f32 %v8507_v31, %v8507_v31 }
 0xdbc   : > { %3243 = vadd.xlane.f32.xlu1 %v3228_v51 }
 0xdbd   : > { %3241 = vadd.xlane.f32.xlu0 %v3227_v50 }
 0xe16   : > { %v3232_v55 = vpop.xlane.xlu1 %3231 }
 0xe17   : > { %v3246_v26 = vmul.f32 0.0078125, %v3232_v55  ;;  %v3230_v23 = vpop.xlane.xlu0 %3229 }
 0xe18   : > { %v3245_v62 = vmul.f32 0.0078125, %v3230_v23 }
 0xe19   : > { %v3254_v3 = vadd.f32 1e-06, %v3246_v26 }
 0xe1a   : > { %v3253_v18 = vadd.f32 1e-06, %v3245_v62 }
 0xe1b   : > { %6693 = vrsqrt.f32 %v3254_v3 }
 0xe1c   : > { %6695 = vrsqrt.f32 %v3253_v18 }
 0xe1f   : > { %v3234_v38 = vpop.xlane.xlu0 %3233 }
 0xe20   : > { %v3247_v56 = vmul.f32 0.0078125, %v3234_v38 }
 0xe22   : > { %v3255_v14 = vadd.f32 1e-06, %v3247_v56 }
 0xe23   : > { %v3236_v25 = vpop.xlane.xlu1 %3235 }
 0xe24   : > { %6697 = vrsqrt.f32 %v3255_v14  ;;  %v3248_v58 = vmul.f32 0.0078125, %v3236_v25  ;;  %v4488_v14 = vld [vmem:[%s6965_s26 + $0x88] sm:$0xff]  ;;  %v4519_v25 = vld [vmem:[%s6965_s26 + $0x180] sm:$0xff] }
 0xe25   : > { %v6694_v41 = vpop.eup %6693 }
 0xe26   : > { %v6696_v21 = vpop.eup %6695  ;;  %v3256_v37 = vadd.f32 1e-06, %v3248_v58  ;;  %v3270_v34 = vmul.f32 %v6694_v41, %v8434_v7  ;;  %v4520_v58 = vld [vmem:[%s6965_s26 + $0x188] sm:$0xff] }
 0xe27   : > { %v3269_v30 = vmul.f32 %v6696_v21, %v8437_v60  ;;  %v3240_v40 = vpop.xlane.xlu1 %3239  ;;  %v3238_v33 = vpop.xlane.xlu0 %3237  ;;  %v6307_v41 = vpack.c.bf16 %v4520_v58, %v4519_v25  ;;  %v4503_v21 = vld [vmem:[%s6965_s26 + $0x100] sm:$0xff] }
 0xe28   : > { %6699 = vrsqrt.f32 %v3256_v37  ;;  %v3250_v57 = vmul.f32 0.0078125, %v3240_v40  ;;  %v3249_v28 = vmul.f32 0.0078125, %v3238_v33  ;;  %v3282_v5 = vmul.f32 %v8516_v47, %v3270_v34  ;;  %v4489_v33 = vld [vmem:[%s6965_s26 + $0x90] sm:$0xff]  ;;  %v4511_v58 = vld [vmem:[%s6965_s26 + $0x140] sm:$0xff] }
 0xe29   : > { %v3281_v15 = vmul.f32 %v8516_v47, %v3269_v30  ;;  %6308 = vmatprep.subr.bf16.mxu0 %v6307_v41  ;;  %v4504_v30 = vld [vmem:[%s6965_s26 + $0x108] sm:$0xff]  ;;  %v4521_v34 = vld [vmem:[%s6965_s26 + $0x190] sm:$0xff] }
 0xe2a   : > { %v3258_v10 = vadd.f32 1e-06, %v3250_v57  ;;  %v3257_v13 = vadd.f32 1e-06, %v3249_v28  ;;  %v3294_v6 = vadd.f32 %v8520_v46, %v3282_v5  ;;  %v6309_v40 = vpack.c.bf16 %v4504_v30, %v4503_v21  ;;  %v4522_v28 = vld [vmem:[%s6965_s26 + $0x198] sm:$0xff]  ;;  %v4505_v5 = vld [vmem:[%s6965_s26 + $0x110] sm:$0xff] }
 0xe2b   : > { %v3293_v24 = vadd.f32 %v8520_v46, %v3281_v15  ;;  %v4473_v15 = vld [vmem:[%s6965_s26 + $0x10] sm:$0xff]  ;;  %v4512_v41 = vld [vmem:[%s6965_s26 + $0x148] sm:$0xff]  ;;  %v4498_v21 = vld [vmem:[%s6965_s26 + $0xd8] sm:$0xff] }
 0xe2c   : > { %6701 = vrsqrt.f32 %v3258_v10  ;;  %v4474_v10 = vld [vmem:[%s6965_s26 + $0x18] sm:$0xff] }
 0xe2d   : > { %6703 = vrsqrt.f32 %v3257_v13  ;;  %3446 = vmatmul.mubr.f32.vlgmr.msra.gmra.mrb[48].mxu1 %v3293_v24  ;;  %3559 = vmatmul.mubr.f32.vlgmr.msra.gmra.mrb[48].mxu0 %v3293_v24  ;;  %v6311_v13 = vpack.c.bf16 %v4522_v28, %v4521_v34  ;;  %v6281_v24 = vpack.c.bf16 %v4474_v10, %v4473_v15  ;;  %v4530_v30 = vld [vmem:[%s6965_s26 + $0x1d8] sm:$0xff]  ;;  %v4499_v10 = vld [vmem:[%s6965_s26 + $0xe0] sm:$0xff] }
 0xe2e   : > { %v6698_v60 = vpop.eup %6697  ;;  %3451 = vmatprep.mubr.f32.mxu1 %v6880_v32  ;;  %3564 = vmatprep.mubr.f32.mxu0 %v6880_v32  ;;  %v4482_v34 = vld [vmem:[%s6965_s26 + $0x58] sm:$0xff] }
 0xe2f   : > { %v3271_v7 = vmul.f32 %v6698_v60, %v8444_v59  ;;  %6310 = vmatpush3.bf16.msra.mxu0 %v6309_v40  ;;  %v4506_v60 = vld [vmem:[%s6965_s26 + $0x118] sm:$0xff] }
 0xe30   : > { %6312 = vmatprep.subr.bf16.mxu0 %v6311_v13  ;;  %v4514_v15 = vld [vmem:[%s6965_s26 + $0x158] sm:$0xff]  ;;  %v4500_v13 = vld [vmem:[%s6965_s26 + $0xe8] sm:$0xff] }
 0xe31   : > { %3452 = vmatmul.mubr.f32.gmra.mrb[50].mxu1 %v3294_v6  ;;  %3565 = vmatmul.mubr.f32.gmra.mrb[50].mxu0 %v3294_v6  ;;  %v3283_v16 = vmul.f32 %v8516_v47, %v3271_v7  ;;  %v6313_v6 = vpack.c.bf16 %v4506_v60, %v4505_v5  ;;  %v4491_v7 = vld [vmem:[%s6965_s26 + $0xa0] sm:$0xff]  ;;  %v6299_v5 = vpack.c.bf16 %v4500_v13, %v4499_v10 }
 0xe32   : > { %v6700_v29 = vpop.eup %6699  ;;  %3457 = vmatprep.mubr.f32.mxu1 %v6880_v32  ;;  %3570 = vmatprep.mubr.f32.mxu0 %v6880_v32  ;;  %v4531_v60 = vld [vmem:[%s6965_s26 + $0x1e0] sm:$0xff] }
 0xe33   : > { %v3295_v0 = vadd.f32 %v8520_v46, %v3283_v16  ;;  %v3272_v11 = vmul.f32 %v6700_v29, %v8449_v63  ;;  %v4492_v16 = vld [vmem:[%s6965_s26 + $0xa8] sm:$0xff]  ;;  %v4523_v29 = vld [vmem:[%s6965_s26 + $0x1a0] sm:$0xff]  ;;  %6314 = vmatpush3.bf16.msra.mxu0 %v6313_v6 }
 0xe34   : > { %v4532_v6 = vld [vmem:[%s6965_s26 + $0x1e8] sm:$0xff] }
 0xe35   : > { %3458 = vmatmul.mubr.f32.gmra.mrb[52].mxu1 %v3295_v0  ;;  %3571 = vmatmul.mubr.f32.gmra.mrb[52].mxu0 %v3295_v0  ;;  %v3284_v19 = vmul.f32 %v8516_v47, %v3272_v11  ;;  %v6283_v0 = vpack.c.bf16 %v4492_v16, %v4491_v7  ;;  %v4524_v11 = vld [vmem:[%s6965_s26 + $0x1a8] sm:$0xff]  ;;  %v4483_v7 = vld [vmem:[%s6965_s26 + $0x60] sm:$0xff]  ;;  %v6331_v16 = vpack.c.bf16 %v4532_v6, %v4531_v60 }
 0xe36   : > { %v6702_v44 = vpop.eup %6701  ;;  %3463 = vmatprep.mubr.f32.mxu1 %v6880_v32  ;;  %3576 = vmatprep.mubr.f32.mxu0 %v6880_v32 }
 0xe37   : > { %v6704_v59 = vpop.eup %6703  ;;  %v3296_v42 = vadd.f32 %v8520_v46, %v3284_v19  ;;  %v3274_v36 = vmul.f32 %v6702_v44, %v8452_v39  ;;  %v4475_v19 = vld [vmem:[%s6965_s26 + $0x20] sm:$0xff]  ;;  %v4476_v44 = vld [vmem:[%s6965_s26 + $0x28] sm:$0xff] }
 0xe38   : > { %v3273_v20 = vmul.f32 %v6704_v59, %v8457_v22  ;;  %v6315_v59 = vpack.c.bf16 %v4524_v11, %v4523_v29  ;;  %v4484_v29 = vld [vmem:[%s6965_s26 + $0x68] sm:$0xff] }
 0xe39   : > { %3464 = vmatmul.mubr.f32.gmra.mrb[54].mxu1 %v3296_v42  ;;  %3577 = vmatmul.mubr.f32.gmra.mrb[54].mxu0 %v3296_v42  ;;  %v3286_v12 = vmul.f32 %v8516_v47, %v3274_v36  ;;  %v6285_v42 = vpack.c.bf16 %v4476_v44, %v4475_v19  ;;  %v4508_v36 = vld [vmem:[%s6965_s26 + $0x128] sm:$0xff]  ;;  %v6301_v19 = vpack.c.bf16 %v4484_v29, %v4483_v7  ;;  %v4501_v44 = vld [vmem:[%s6965_s26 + $0xf0] sm:$0xff] }
 0xe3a   : > { %3469 = vmatprep.mubr.f32.mxu1 %v6880_v32  ;;  %3582 = vmatprep.mubr.f32.mxu0 %v6880_v32  ;;  %v3285_v63 = vmul.f32 %v8516_v47, %v3273_v20  ;;  %v4507_v20 = vld [vmem:[%s6965_s26 + $0x120] sm:$0xff]  ;;  %v4516_v11 = vld [vmem:[%s6965_s26 + $0x168] sm:$0xff] }
 0xe3b   : > { %v3298_v39 = vadd.f32 %v8520_v46, %v3286_v12  ;;  %6316 = vmatprep.subr.bf16.mxu0 %v6315_v59  ;;  %v4494_v12 = vld [vmem:[%s6965_s26 + $0xb8] sm:$0xff] }
 0xe3c   : > { %v3297_v8 = vadd.f32 %v8520_v46, %v3285_v63  ;;  %v6317_v63 = vpack.c.bf16 %v4508_v36, %v4507_v20  ;;  %v4502_v59 = vld [vmem:[%s6965_s26 + $0xf8] sm:$0xff] }
 0xe3d   : > { %v6303_v36 = vpack.c.bf16 %v4502_v59, %v4501_v44 }
 0xe3e   : > { %3470 = vmatmul.mubr.f32.gmra.mrb[56].mxu1 %v3297_v8  ;;  %3583 = vmatmul.mubr.f32.gmra.mrb[56].mxu0 %v3297_v8  ;;  %v4493_v8 = vld [vmem:[%s6965_s26 + $0xb0] sm:$0xff] }
 0xe3f   : > { %3475 = vmatprep.mubr.f32.mxu1 %v6880_v32  ;;  %3588 = vmatprep.mubr.f32.mxu0 %v6880_v32 }
 0xe40   : > { %6318 = vmatpush3.bf16.msra.mxu0 %v6317_v63  ;;  %v4534_v63 = vld [vmem:[%s6965_s26 + $0x1f8] sm:$0xff] }
 0xe42   : > { %3476 = vmatmul.mubr.f32.gmra.mrb[58].mxu1 %v3298_v39  ;;  %3589 = vmatmul.mubr.f32.gmra.mrb[58].mxu0 %v3298_v39  ;;  %v4525_v39 = vld [vmem:[%s6965_s26 + $0x1b0] sm:$0xff] }
 0xe43   : > { %3481 = vmatprep.mubr.f32.mxu1 %v6880_v32  ;;  %3594 = vmatprep.mubr.f32.mxu0 %v6880_v32 }
 0xe49   : > { %v3244_v22 = vpop.xlane.xlu1 %3243 }
 0xe4a   : > { %v3252_v49 = vmul.f32 0.0078125, %v3244_v22  ;;  %v3242_v51 = vpop.xlane.xlu0 %3241  ;;  %v6287_v22 = vpack.c.bf16 %v4494_v12, %v4493_v8  ;;  %v4485_v8 = vld [vmem:[%s6965_s26 + $0x70] sm:$0xff]  ;;  %v4486_v12 = vld [vmem:[%s6965_s26 + $0x78] sm:$0xff] }
 0xe4b   : > { %v3251_v50 = vmul.f32 0.0078125, %v3242_v51  ;;  %v4477_v51 = vld [vmem:[%s6965_s26 + $0x30] sm:$0xff] }
 0xe4c   : > { %v3260_v55 = vadd.f32 1e-06, %v3252_v49  ;;  %v4526_v49 = vld [vmem:[%s6965_s26 + $0x1b8] sm:$0xff] }
 0xe4d   : > { %v3259_v26 = vadd.f32 1e-06, %v3251_v50  ;;  %v4478_v50 = vld [vmem:[%s6965_s26 + $0x38] sm:$0xff] }
 0xe4e   : > { %6705 = vrsqrt.f32 %v3260_v55  ;;  %v6319_v55 = vpack.c.bf16 %v4526_v49, %v4525_v39  ;;  %v4518_v49 = vld [vmem:[%s6965_s26 + $0x178] sm:$0xff] }
 0xe4f   : > { %6707 = vrsqrt.f32 %v3259_v26  ;;  %v6289_v26 = vpack.c.bf16 %v4478_v50, %v4477_v51  ;;  %v6305_v51 = vpack.c.bf16 %v4486_v12, %v4485_v8 }
 0xe50   : > { %6320 = vmatprep.subr.bf16.mxu0 %v6319_v55  ;;  %v6854_v55 = vld [vmem:[%s6970_s13 + $0x8] sm:$0xff] }
 0xe58   : > { %v6706_v23 = vpop.eup %6705 }
 0xe59   : > { %v6708_v62 = vpop.eup %6707  ;;  %v3276_v18 = vmul.f32 %v6706_v23, %v8504_v52  ;;  %v4487_v52 = vld [vmem:[%s6965_s26 + $0x80] sm:$0xff]  ;;  %v4509_v23 = vld [vmem:[%s6965_s26 + $0x130] sm:$0xff] }
 0xe5a   : > { %v3275_v3 = vmul.f32 %v6708_v62, %v8507_v31  ;;  %v6275_v9 = vpack.c.bf16 %v4488_v14, %v4487_v52  ;;  %v4510_v62 = vld [vmem:[%s6965_s26 + $0x138] sm:$0xff]  ;;  %v4479_v52 = vld [vmem:[%s6965_s26 + $0x40] sm:$0xff]  ;;  %v4480_v14 = vld [vmem:[%s6965_s26 + $0x48] sm:$0xff] }
 0xe5b   : > { %v3288_v61 = vmul.f32 %v8516_v47, %v3276_v18  ;;  %v4495_v18 = vld [vmem:[%s6965_s26 + $0xc0] sm:$0xff] }
 0xe5c   : > { %v3287_v38 = vmul.f32 %v8516_v47, %v3275_v3  ;;  %6276 = vmatprep.subr.bf16.mxu1 %v6275_v9  ;;  %v4472_v47 = vld [vmem:[%s6965_s26 + $0x8] sm:$0xff]  ;;  %v6321_v3 = vpack.c.bf16 %v4510_v62, %v4509_v23  ;;  %v6293_v9 = vpack.c.bf16 %v4480_v14, %v4479_v52  ;;  %v880_v23 = vrot.slane %v6854_v55, 1 }
 0xe5d   : > { %v3300_v31 = vadd.f32 %v8520_v46, %v3288_v61  ;;  %v884_v62 = vrot.slane %v6854_v55, 3 }
 0xe5e   : > { %v3299_v56 = vadd.f32 %v8520_v46, %v3287_v38  ;;  %v4490_v46 = vld [vmem:[%s6965_s26 + $0x98] sm:$0xff]  ;;  %v4496_v38 = vld [vmem:[%s6965_s26 + $0xc8] sm:$0xff]  ;;  %6322 = vmatpush3.bf16.msra.mxu0 %v6321_v3  ;;  %v8625_v3 = vrot.slane %v6854_v55, %v7547_v54 }
 0xe5f   : > { %v6279_v57 = vpack.c.bf16 %v4490_v46, %v4489_v33  ;;  %v6291_v61 = vpack.c.bf16 %v4496_v38, %v4495_v18  ;;  %v4481_v46 = vld [vmem:[%s6965_s26 + $0x50] sm:$0xff]  ;;  %v8631_v38 = vrot.slane %v880_v23, %v7547_v54  ;;  %v9466_v23 = vmov -1.0  }
 0xe60   : > { %3482 = vmatmul.mubr.f32.gmra.mrb[60].mxu1 %v3299_v56  ;;  %3595 = vmatmul.mubr.f32.gmra.mrb[60].mxu0 %v3299_v56  ;;  %v4527_v56 = vld [vmem:[%s6965_s26 + $0x1c0] sm:$0xff]  ;;  %v6297_v28 = vpack.c.bf16 %v4482_v34, %v4481_v46 }
 0xe61   : > { %3487 = vmatprep.mubr.f32.mxu1 %v6880_v32  ;;  %3600 = vmatprep.mubr.f32.mxu0 %v6880_v32  ;;  %v4471_v32 = vld [vmem:[%s6965_s26] sm:$0xff] }
 0xe62   : > { %v6277_v37 = vpack.c.bf16 %v4472_v47, %v4471_v32  ;;  %v4497_v32 = vld [vmem:[%s6965_s26 + $0xd0] sm:$0xff]  ;;  %v6325_v47 = vpack.c.bf16 %v4512_v41, %v4511_v58 }
 0xe63   : > { %v6295_v40 = vpack.c.bf16 %v4498_v21, %v4497_v32 }
 0xe64   : > { %3488 = vmatmul.mubr.f32.gmra.mrb[62].mxu1 %v3300_v31  ;;  %3601 = vmatmul.mubr.f32.gmra.mrb[62].mxu0 %v3300_v31  ;;  %v4528_v31 = vld [vmem:[%s6965_s26 + $0x1c8] sm:$0xff] }
 0xe65   : > { %6278 = vmatpush3.bf16.msra.mxu1 %v6277_v37  ;;  %v6323_v25 = vpack.c.bf16 %v4528_v31, %v4527_v56  ;;  %v4529_v37 = vld [vmem:[%s6965_s26 + $0x1d0] sm:$0xff]  ;;  %v8634_v56 = vrot.slane %v884_v62, %v7547_v54 }
 0xe66   : > { %6280 = vmatprep.subr.bf16.mxu1 %v6279_v57  ;;  %v6327_v33 = vpack.c.bf16 %v4530_v30, %v4529_v37  ;;  %v4513_v57 = vld [vmem:[%s6965_s26 + $0x150] sm:$0xff] }
 0xe67   : > { %6324 = vmatprep.subr.bf16.mxu0 %v6323_v25 }
 0xe68   : > { %6326 = vmatpush3.bf16.msra.mxu0 %v6325_v47 }
 0xe69   : > { %6282 = vmatpush3.bf16.msra.mxu1 %v6281_v24  ;;  %6328 = vmatprep.subr.bf16.mxu0 %v6327_v33  ;;  %v6329_v24 = vpack.c.bf16 %v4514_v15, %v4513_v57 }
 0xe6a   : > { %6284 = vmatprep.subr.bf16.mxu1 %v6283_v0  ;;  %v4515_v0 = vld [vmem:[%s6965_s26 + $0x160] sm:$0xff] }
 0xe6b   : > { %v6333_v20 = vpack.c.bf16 %v4516_v11, %v4515_v0 }
 0xe6c   : > { %6330 = vmatpush3.bf16.msra.mxu0 %v6329_v24 }
 0xe6d   : > { %6286 = vmatpush3.bf16.msra.mxu1 %v6285_v42  ;;  %v4533_v42 = vld [vmem:[%s6965_s26 + $0x1f0] sm:$0xff]  ;;  %6332 = vmatprep.subr.bf16.mxu0 %v6331_v16 }
 0xe6e   : > { %6288 = vmatprep.subr.bf16.mxu1 %v6287_v22  ;;  %v6335_v39 = vpack.c.bf16 %v4534_v63, %v4533_v42  ;;  %v4517_v22 = vld [vmem:[%s6965_s26 + $0x170] sm:$0xff] }
 0xe6f   : > { %v6337_v50 = vpack.c.bf16 %v4518_v49, %v4517_v22 }
 0xe70   : > { %6334 = vmatpush3.bf16.msra.mxu0 %v6333_v20 }
 0xe71   : > { %6290 = vmatpush3.bf16.msra.mxu1 %v6289_v26  ;;  %6336 = vmatprep.subr.bf16.mxu0 %v6335_v39  ;;  %v882_v26 = vrot.slane %v6854_v55, 2 }
 0xe72   : > { %6292 = vmatprep.subr.bf16.mxu1 %v6291_v61 }
 0xe73   : > { %v8628_v18 = vrot.slane %v882_v26, %v7547_v54 }
 0xe74   : > { %6338 = vmatpush3.bf16.msra.mxu0 %v6337_v50 }
 0xe75   : > { %6294 = vmatpush3.bf16.msra.mxu1 %v6293_v9 }
 0xe76   : > { %6296 = vmatprep.subr.bf16.mxu1 %v6295_v40 }
 0xe79   : > { %6298 = vmatpush3.bf16.msra.mxu1 %v6297_v28 }
 0xe7a   : > { %6300 = vmatprep.subr.bf16.mxu1 %v6299_v5 }
 0xe7d   : > { %6302 = vmatpush3.bf16.msra.mxu1 %v6301_v19 }
 0xe7e   : > { %6304 = vmatprep.subr.bf16.mxu1 %v6303_v36 }
 0xe81   : > { %6306 = vmatpush3.bf16.msra.mxu1 %v6305_v51 }
 0xf00   : > { %v3447_v61 = vpop.f32.mrb[48].mxu1  ;;  %v3560_v31 = vpop.f32.mrb[48].mxu0 }
 0xf01   : > { %v3448_v52 = vadd.f32 %v3447_v61, %v8625_v3  ;;  %v3561_v14 = vadd.f32 %v3560_v31, %v8628_v18  ;;  %v3449_v25 = vpop.f32.mrb[49].mxu1  ;;  %v3562_v9 = vpop.f32.mrb[49].mxu0 }
 0xf02   : > { %v3450_v58 = vadd.f32 %v3449_v25, %v8631_v38  ;;  %v3563_v41 = vadd.f32 %v3562_v9, %v8634_v56 }
 0xf03   : > { %v3639_v32 = vmul.f32 0.70710677, %v3448_v52  ;;  %v3641_v47 = vmul.f32 0.70710677, %v3561_v14  ;;  %v8640_v6 = vmul.f32 0.5, %v3448_v52  ;;  %v8651_v42 = vmul.f32 0.5, %v3561_v14 }
 0xf04   : > { %v3640_v21 = vmul.f32 0.70710677, %v3450_v58  ;;  %v3642_v33 = vmul.f32 0.70710677, %v3563_v41  ;;  %v3453_v46 = vpop.f32.mrb[50].mxu1  ;;  %v3566_v15 = vpop.f32.mrb[50].mxu0 }
 0xf05   : > { %v3735_v37 = vand.u32 2147483647, %v3639_v32  ;;  %v3737_v30 = vand.u32 2147483647, %v3641_v47  ;;  %v3455_v5 = vpop.f32.mrb[51].mxu1  ;;  %v3568_v60 = vpop.f32.mrb[51].mxu0  ;;  %v3454_v19 = vadd.f32 %v3453_v46, %v8625_v3  ;;  %v3567_v39 = vadd.f32 %v3566_v15, %v8628_v18 }
 0xf06   : > { %v3736_v40 = vand.u32 2147483647, %v3640_v21  ;;  %v3738_v7 = vand.u32 2147483647, %v3642_v33  ;;  %vm3671_vm4 = vcmp.ge.f32.partialorder %v3639_v32, 0.0  ;;  %v8655_v8 = vmul.f32 0.5, %v3450_v58 }
 0xf07   : > { %v3767_v34 = vmul.f32 0.3275911, %v3735_v37  ;;  %v4183_v57 = vsub.f32 0.0, %v3735_v37  ;;  %v3769_v28 = vmul.f32 0.3275911, %v3737_v30  ;;  %v4185_v24 = vsub.f32 0.0, %v3737_v30 }
 0xf08   : > { %v8642_v16 = vpop.f32.mrb[52].mxu1  ;;  %v8644_v29 = vpop.f32.mrb[52].mxu0  ;;  %v4184_v11 = vsub.f32 0.0, %v3736_v40  ;;  %v4186_v20 = vsub.f32 0.0, %v3738_v7  ;;  %v3643_v12 = vmul.f32 0.70710677, %v3454_v19  ;;  %v3456_v55 = vadd.f32 %v3455_v5, %v8631_v38 }
 0xf09   : > { %v3799_v10 = vadd.f32 1.0, %v3767_v34  ;;  %v3801_v13 = vadd.f32 1.0, %v3769_v28  ;;  %v4215_v0 = vmul.f32 %v4183_v57, %v3735_v37  ;;  %v8647_v44 = vpop.f32.mrb[53].mxu1  ;;  %v8649_v59 = vpop.f32.mrb[53].mxu0  ;;  %v4217_v63 = vmul.f32 %v4185_v24, %v3737_v30 }
 0xf0a   : > { %vm3673_vm5 = vcmp.ge.f32.partialorder %v3641_v47, 0.0  ;;  %v3768_v51 = vmul.f32 0.3275911, %v3736_v40  ;;  %v8662_v50 = vmul.f32 0.5, %v3563_v41  ;;  %v8669_v62 = vsel %vm3671_vm4, 1.0, %v9466_v23 }
 0xf0b   : > { %6709 = vrcp.f32 %v3799_v10  ;;  %v4247_v61 = vmul.f32 1.442695, %v4215_v0  ;;  %vm3672_vm6 = vcmp.ge.f32.partialorder %v3640_v21, 0.0  ;;  %v4216_v31 = vmul.f32 %v4184_v11, %v3736_v40 }
 0xf0c   : > { %6711 = vrcp.f32 %v3801_v13  ;;  %v8653_v36 = vpop.f32.mrb[54].mxu1  ;;  %v8658_v22 = vpop.f32.mrb[54].mxu0  ;;  %vm3674_vm7 = vcmp.ge.f32.partialorder %v3642_v33, 0.0  ;;  %v3770_v52 = vmul.f32 0.3275911, %v3738_v7  ;;  %v4218_v14 = vmul.f32 %v4186_v20, %v3738_v7 }
 0xf0d   : > { %v8660_v49 = vpop.f32.mrb[55].mxu1  ;;  %v8665_v26 = vpop.f32.mrb[55].mxu0  ;;  %v3645_v25 = vmul.f32 0.70710677, %v3567_v39  ;;  %v4251_v9 = vmul.f32 1.442695, %v4217_v63  ;;  %6713 = vpow2.f32 %v4247_v61  ;;  %v3569_v57 = vadd.f32 %v3568_v60, %v8634_v56 }
 0xf0e   : > { %v3739_v58 = vand.u32 2147483647, %v3643_v12  ;;  %v8677_v30 = vsel %vm3673_vm5, 1.0, %v9466_v23  ;;  %v8680_v32 = vsel %vm3672_vm6, 1.0, %v9466_v23  ;;  %v3800_v46 = vadd.f32 1.0, %v3768_v51 }
 0xf0f   : > { %v3644_v21 = vmul.f32 0.70710677, %v3456_v55  ;;  %v4249_v33 = vmul.f32 1.442695, %v4216_v31  ;;  %v8685_v34 = vsel %vm3674_vm7, 1.0, %v9466_v23  ;;  %v3802_v15 = vadd.f32 1.0, %v3770_v52 }
 0xf10   : > { %v4253_v47 = vmul.f32 1.442695, %v4218_v14  ;;  %vm3675_vm8 = vcmp.ge.f32.partialorder %v3643_v12, 0.0  ;;  %v3741_v10 = vand.u32 2147483647, %v3645_v25  ;;  %6715 = vpow2.f32 %v4251_v9 }
 0xf11   : > { %v8671_v41 = vpop.f32.mrb[56].mxu1  ;;  %v8673_v37 = vpop.f32.mrb[56].mxu0  ;;  %v8692_v24 = vmul.f32 0.5, %v3454_v19  ;;  %v3771_v5 = vmul.f32 0.3275911, %v3739_v58  ;;  %v4187_v7 = vsub.f32 0.0, %v3739_v58  ;;  %6717 = vrcp.f32 %v3800_v46 }
 0xf12   : > { %v8682_v40 = vpop.f32.mrb[57].mxu1  ;;  %v8688_v28 = vpop.f32.mrb[57].mxu0  ;;  %v8701_v63 = vmul.f32 0.5, %v3567_v39  ;;  %v3740_v51 = vand.u32 2147483647, %v3644_v21  ;;  %6719 = vpow2.f32 %v4249_v33  ;;  %v8708_v19 = vsel %vm3675_vm8, 1.0, %v9466_v23 }
 0xf13   : > { %9500 = vst [vmem:[#allocation14_spill] sm:$0xff] %v8692_v24  ;;  %9502 = vst [vmem:[#allocation16_spill] sm:$0xff] %v8708_v19  ;;  %v3646_v52 = vmul.f32 0.70710677, %v3569_v57  ;;  %6721 = vrcp.f32 %v3802_v15  ;;  %v4189_v54 = vsub.f32 0.0, %v3741_v10  ;;  %v8712_v48 = vmul.f32 0.5, %v3456_v55 }
 0xf14   : > { %9501 = vst [vmem:[#allocation15_spill] sm:$0xff] %v8701_v63  ;;  %v3803_v46 = vadd.f32 1.0, %v3771_v5  ;;  %v4219_v53 = vmul.f32 %v4187_v7, %v3739_v58  ;;  %vm3677_vm9 = vcmp.ge.f32.partialorder %v3645_v25, 0.0  ;;  %6723 = vpow2.f32 %v4253_v47 }
 0xf15   : > { %v8690_v13 = vpop.eup %6709  ;;  %v8694_v0 = vpop.f32.mrb[58].mxu1  ;;  %9503 = vst [vmem:[#allocation17_spill] sm:$0xff] %v8712_v48  ;;  %v3773_v33 = vmul.f32 0.3275911, %v3741_v10  ;;  %v3460_v12 = vadd.f32 %v8642_v16, %v8625_v3  ;;  %vm3676_vm10 = vcmp.ge.f32.partialorder %v3644_v21, 0.0  ;;  %v4188_v4 = vsub.f32 0.0, %v3740_v51 }
 0xf16   : > { %v8696_v11 = vpop.f32.mrb[58].mxu0  ;;  %v8698_v20 = vpop.eup %6711  ;;  %v3895_v60 = vmul.f32 1.0614054, %v8690_v13  ;;  %v8719_v55 = vsel %vm3677_vm9, 1.0, %v9504_v35  ;;  %6725 = vrcp.f32 %v3803_v46  ;;  %v4255_v7 = vmul.f32 1.442695, %v4219_v53 }
 0xf17   : > { %v8703_v61 = vpop.f32.mrb[59].mxu1  ;;  %v3897_v31 = vmul.f32 1.0614054, %v8698_v20  ;;  %v8710_v14 = vpop.f32.mrb[59].mxu0  ;;  %9505 = vst [vmem:[#allocation18_spill] sm:$0xff] %v8719_v55  ;;  %v3573_v47 = vadd.f32 %v8644_v29, %v8628_v18  ;;  %v8725_v21 = vsel %vm3676_vm10, 1.0, %v9504_v35  ;;  %v4220_v1 = vmul.f32 %v4188_v4, %v3740_v51 }
 0xf18   : > { %v3927_v9 = vadd.f32 -1.4531521, %v3895_v60  ;;  %v3742_v60 = vand.u32 2147483647, %v3646_v52  ;;  %v3647_v5 = vmul.f32 0.70710677, %v3460_v12  ;;  %v6714_v58 = vpop.eup %6713  ;;  %v3462_v29 = vadd.f32 %v8647_v44, %v8631_v38 }
 0xf19   : > { %v3929_v39 = vadd.f32 -1.4531521, %v3897_v31  ;;  %v4221_v31 = vmul.f32 %v4189_v54, %v3741_v10  ;;  %9506 = vst [vmem:[#allocation19_spill] sm:$0xff] %v8725_v21  ;;  %v8730_v46 = vmul.f32 0.5, %v3569_v57  ;;  %6727 = vpow2.f32 %v4255_v7 }
 0xf1a   : > { %v3959_v2 = vmul.f32 %v8690_v13, %v3927_v9  ;;  %v3805_v9 = vadd.f32 1.0, %v3773_v33  ;;  %v4190_v54 = vsub.f32 0.0, %v3742_v60  ;;  %v3743_v10 = vand.u32 2147483647, %v3647_v5 }
 0xf1b   : > { %v3961_v23 = vmul.f32 %v8698_v20, %v3929_v39  ;;  %v3772_v39 = vmul.f32 0.3275911, %v3740_v51  ;;  %v4259_v53 = vmul.f32 1.442695, %v4221_v31  ;;  %9507 = vst [vmem:[#allocation20_spill] sm:$0xff] %v8730_v46  ;;  %vm3678_vm11 = vcmp.ge.f32.partialorder %v3646_v52, 0.0 }
 0xf1c   : > { %v3991_v15 = vadd.f32 1.4214138, %v3959_v2  ;;  %v6716_v2 = vpop.eup %6715  ;;  %v3774_v17 = vmul.f32 0.3275911, %v3742_v60  ;;  %v3649_v43 = vmul.f32 0.70710677, %v3573_v47  ;;  %6729 = vrcp.f32 %v3805_v9 }
 0xf1d   : > { %v3993_v25 = vadd.f32 1.4214138, %v3961_v23  ;;  %v8728_v45 = vpop.eup %6717  ;;  %v3804_v51 = vadd.f32 1.0, %v3772_v39  ;;  %v4257_v57 = vmul.f32 1.442695, %v4220_v1  ;;  %6731 = vpow2.f32 %v4259_v53 }
 0xf1e   : > { %v4023_v16 = vmul.f32 %v8690_v13, %v3991_v15  ;;  %v8734_v33 = vpop.eup %6719  ;;  %v3648_v7 = vmul.f32 0.70710677, %v3462_v29  ;;  %v8743_v19 = vsel %vm3678_vm11, 1.0, %v9504_v35  ;;  %v3806_v46 = vadd.f32 1.0, %v3774_v17 }
 0xf1f   : > { %v4025_v27 = vmul.f32 %v8698_v20, %v3993_v25  ;;  %v8736_v63 = vpop.eup %6721  ;;  %v4222_v25 = vmul.f32 %v4190_v54, %v3742_v60  ;;  %9508 = vst [vmem:[#allocation21_spill] sm:$0xff] %v8743_v19  ;;  %v3575_v9 = vadd.f32 %v8649_v59, %v8634_v56  ;;  %6733 = vrcp.f32 %v3804_v51 }
 0xf20   : > { %v4055_v23 = vadd.f32 -0.28449672, %v4023_v16  ;;  %v4191_v16 = vsub.f32 0.0, %v3743_v10  ;;  %v8740_v55 = vpop.eup %6723  ;;  %v3775_v1 = vmul.f32 0.3275911, %v3743_v10  ;;  %vm3679_vm12 = vcmp.ge.f32.partialorder %v3647_v5, 0.0 }
 0xf21   : > { %v4057_v15 = vadd.f32 -0.28449672, %v4025_v27  ;;  %v3745_v27 = vand.u32 2147483647, %v3649_v43  ;;  %v3744_v60 = vand.u32 2147483647, %v3648_v7  ;;  %v8748_v39 = vpop.eup %6725  ;;  %6735 = vpow2.f32 %v4257_v57 }
 0xf22   : > { %v4087_v4 = vmul.f32 %v8690_v13, %v4055_v23  ;;  %v4261_v23 = vmul.f32 1.442695, %v4222_v25  ;;  %v4223_v53 = vmul.f32 %v4191_v16, %v3743_v10  ;;  %6737 = vrcp.f32 %v3806_v46 }
 0xf23   : > { %v4089_v31 = vmul.f32 %v8698_v20, %v4057_v15  ;;  %v4193_v17 = vsub.f32 0.0, %v3745_v27  ;;  %v3777_v59 = vmul.f32 0.3275911, %v3745_v27  ;;  %v3650_v48 = vmul.f32 0.70710677, %v3575_v9 }
 0xf24   : > { %v4119_v44 = vadd.f32 0.2548296, %v4087_v4  ;;  %v8751_v4 = vmul.f32 0.5, %v3460_v12  ;;  %v3807_v51 = vadd.f32 1.0, %v3775_v1  ;;  %6739 = vpow2.f32 %v4261_v23 }
 0xf25   : > { %v4121_v24 = vadd.f32 0.2548296, %v4089_v31  ;;  %v8760_v12 = vmul.f32 0.5, %v3573_v47  ;;  %vm3681_vm13 = vcmp.ge.f32.partialorder %v3649_v43, 0.0  ;;  %v8764_v46 = vmul.f32 0.5, %v3462_v29 }
 0xf26   : > { %v4151_v52 = vmul.f32 %v8690_v13, %v4119_v44  ;;  %9509 = vst [vmem:[#allocation22_spill] sm:$0xff] %v8751_v4  ;;  %v8754_v13 = vsel %vm3679_vm12, 1.0, %v9504_v35  ;;  %v4192_v44 = vsub.f32 0.0, %v3744_v60  ;;  %v3746_v57 = vand.u32 2147483647, %v3650_v48 }
 0xf27   : > { %v4153_v54 = vmul.f32 %v8698_v20, %v4121_v24  ;;  %9510 = vst [vmem:[#allocation23_spill] sm:$0xff] %v8754_v13  ;;  %v3466_v24 = vadd.f32 %v8653_v36, %v8625_v3  ;;  %v8758_v20 = vpop.eup %6727  ;;  %9512 = vst [vmem:[#allocation25_spill] sm:$0xff] %v8760_v12  ;;  %v3809_v16 = vadd.f32 1.0, %v3777_v59  ;;  %vm3680_vm14 = vcmp.ge.f32.partialorder %v3648_v7, 0.0 }
 0xf28   : > { %v4311_v15 = vmul.f32 %v6714_v58, %v4151_v52  ;;  %9511 = vst [vmem:[#allocation24_spill] sm:$0xff] %v8758_v20  ;;  %v4263_v58 = vmul.f32 1.442695, %v4223_v53  ;;  %v8762_v10 = vpop.eup %6729  ;;  %9513 = vst [vmem:[#allocation26_spill] sm:$0xff] %v8764_v46  ;;  %v3776_v52 = vmul.f32 0.3275911, %v3744_v60  ;;  %6741 = vrcp.f32 %v3807_v51 }
 0xf29   : > { %v4313_v31 = vmul.f32 %v6716_v2, %v4153_v54  ;;  %v4225_v2 = vmul.f32 %v4193_v17, %v3745_v27  ;;  %v8766_v1 = vpop.eup %6731  ;;  %v4224_v36 = vmul.f32 %v4192_v44, %v3744_v60  ;;  %v8768_v54 = vmul.f32 0.70710677, %v3466_v24 }
 0xf2a   : > { %v4343_v5 = vsub.f32 1.0, %v4311_v15  ;;  %9514 = vst [vmem:[#allocation27_spill] sm:$0xff] %v8766_v1  ;;  %v3579_v47 = vadd.f32 %v8658_v22, %v8628_v18  ;;  %6743 = vpow2.f32 %v4263_v58  ;;  %v8774_v43 = vsel %vm3681_vm13, 1.0, %v9504_v35  ;;  %v8778_v27 = vpop.eup %6733 }
 0xf2b   : > { %v4345_v25 = vsub.f32 1.0, %v4313_v31  ;;  %9515 = vst [vmem:[#allocation28_spill] sm:$0xff] %v8774_v43  ;;  %v3468_v29 = vadd.f32 %v8660_v49, %v8631_v38  ;;  %v4267_v7 = vmul.f32 1.442695, %v4225_v2  ;;  %v8781_v53 = vsel %vm3680_vm14, 1.0, %v9504_v35  ;;  %v8785_v31 = vpop.eup %6735 }
 0xf2c   : > { %v4375_v23 = vmul.f32 %v4343_v5, %v8669_v62  ;;  %9516 = vst [vmem:[#allocation29_spill] sm:$0xff] %v8781_v53  ;;  %v4194_v60 = vsub.f32 0.0, %v3746_v57  ;;  %v3747_v15 = vand.u32 2147483647, %v8768_v54  ;;  %6745 = vrcp.f32 %v3809_v16  ;;  %v8789_v44 = vpop.eup %6737 }
 0xf2d   : > { %v4377_v22 = vmul.f32 %v4345_v25, %v8677_v30  ;;  %v3808_v62 = vadd.f32 1.0, %v3776_v52  ;;  %v3778_v17 = vmul.f32 0.3275911, %v3746_v57  ;;  %v4265_v59 = vmul.f32 1.442695, %v4224_v36 }
 0xf2e   : > { %v8787_v51 = vmul.f32 0.5, %v3575_v9  ;;  %vm3682_vm15 = vcmp.ge.f32.partialorder %v3650_v48, 0.0  ;;  %v3653_v49 = vmul.f32 0.70710677, %v3579_v47  ;;  %v4407_v5 = vadd.f32 1.0, %v4375_v23 }
 0xf2f   : > { %v8791_v58 = vmul.f32 0.5, %v3466_v24  ;;  %v8793_v2 = vmul.f32 0.70710677, %v3468_v29  ;;  %v8797_v30 = vadd.f32 %v8665_v26, %v8634_v56  ;;  %6747 = vpow2.f32 %v4267_v7  ;;  %v8807_v24 = vpop.eup %6739 }
 0xf30   : > { %9517 = vst [vmem:[#allocation30_spill] sm:$0xff] %v8787_v51  ;;  %v4226_v9 = vmul.f32 %v4194_v60, %v3746_v57  ;;  %v4195_v52 = vsub.f32 0.0, %v3747_v15  ;;  %v3749_v36 = vand.u32 2147483647, %v3653_v49  ;;  %9519 = vst [vmem:[#allocation32_spill] sm:$0xff] %v8807_v24  ;;  %v4409_v23 = vadd.f32 1.0, %v4377_v22 }
 0xf31   : > { %9518 = vst [vmem:[#allocation31_spill] sm:$0xff] %v8791_v58  ;;  %6749 = vrcp.f32 %v3808_v62  ;;  %v3810_v58 = vadd.f32 1.0, %v3778_v17  ;;  %v3748_v26 = vand.u32 2147483647, %v8793_v2  ;;  %v8812_v43 = vsel %vm3682_vm15, 1.0, %v9504_v35 }
 0xf32   : > { %6751 = vpow2.f32 %v4265_v59  ;;  %9520 = vst [vmem:[#allocation33_spill] sm:$0xff] %v8812_v43  ;;  %v3779_v7 = vmul.f32 0.3275911, %v3747_v15  ;;  %v8816_v57 = vadd.f32 %v8671_v41, %v8625_v3  ;;  %v8819_v60 = vmul.f32 %v4407_v5, %v8640_v6  ;;  %v8825_v17 = vpop.eup %6741 }
 0xf33   : > { %v8799_v25 = vpop.f32.mrb[60].mxu1  ;;  %v8801_v16 = vpop.f32.mrb[60].mxu0  ;;  %vm3683_vm0 = vcmp.ge.f32.partialorder %v8768_v54, 0.0  ;;  %v4197_v22 = vsub.f32 0.0, %v3749_v36  ;;  %v8823_v62 = vmul.f32 0.70710677, %v8797_v30  ;;  %v4227_v48 = vmul.f32 %v4195_v52, %v3747_v15 }
 0xf34   : > { %v8803_v12 = vpop.f32.mrb[61].mxu1  ;;  %v8805_v4 = vpop.f32.mrb[61].mxu0  ;;  %9521 = vst [vmem:[#allocation34_spill] sm:$0xff] %v8825_v17  ;;  %v4269_v59 = vmul.f32 1.442695, %v4226_v9  ;;  %v8827_v51 = vmul.f32 0.5, %v3579_v47  ;;  %v8836_v6 = vmul.f32 %v4409_v23, %v8651_v42  ;;  %6753 = vrcp.f32 %v3810_v58 }
 0xf35   : > { %v4196_v46 = vsub.f32 0.0, %v3748_v26  ;;  %v8833_v43 = vpop.eup %6743  ;;  %v3781_v5 = vmul.f32 0.3275911, %v3749_v36  ;;  %v3750_v53 = vand.u32 2147483647, %v8823_v62  ;;  %v3811_v47 = vadd.f32 1.0, %v3779_v7 }
 0xf36   : > { %9522 = vst [vmem:[#allocation35_spill] sm:$0xff] %v8827_v51  ;;  %9523 = vst [vmem:[#allocation36_spill] sm:$0xff] %v8833_v43  ;;  %vm3685_vm1 = vcmp.ge.f32.partialorder %v3653_v49, 0.0  ;;  %v3780_v15 = vmul.f32 0.3275911, %v3748_v26  ;;  %v8844_v51 = vpop.eup %6745  ;;  %v8849_v42 = vsel %vm3683_vm0, 1.0, %v9504_v35  ;;  %v4229_v58 = vmul.f32 %v4197_v22, %v3749_v36 }
 0xf37   : > { %v8829_v13 = vpop.f32.mrb[62].mxu1  ;;  %v8831_v41 = vpop.f32.mrb[62].mxu0  ;;  %v3655_v52 = vmul.f32 0.70710677, %v8816_v57  ;;  %9524 = vst [vmem:[#allocation37_spill] sm:$0xff] %v8844_v51  ;;  %9525 = vst [vmem:[#allocation38_spill] sm:$0xff] %v8849_v42  ;;  %v4228_v19 = vmul.f32 %v4196_v46, %v3748_v26  ;;  %v3585_v49 = vadd.f32 %v8673_v37, %v8628_v18  ;;  %6755 = vpow2.f32 %v4269_v59 }
 0xf38   : > { %v8839_v1 = vpop.f32.mrb[63].mxu1  ;;  %v8841_v9 = vpop.f32.mrb[63].mxu0  ;;  %v8851_v23 = vmul.f32 0.5, %v3468_v29  ;;  %v4198_v43 = vsub.f32 0.0, %v3750_v53  ;;  %v4271_v20 = vmul.f32 1.442695, %v4227_v48  ;;  %6757 = vrcp.f32 %v3811_v47 }
 0xf39   : > { %v3751_v21 = vand.u32 2147483647, %v3655_v52  ;;  %v8856_v7 = vsel %vm3685_vm1, 1.0, %v9504_v35  ;;  %v3813_v51 = vadd.f32 1.0, %v3781_v5  ;;  %v3782_v17 = vmul.f32 0.3275911, %v3750_v53  ;;  %v8858_v24 = vpop.eup %6747 }
 0xf3a   : > { %9526 = vst [vmem:[#allocation39_spill] sm:$0xff] %v8851_v23  ;;  %9527 = vst [vmem:[#allocation40_spill] sm:$0xff] %v8856_v7  ;;  %vm3684_vm2 = vcmp.ge.f32.partialorder %v8793_v2, 0.0  ;;  %v3812_v54 = vadd.f32 1.0, %v3780_v15  ;;  %v3657_v29 = vmul.f32 0.70710677, %v3585_v49  ;;  %v4230_v26 = vmul.f32 %v4198_v43, %v3750_v53 }
 0xf3b   : > { %v8861_v36 = vpop.eup %6749  ;;  %v4275_v46 = vmul.f32 1.442695, %v4229_v58  ;;  %v3474_v37 = vadd.f32 %v8682_v40, %v8631_v38  ;;  %v3587_v22 = vadd.f32 %v8688_v28, %v8634_v56  ;;  %6759 = vpow2.f32 %v4271_v20 }
 0xf3c   : > { %v8867_v59 = vpop.eup %6751  ;;  %v4273_v48 = vmul.f32 1.442695, %v4228_v19  ;;  %v4199_v5 = vsub.f32 0.0, %v3751_v21  ;;  %v3753_v47 = vand.u32 2147483647, %v3657_v29  ;;  %6761 = vrcp.f32 %v3813_v51 }
 0xf3d   : > { %v8870_v15 = vmul.f32 0.5, %v8797_v30  ;;  %v3814_v7 = vadd.f32 1.0, %v3782_v17  ;;  %v3656_v42 = vmul.f32 0.70710677, %v3474_v37  ;;  %v8875_v43 = vsel %vm3684_vm2, 1.0, %v9504_v35 }
 0xf3e   : > { %9529 = vst [vmem:[#allocation42_spill] sm:$0xff] %v8875_v43  ;;  %6763 = vrcp.f32 %v3812_v54  ;;  %vm3686_vm3 = vcmp.ge.f32.partialorder %v8823_v62, 0.0  ;;  %v3783_v40 = vmul.f32 0.3275911, %v3751_v21  ;;  %v8878_v28 = vpop.eup %6753  ;;  %v4277_v19 = vmul.f32 1.442695, %v4230_v26 }
 0xf3f   : > { %9528 = vst [vmem:[#allocation41_spill] sm:$0xff] %v8870_v15  ;;  %6765 = vpow2.f32 %v4275_v46  ;;  %v3752_v20 = vand.u32 2147483647, %v3656_v42  ;;  %v3658_v53 = vmul.f32 0.70710677, %v3587_v22  ;;  %vm3687_vm4 = vcmp.ge.f32.partialorder %v3655_v52, 0.0 }
 0xf40   : > { %6767 = vpow2.f32 %v4273_v48  ;;  %v4231_v51 = vmul.f32 %v4199_v5, %v3751_v21  ;;  %v4201_v30 = vsub.f32 0.0, %v3753_v47  ;;  %v8881_v17 = vsel %vm3686_vm3, 1.0, %v9504_v35 }
 0xf41   : > { %9530 = vst [vmem:[#allocation43_spill] sm:$0xff] %v8881_v17  ;;  %6769 = vrcp.f32 %v3814_v7  ;;  %v8884_v2 = vmul.f32 0.5, %v8816_v57  ;;  %v3754_v58 = vand.u32 2147483647, %v3658_v53  ;;  %v3815_v62 = vadd.f32 1.0, %v3783_v40  ;;  %v8888_v26 = vpop.eup %6755 }
 0xf42   : > { %vm3689_vm5 = vcmp.ge.f32.partialorder %v3657_v29, 0.0  ;;  %v3785_v54 = vmul.f32 0.3275911, %v3753_v47  ;;  %v3478_v46 = vadd.f32 %v8694_v0, %v8625_v3  ;;  %6771 = vpow2.f32 %v4277_v19  ;;  %v8895_v7 = vpop.eup %6757 }
 0xf43   : > { %9531 = vst [vmem:[#allocation44_spill] sm:$0xff] %v8884_v2  ;;  %v8891_v21 = vsel %vm3687_vm4, 1.0, %v9504_v35  ;;  %v8893_v52 = vmul.f32 0.5, %v3585_v49  ;;  %v4200_v48 = vsub.f32 0.0, %v3752_v20  ;;  %v4279_v57 = vmul.f32 1.442695, %v4231_v51 }
 0xf44   : > { %9532 = vst [vmem:[#allocation45_spill] sm:$0xff] %v8891_v21  ;;  %v4233_v5 = vmul.f32 %v4201_v30, %v3753_v47  ;;  %v3659_v2 = vmul.f32 0.70710677, %v3478_v46  ;;  %v3591_v29 = vadd.f32 %v8696_v11, %v8628_v18  ;;  %v8900_v40 = vsel %vm3689_vm5, 1.0, %v9504_v35 }
 0xf45   : > { %9533 = vst [vmem:[#allocation46_spill] sm:$0xff] %v8893_v52  ;;  %9534 = vst [vmem:[#allocation47_spill] sm:$0xff] %v8900_v40  ;;  %v8902_v0 = vmul.f32 0.5, %v3474_v37  ;;  %v3784_v19 = vmul.f32 0.3275911, %v3752_v20  ;;  %v4202_v15 = vsub.f32 0.0, %v3754_v58  ;;  %v8904_v17 = vpop.eup %6759  ;;  %6773 = vrcp.f32 %v3815_v62 }
 0xf46   : > { %9536 = vst [vmem:[#allocation49_spill] sm:$0xff] %v8904_v17  ;;  %v3817_v49 = vadd.f32 1.0, %v3785_v54  ;;  %v3755_v52 = vand.u32 2147483647, %v3659_v2  ;;  %v3661_v21 = vmul.f32 0.70710677, %v3591_v29  ;;  %v8906_v23 = vpop.eup %6761  ;;  %v4232_v47 = vmul.f32 %v4200_v48, %v3752_v20 }
 0xf47   : > { %9535 = vst [vmem:[#allocation48_spill] sm:$0xff] %v8902_v0  ;;  %9537 = vst [vmem:[#allocation50_spill] sm:$0xff] %v8906_v23  ;;  %vm3688_vm6 = vcmp.ge.f32.partialorder %v3656_v42, 0.0  ;;  %v8908_v51 = vmul.f32 0.5, %v3587_v22  ;;  %v3480_v11 = vadd.f32 %v8703_v61, %v8631_v38  ;;  %6775 = vpow2.f32 %v4279_v57 }
 0xf48   : > { %v8912_v30 = vpop.eup %6763  ;;  %v4283_v37 = vmul.f32 1.442695, %v4233_v5  ;;  %vm3690_vm7 = vcmp.ge.f32.partialorder %v3658_v53, 0.0  ;;  %v3786_v40 = vmul.f32 0.3275911, %v3754_v58  ;;  %v3816_v62 = vadd.f32 1.0, %v3784_v19 }
 0xf49   : > { %9538 = vst [vmem:[#allocation51_spill] sm:$0xff] %v8908_v51  ;;  %v8914_v0 = vpop.eup %6765  ;;  %v4234_v54 = vmul.f32 %v4202_v15, %v3754_v58  ;;  %v4203_v17 = vsub.f32 0.0, %v3755_v52  ;;  %v3757_v43 = vand.u32 2147483647, %v3661_v21  ;;  %6777 = vrcp.f32 %v3817_v49 }
 0xf4a   : > { %9539 = vst [vmem:[#allocation52_spill] sm:$0xff] %v8914_v0  ;;  %v8916_v23 = vpop.eup %6767  ;;  %v8920_v22 = vsel %vm3688_vm6, 1.0, %v9504_v35  ;;  %v3660_v61 = vmul.f32 0.70710677, %v3480_v11  ;;  %v3593_v20 = vadd.f32 %v8710_v14, %v8634_v56  ;;  %v4281_v53 = vmul.f32 1.442695, %v4232_v47 }
 0xf4b   : > { %9540 = vst [vmem:[#allocation53_spill] sm:$0xff] %v8916_v23  ;;  %9541 = vst [vmem:[#allocation54_spill] sm:$0xff] %v8920_v22  ;;  %v8924_v48 = vpop.eup %6769  ;;  %v8927_v57 = vsel %vm3690_vm7, 1.0, %v9504_v35  ;;  %v3787_v15 = vmul.f32 0.3275911, %v3755_v52  ;;  %v4205_v58 = vsub.f32 0.0, %v3757_v43  ;;  %6779 = vpow2.f32 %v4283_v37 }
 0xf4c   : > { %9542 = vst [vmem:[#allocation55_spill] sm:$0xff] %v8927_v57  ;;  %v3818_v5 = vadd.f32 1.0, %v3786_v40  ;;  %v8929_v19 = vmul.f32 0.5, %v3478_v46  ;;  %v3484_v42 = vadd.f32 %v8799_v25, %v8625_v3  ;;  %v8933_v49 = vpop.eup %6771  ;;  %6781 = vrcp.f32 %v3816_v62 }
 0xf4d   : > { %v4285_v51 = vmul.f32 1.442695, %v4234_v54  ;;  %v4235_v14 = vmul.f32 %v4203_v17, %v3755_v52  ;;  %v3756_v22 = vand.u32 2147483647, %v3660_v61  ;;  %vm3691_vm8 = vcmp.ge.f32.partialorder %v3659_v2, 0.0 }
 0xf4e   : > { %9543 = vst [vmem:[#allocation56_spill] sm:$0xff] %v8929_v19  ;;  %v8935_v47 = vmul.f32 0.5, %v3591_v29  ;;  %v3789_v0 = vmul.f32 0.3275911, %v3757_v43  ;;  %v3662_v57 = vmul.f32 0.70710677, %v3593_v20  ;;  %6783 = vpow2.f32 %v4281_v53 }
 0xf4f   : > { %v3819_v23 = vadd.f32 1.0, %v3787_v15  ;;  %vm3693_vm9 = vcmp.ge.f32.partialorder %v3661_v21, 0.0  ;;  %v4237_v40 = vmul.f32 %v4205_v58, %v3757_v43  ;;  %v8937_v46 = vpop.eup %6773  ;;  %6785 = vrcp.f32 %v3818_v5 }
 0xf50   : > { %9544 = vst [vmem:[#allocation57_spill] sm:$0xff] %v8935_v47  ;;  %vm3692_vm10 = vcmp.ge.f32.partialorder %v3660_v61, 0.0  ;;  %v3663_v25 = vmul.f32 0.70710677, %v3484_v42  ;;  %v3597_v37 = vadd.f32 %v8801_v16, %v8628_v18  ;;  %6787 = vpow2.f32 %v4285_v51 }
 0xf51   : > { %v8942_v17 = vsel %vm3691_vm8, 1.0, %v9504_v35  ;;  %v4287_v2 = vmul.f32 1.442695, %v4235_v14  ;;  %v3788_v52 = vmul.f32 0.3275911, %v3756_v22  ;;  %v8944_v29 = vpop.eup %6775  ;;  %v8947_v62 = vsel %vm3693_vm9, 1.0, %v9504_v35 }
 0xf52   : > { %9545 = vst [vmem:[#allocation58_spill] sm:$0xff] %v8942_v17  ;;  %9546 = vst [vmem:[#allocation59_spill] sm:$0xff] %v8944_v29  ;;  %v3821_v43 = vadd.f32 1.0, %v3789_v0  ;;  %v4204_v21 = vsub.f32 0.0, %v3756_v22  ;;  %v3758_v54 = vand.u32 2147483647, %v3662_v57  ;;  %6789 = vrcp.f32 %v3819_v23 }
 0xf53   : > { %9547 = vst [vmem:[#allocation60_spill] sm:$0xff] %v8947_v62  ;;  %v4291_v61 = vmul.f32 1.442695, %v4237_v40  ;;  %v8949_v53 = vmul.f32 0.5, %v3480_v11  ;;  %v8952_v16 = vsel %vm3692_vm10, 1.0, %v9504_v35  ;;  %v8954_v51 = vpop.eup %6777  ;;  %v8956_v15 = vmul.f32 0.5, %v3593_v20 }
 0xf54   : > { %9549 = vst [vmem:[#allocation62_spill] sm:$0xff] %v8952_v16  ;;  %vm3694_vm11 = vcmp.ge.f32.partialorder %v3662_v57, 0.0  ;;  %v3759_v58 = vand.u32 2147483647, %v3663_v25  ;;  %v8958_v5 = vmul.f32 0.70710677, %v3597_v37  ;;  %6791 = vpow2.f32 %v4287_v2 }
 0xf55   : > { %9548 = vst [vmem:[#allocation61_spill] sm:$0xff] %v8949_v53  ;;  %9550 = vst [vmem:[#allocation63_spill] sm:$0xff] %v8956_v15  ;;  %v3820_v14 = vadd.f32 1.0, %v3788_v52  ;;  %v3896_v0 = vmul.f32 1.0614054, %v8728_v45  ;;  %v8962_v40 = vpop.eup %6779  ;;  %6793 = vrcp.f32 %v3821_v43  ;;  %v4236_v11 = vmul.f32 %v4204_v21, %v3756_v22 }
 0xf56   : > { %v3898_v23 = vmul.f32 1.0614054, %v8736_v63  ;;  %9551 = vst [vmem:[#allocation64_spill] sm:$0xff] %v8962_v40  ;;  %v4206_v47 = vsub.f32 0.0, %v3758_v54  ;;  %v8964_v62 = vmul.f32 0.5, %v3484_v42  ;;  %v8966_v19 = vpop.eup %6781  ;;  %6795 = vpow2.f32 %v4291_v61 }
 0xf57   : > { %v8969_v20 = vsel %vm3694_vm11, 1.0, %v9504_v35  ;;  %v3790_v57 = vmul.f32 0.3275911, %v3758_v54  ;;  %v3928_v2 = vadd.f32 -1.4531521, %v3896_v0  ;;  %vm3695_vm12 = vcmp.ge.f32.partialorder %v3663_v25, 0.0 }
 0xf58   : > { %9552 = vst [vmem:[#allocation65_spill] sm:$0xff] %v8964_v62  ;;  %9553 = vst [vmem:[#allocation66_spill] sm:$0xff] %v8969_v20  ;;  %v4207_v52 = vsub.f32 0.0, %v3759_v58  ;;  %v3761_v17 = vand.u32 2147483647, %v8958_v5  ;;  %v8972_v53 = vpop.eup %6783  ;;  %6797 = vrcp.f32 %v3820_v14  ;;  %v3486_v42 = vadd.f32 %v8803_v12, %v8631_v38 }
 0xf59   : > { %v3930_v15 = vadd.f32 -1.4531521, %v3898_v23  ;;  %9554 = vst [vmem:[#allocation67_spill] sm:$0xff] %v8972_v53  ;;  %v3960_v22 = vmul.f32 %v8728_v45, %v3928_v2  ;;  %v8979_v43 = vadd.f32 %v8805_v4, %v8634_v56  ;;  %v8981_v21 = vpop.eup %6785  ;;  %v4289_v61 = vmul.f32 1.442695, %v4236_v11 }
 0xf5a   : > { %v4238_v25 = vmul.f32 %v4206_v47, %v3758_v54  ;;  %v3791_v0 = vmul.f32 0.3275911, %v3759_v58  ;;  %v8984_v23 = vpop.eup %6787  ;;  %v8987_v14 = vsel %vm3695_vm12, 1.0, %v9504_v35  ;;  %v8989_v2 = vmul.f32 0.5, %v3597_v37 }
 0xf5b   : > { %v3962_v62 = vmul.f32 %v8736_v63, %v3930_v15  ;;  %9555 = vst [vmem:[#allocation68_spill] sm:$0xff] %v8984_v23  ;;  %9556 = vst [vmem:[#allocation69_spill] sm:$0xff] %v8987_v14  ;;  %v3992_v20 = vadd.f32 1.4214138, %v3960_v22  ;;  %v3664_v12 = vmul.f32 0.70710677, %v3486_v42  ;;  %v4239_v40 = vmul.f32 %v4207_v52, %v3759_v58 }
 0xf5c   : > { %9557 = vst [vmem:[#allocation70_spill] sm:$0xff] %v8989_v2  ;;  %v3822_v16 = vadd.f32 1.0, %v3790_v57  ;;  %v4209_v4 = vsub.f32 0.0, %v3761_v17  ;;  %v8991_v53 = vpop.eup %6789  ;;  %v8995_v15 = vmul.f32 0.70710677, %v8979_v43  ;;  %v8999_v11 = vadd.f32 %v8829_v13, %v8625_v3 }
 0xf5d   : > { %v3994_v29 = vadd.f32 1.4214138, %v3962_v62  ;;  %9558 = vst [vmem:[#allocation71_spill] sm:$0xff] %v8991_v53  ;;  %v4024_v47 = vmul.f32 %v8728_v45, %v3992_v20  ;;  %v3760_v54 = vand.u32 2147483647, %v3664_v12  ;;  %6799 = vpow2.f32 %v4289_v61 }
 0xf5e   : > { %9559 = vst [vmem:[#allocation72_spill] sm:$0xff] %v8999_v11  ;;  %v4293_v37 = vmul.f32 1.442695, %v4238_v25  ;;  %v3823_v22 = vadd.f32 1.0, %v3791_v0  ;;  %v9002_v58 = vpop.eup %6791  ;;  %vm3697_vm13 = vcmp.ge.f32.partialorder %v8958_v5, 0.0  ;;  %6801 = vrcp.f32 %v3822_v16 }
 0xf5f   : > { %v4026_v57 = vmul.f32 %v8736_v63, %v3994_v29  ;;  %v3793_v62 = vmul.f32 0.3275911, %v3761_v17  ;;  %v4056_v52 = vadd.f32 -0.28449672, %v4024_v47  ;;  %v4208_v20 = vsub.f32 0.0, %v3760_v54  ;;  %v9005_v2 = vpop.eup %6793 }
 0xf60   : > { %v4295_v14 = vmul.f32 1.442695, %v4239_v40  ;;  %v4241_v53 = vmul.f32 %v4209_v4, %v3761_v17  ;;  %v9007_v3 = vpop.eup %6795  ;;  %v3762_v61 = vand.u32 2147483647, %v8995_v15  ;;  %v9012_v29 = vmul.f32 0.70710677, %v8999_v11 }
 0xf61   : > { %v4058_v23 = vadd.f32 -0.28449672, %v4026_v57  ;;  %v4088_v13 = vmul.f32 %v8728_v45, %v4056_v52  ;;  %v9016_v5 = vadd.f32 %v8831_v41, %v8628_v18  ;;  %6803 = vrcp.f32 %v3823_v22 }
 0xf62   : > { %9560 = vst [vmem:[#allocation73_spill] sm:$0xff] %v9012_v29  ;;  %v9019_v25 = vsel %vm3697_vm13, 1.0, %v9504_v35  ;;  %v3792_v16 = vmul.f32 0.3275911, %v3760_v54  ;;  %v9022_v40 = vpop.eup %6797  ;;  %6805 = vpow2.f32 %v4293_v37  ;;  %v3825_v0 = vadd.f32 1.0, %v3793_v62 }
 0xf63   : > { %9561 = vst [vmem:[#allocation74_spill] sm:$0xff] %v9016_v5  ;;  %9562 = vst [vmem:[#allocation75_spill] sm:$0xff] %v9019_v25  ;;  %v4090_v17 = vmul.f32 %v8736_v63, %v4058_v23  ;;  %v4120_v4 = vadd.f32 0.2548296, %v4088_v13  ;;  %v4240_v47 = vmul.f32 %v4208_v20, %v3760_v54  ;;  %6807 = vpow2.f32 %v4295_v14 }
 0xf64   : > { %v4299_v57 = vmul.f32 1.442695, %v4241_v53  ;;  %vm3696_vm14 = vcmp.ge.f32.partialorder %v3664_v12, 0.0  ;;  %v4210_v41 = vsub.f32 0.0, %v3762_v61  ;;  %v3763_v22 = vand.u32 2147483647, %v9012_v29 }
 0xf65   : > { %v4122_v52 = vadd.f32 0.2548296, %v4090_v17  ;;  %v4152_v18 = vmul.f32 %v8728_v45, %v4120_v4  ;;  %v9027_v11 = vmul.f32 0.70710677, %v9016_v5  ;;  %v9030_v25 = vmul.f32 0.5, %v3486_v42 }
 0xf66   : > { %v3824_v37 = vadd.f32 1.0, %v3792_v16  ;;  %v3900_v62 = vmul.f32 1.0614054, %v8778_v27  ;;  %6809 = vrcp.f32 %v3825_v0  ;;  %v4297_v14 = vmul.f32 1.442695, %v4240_v47 }
 0xf67   : > { %9563 = vst [vmem:[#allocation76_spill] sm:$0xff] %v9027_v11  ;;  %v4154_v23 = vmul.f32 %v8736_v63, %v4122_v52  ;;  %v4312_v53 = vmul.f32 %v8734_v33, %v4152_v18  ;;  %v3794_v54 = vmul.f32 0.3275911, %v3762_v61  ;;  %v9034_v20 = vpop.eup %6799  ;;  %6811 = vpow2.f32 %v4299_v57 }
 0xf68   : > { %v9039_v13 = vsel %vm3696_vm14, 1.0, %v9504_v35  ;;  %v9042_v63 = vmul.f32 0.5, %v8979_v43  ;;  %v4242_v17 = vmul.f32 %v4210_v41, %v3762_v61  ;;  %v4211_v16 = vsub.f32 0.0, %v3763_v22  ;;  %v9045_v33 = vpop.eup %6801 }
 0xf69   : > { %v4314_v45 = vmul.f32 %v8740_v55, %v4154_v23  ;;  %v4344_v42 = vsub.f32 1.0, %v4312_v53  ;;  %v3765_v0 = vand.u32 2147483647, %v9027_v11  ;;  %6813 = vrcp.f32 %v3824_v37 }
 0xf6a   : > { %9564 = vst [vmem:[#allocation77_spill] sm:$0xff] %v9042_v63  ;;  %v3932_v47 = vadd.f32 -1.4531521, %v3900_v62  ;;  %v3902_v57 = vmul.f32 1.0614054, %v8789_v44  ;;  %6815 = vpow2.f32 %v4297_v14  ;;  %v3826_v12 = vadd.f32 1.0, %v3794_v54 }
 0xf6b   : > { %v4346_v4 = vsub.f32 1.0, %v4314_v45  ;;  %v4376_v55 = vmul.f32 %v4344_v42, %v8680_v32  ;;  %v3795_v52 = vmul.f32 0.3275911, %v3763_v22  ;;  %v9049_v18 = vpop.eup %6803  ;;  %vm3698_vm15 = vcmp.ge.f32.partialorder %v8995_v15, 0.0 }
 0xf6c   : > { %v3964_v61 = vmul.f32 %v8778_v27, %v3932_v47  ;;  %v3934_v41 = vadd.f32 -1.4531521, %v3902_v57  ;;  %v9056_v23 = vadd.f32 %v8839_v1, %v8631_v38  ;;  %v9058_v37 = vpop.eup %6805  ;;  %v4301_v32 = vmul.f32 1.442695, %v4242_v17 }
 0xf6d   : > { %v4378_v43 = vmul.f32 %v4346_v4, %v8685_v34  ;;  %v4408_v62 = vadd.f32 1.0, %v4376_v55  ;;  %v4243_v53 = vmul.f32 %v4211_v16, %v3763_v22  ;;  %v9062_v14 = vadd.f32 %v8841_v9, %v8634_v56  ;;  %v9064_v54 = vpop.eup %6807 }
 0xf6e   : > { %9565 = vst [vmem:[#allocation78_spill] sm:$0xff] %v9056_v23  ;;  %v3797_v45 = vmul.f32 0.3275911, %v3765_v0  ;;  %v3996_v42 = vadd.f32 1.4214138, %v3964_v61  ;;  %v3966_v4 = vmul.f32 %v8789_v44, %v3934_v41  ;;  %6817 = vrcp.f32 %v3826_v12 }
 0xf6f   : > { %9566 = vst [vmem:[#allocation79_spill] sm:$0xff] %v9062_v14  ;;  %v4410_v34 = vadd.f32 1.0, %v4378_v43  ;;  %v4440_v47 = vmul.f32 %v4408_v62, %v8655_v8  ;;  %v4213_v38 = vsub.f32 0.0, %v3765_v0  ;;  %v9069_v1 = vmul.f32 0.70710677, %v9056_v23  ;;  %v9574_v23 = vld [vmem:[#allocation21_spill] sm:$0xff] }
 0xf70   : > { %v3827_v17 = vadd.f32 1.0, %v3795_v52  ;;  %v4028_v56 = vmul.f32 %v8778_v27, %v3996_v42  ;;  %v3998_v9 = vadd.f32 1.4214138, %v3966_v4  ;;  %v9073_v16 = vpop.eup %6809  ;;  %6819 = vpow2.f32 %v4301_v32 }
 0xf71   : > { %v4442_v22 = vmul.f32 %v4410_v34, %v8662_v50  ;;  %4599 = vmatprep.mubr.f32.mxu1 %v4440_v47  ;;  %v4303_v57 = vmul.f32 1.442695, %v4243_v53  ;;  %v3764_v55 = vand.u32 2147483647, %v9069_v1  ;;  %v9077_v8 = vmul.f32 0.70710677, %v9062_v14  ;;  %v9079_v12 = vpop.eup %6811 }
 0xf72   : > { %4600 = vmatmul.mubr.f32.vlgmr.msra.gmra.mrb[64].mxu1 %v8819_v60  ;;  %v3829_v50 = vadd.f32 1.0, %v3797_v45  ;;  %v4060_v52 = vadd.f32 -0.28449672, %v4028_v56  ;;  %v4030_v43 = vmul.f32 %v8789_v44, %v3998_v9  ;;  %v3899_v61 = vmul.f32 1.0614054, %v8748_v39  ;;  %v9570_v14 = vld [vmem:[#allocation34_spill] sm:$0xff] }
 0xf73   : > { %9567 = vst [vmem:[#allocation80_spill] sm:$0xff] %v9077_v8  ;;  %4704 = vmatprep.mubr.f32.mxu0 %v4442_v22  ;;  %v4245_v41 = vmul.f32 %v4213_v38, %v3765_v0  ;;  %v3796_v62 = vmul.f32 0.3275911, %v3764_v55  ;;  %v4212_v32 = vsub.f32 0.0, %v3764_v55  ;;  %v3766_v53 = vand.u32 2147483647, %v9077_v8  ;;  %v9086_v34 = vpop.eup %6813 }
 0xf74   : > { %4705 = vmatmul.mubr.f32.vlgmr.msra.gmra.mrb[64].mxu0 %v8836_v6  ;;  %6821 = vrcp.f32 %v3827_v17  ;;  %v4092_v42 = vmul.f32 %v8778_v27, %v4060_v52  ;;  %v4062_v4 = vadd.f32 -0.28449672, %v4030_v43  ;;  %v3931_v60 = vadd.f32 -1.4531521, %v3899_v61  ;;  %v9089_v45 = vpop.eup %6815 }
 0xf75   : > { %6823 = vpow2.f32 %v4303_v57  ;;  %v3828_v47 = vadd.f32 1.0, %v3796_v62  ;;  %v4244_v22 = vmul.f32 %v4212_v32, %v3764_v55  ;;  %v4214_v56 = vsub.f32 0.0, %v3766_v53 }
 0xf76   : > { %v4124_v9 = vadd.f32 0.2548296, %v4092_v42  ;;  %v4094_v6 = vmul.f32 %v8789_v44, %v4062_v4  ;;  %v3963_v0 = vmul.f32 %v8748_v39, %v3931_v60  ;;  %v3901_v38 = vmul.f32 1.0614054, %v8762_v10 }
 0xf77   : > { %v9097_v17 = vsel %vm3698_vm15, 1.0, %v9504_v35  ;;  %6825 = vrcp.f32 %v3829_v50  ;;  %v9099_v52 = vmul.f32 1.442695, %v4245_v41  ;;  %v4246_v43 = vmul.f32 %v4214_v56, %v3766_v53 }
 0xf78   : > { %v4156_v57 = vmul.f32 %v8778_v27, %v4124_v9  ;;  %v4126_v55 = vadd.f32 0.2548296, %v4094_v6  ;;  %v3995_v61 = vadd.f32 1.4214138, %v3963_v0  ;;  %v3933_v62 = vadd.f32 -1.4531521, %v3901_v38  ;;  %v9102_v32 = vpop.eup %6817 }
 0xf79   : > { %9568 = vst [vmem:[#allocation81_spill] sm:$0xff] %v9099_v52  ;;  %6827 = vrcp.f32 %v3828_v47  ;;  %v3798_v42 = vmul.f32 0.3275911, %v3766_v53  ;;  %v3904_v4 = vmul.f32 1.0614054, %v8861_v36  ;;  %v9569_v38 = vld [vmem:[#allocation32_spill] sm:$0xff] }
 0xf7a   : > { %v3906_v60 = vmul.f32 1.0614054, %v8878_v28  ;;  %v4316_v15 = vmul.f32 %v8785_v31, %v4156_v57  ;;  %v4158_v50 = vmul.f32 %v8789_v44, %v4126_v55  ;;  %v9108_v41 = vmul.f32 1.442695, %v4244_v22  ;;  %v9111_v27 = vpop.eup %6819  ;;  %v9571_v55 = vld [vmem:[#allocation37_spill] sm:$0xff] }
 0xf7b   : > { %v4027_v56 = vmul.f32 %v8748_v39, %v3995_v61  ;;  %v9113_v9 = vmul.f32 1.442695, %v4246_v43  ;;  %v3965_v6 = vmul.f32 %v8762_v10, %v3933_v62  ;;  %v3936_v47 = vadd.f32 -1.4531521, %v3904_v4  ;;  %v9572_v43 = vld [vmem:[#allocation19_spill] sm:$0xff] }
 0xf7c   : > { %v3938_v53 = vadd.f32 -1.4531521, %v3906_v60  ;;  %v4348_v0 = vsub.f32 1.0, %v4316_v15  ;;  %v4318_v5 = vmul.f32 %v9569_v38, %v4158_v50  ;;  %v3903_v31 = vmul.f32 1.0614054, %v9570_v14 }
 0xf7d   : > { %v4059_v11 = vadd.f32 -0.28449672, %v4027_v56  ;;  %v3997_v57 = vadd.f32 1.4214138, %v3965_v6  ;;  %v3968_v44 = vmul.f32 %v8861_v36, %v3936_v47  ;;  %v3905_v61 = vmul.f32 1.0614054, %v9571_v55 }
 0xf7e   : > { %v3970_v22 = vmul.f32 %v8878_v28, %v3938_v53  ;;  %v9121_v29 = vpop.eup %6821  ;;  %v4380_v8 = vmul.f32 %v4348_v0, %v9572_v43  ;;  %v4350_v62 = vsub.f32 1.0, %v4318_v5  ;;  %v3935_v60 = vadd.f32 -1.4531521, %v3903_v31  ;;  %v9575_v43 = vld [vmem:[#allocation17_spill] sm:$0xff] }
 0xf7f   : > { %v4091_v4 = vmul.f32 %v8748_v39, %v4059_v11  ;;  %v9125_v15 = vpop.eup %6823  ;;  %v4029_v50 = vmul.f32 %v8762_v10, %v3997_v57  ;;  %v4000_v56 = vadd.f32 1.4214138, %v3968_v44  ;;  %v3937_v38 = vadd.f32 -1.4531521, %v3905_v61 }
 0xf80   : > { %9573 = vst [vmem:[#allocation32_spill] sm:$0xff] %v9125_v15  ;;  %v4002_v6 = vadd.f32 1.4214138, %v3970_v22  ;;  %v4412_v47 = vadd.f32 1.0, %v4380_v8  ;;  %v4382_v53 = vmul.f32 %v4350_v62, %v9574_v23  ;;  %v3967_v35 = vmul.f32 %v9570_v14, %v3935_v60  ;;  %v9577_v15 = vld [vmem:[#allocation24_spill] sm:$0xff] }
 0xf81   : > { %v4123_v52 = vadd.f32 0.2548296, %v4091_v4  ;;  %v9130_v63 = vpop.eup %6825  ;;  %v4061_v0 = vadd.f32 -0.28449672, %v4029_v50  ;;  %v4032_v5 = vmul.f32 %v8861_v36, %v4000_v56  ;;  %v3969_v31 = vmul.f32 %v9571_v55, %v3937_v38  ;;  %v9576_v50 = vld [vmem:[#allocation20_spill] sm:$0xff] }
 0xf82   : > { %v4034_v11 = vmul.f32 %v8878_v28, %v4002_v6  ;;  %v4444_v57 = vmul.f32 %v4412_v47, %v9575_v43  ;;  %v4414_v44 = vadd.f32 1.0, %v4382_v53  ;;  %v3999_v8 = vadd.f32 1.4214138, %v3967_v35 }
 0xf83   : > { %v4155_v22 = vmul.f32 %v8748_v39, %v4123_v52  ;;  %v9137_v61 = vpop.eup %6827  ;;  %v4093_v23 = vmul.f32 %v8762_v10, %v4061_v0  ;;  %v4064_v62 = vadd.f32 -0.28449672, %v4032_v5  ;;  %v4001_v60 = vadd.f32 1.4214138, %v3969_v31 }
 0xf84   : > { %v4066_v4 = vadd.f32 -0.28449672, %v4034_v11  ;;  %4604 = vmatprep.mubr.f32.mxu1 %v4444_v57  ;;  %v4446_v56 = vmul.f32 %v4414_v44, %v9576_v50  ;;  %v4031_v38 = vmul.f32 %v9570_v14, %v3999_v8  ;;  %v3908_v47 = vmul.f32 1.0614054, %v8912_v30  ;;  %v9579_v50 = vld [vmem:[#allocation27_spill] sm:$0xff] }
 0xf85   : > { %v4315_v6 = vmul.f32 %v9577_v15, %v4155_v22  ;;  %v4125_v53 = vadd.f32 0.2548296, %v4093_v23  ;;  %v4096_v39 = vmul.f32 %v8861_v36, %v4064_v62  ;;  %v4033_v52 = vmul.f32 %v9571_v55, %v4001_v60  ;;  %v9578_v22 = vld [vmem:[#allocation16_spill] sm:$0xff] }
 0xf86   : > { %v4098_v35 = vmul.f32 %v8878_v28, %v4066_v4  ;;  %4709 = vmatprep.mubr.f32.mxu0 %v4446_v56  ;;  %v3830_v0 = vadd.f32 1.0, %v3798_v42  ;;  %v4063_v11 = vadd.f32 -0.28449672, %v4031_v38  ;;  %v3940_v31 = vadd.f32 -1.4531521, %v3908_v47 }
 0xf87   : > { %v4347_v5 = vsub.f32 1.0, %v4315_v6  ;;  %v4157_v43 = vmul.f32 %v8762_v10, %v4125_v53  ;;  %v4128_v57 = vadd.f32 0.2548296, %v4096_v39  ;;  %v4065_v44 = vadd.f32 -0.28449672, %v4033_v52 }
 0xf88   : > { %v4130_v15 = vadd.f32 0.2548296, %v4098_v35  ;;  %v4095_v23 = vmul.f32 %v9570_v14, %v4063_v11  ;;  %v3972_v62 = vmul.f32 %v8912_v30, %v3940_v31  ;;  %v3910_v4 = vmul.f32 1.0614054, %v8924_v48 }
 0xf89   : > { %v4379_v8 = vmul.f32 %v4347_v5, %v9578_v22  ;;  %v4317_v60 = vmul.f32 %v9579_v50, %v4157_v43  ;;  %v4160_v42 = vmul.f32 %v8861_v36, %v4128_v57  ;;  %v4097_v6 = vmul.f32 %v9571_v55, %v4065_v44  ;;  %v9580_v5 = vld [vmem:[#allocation14_spill] sm:$0xff]  ;;  %v9582_v22 = vld [vmem:[#allocation36_spill] sm:$0xff]  ;;  %v9583_v50 = vld [vmem:[#allocation29_spill] sm:$0xff] }
 0xf8a   : > { %v4162_v56 = vmul.f32 %v8878_v28, %v4130_v15  ;;  %6829 = vpow2.f32 %v9108_v41  ;;  %v4127_v38 = vadd.f32 0.2548296, %v4095_v23  ;;  %v4004_v47 = vadd.f32 1.4214138, %v3972_v62  ;;  %v9581_v43 = vld [vmem:[#allocation18_spill] sm:$0xff] }
 0xf8b   : > { %v4411_v10 = vadd.f32 1.0, %v4379_v8  ;;  %v4349_v53 = vsub.f32 1.0, %v4317_v60  ;;  %v4320_v39 = vmul.f32 %v8867_v59, %v4160_v42  ;;  %v4129_v52 = vadd.f32 0.2548296, %v4097_v6  ;;  %v9584_v60 = vld [vmem:[#allocation33_spill] sm:$0xff] }
 0xf8c   : > { %v4322_v35 = vmul.f32 %v8888_v26, %v4162_v56  ;;  %v4159_v31 = vmul.f32 %v9570_v14, %v4127_v38  ;;  %v4036_v36 = vmul.f32 %v8912_v30, %v4004_v47  ;;  %v3942_v28 = vadd.f32 -1.4531521, %v3910_v4  ;;  %v9585_v38 = vld [vmem:[#allocation15_spill] sm:$0xff] }
 0xf8d   : > { %v4443_v11 = vmul.f32 %v4411_v10, %v9580_v5  ;;  %v4381_v57 = vmul.f32 %v4349_v53, %v9581_v43  ;;  %v4352_v15 = vsub.f32 1.0, %v4320_v39  ;;  %v4161_v44 = vmul.f32 %v9571_v55, %v4129_v52  ;;  %v9586_v52 = vld [vmem:[#allocation23_spill] sm:$0xff]  ;;  %v9588_v43 = vld [vmem:[#allocation30_spill] sm:$0xff] }
 0xf8e   : > { %v4354_v41 = vsub.f32 1.0, %v4322_v35  ;;  %v4319_v8 = vmul.f32 %v9582_v22, %v4159_v31  ;;  %v4068_v59 = vadd.f32 -0.28449672, %v4036_v36  ;;  %v3974_v26 = vmul.f32 %v8924_v48, %v3942_v28  ;;  %v9587_v28 = vld [vmem:[#allocation26_spill] sm:$0xff] }
 0xf8f   : > { %4605 = vmatmul.mubr.f32.gmra.mrb[66].mxu1 %v4443_v11  ;;  %v3907_v23 = vmul.f32 1.0614054, %v8895_v7  ;;  %v4413_v62 = vadd.f32 1.0, %v4381_v57  ;;  %v4384_v14 = vmul.f32 %v4352_v15, %v9583_v50  ;;  %v4321_v4 = vmul.f32 %v8858_v24, %v4161_v44  ;;  %v9589_v15 = vld [vmem:[#allocation28_spill] sm:$0xff]  ;;  %v9590_v44 = vld [vmem:[#allocation50_spill] sm:$0xff] }
 0xf90   : > { %v4386_v42 = vmul.f32 %v4354_v41, %v9584_v60  ;;  %v4351_v56 = vsub.f32 1.0, %v4319_v8  ;;  %v4100_v6 = vmul.f32 %v8912_v30, %v4068_v59  ;;  %v4006_v10 = vadd.f32 1.4214138, %v3974_v26 }
 0xf91   : > { %v3939_v55 = vadd.f32 -1.4531521, %v3907_v23  ;;  %v4445_v47 = vmul.f32 %v4413_v62, %v9585_v38  ;;  %v4416_v53 = vadd.f32 1.0, %v4384_v14  ;;  %v4353_v35 = vsub.f32 1.0, %v4321_v4  ;;  %v9593_v38 = vld [vmem:[#allocation25_spill] sm:$0xff] }
 0xf92   : > { %v4418_v39 = vadd.f32 1.0, %v4386_v42  ;;  %v4383_v5 = vmul.f32 %v4351_v56, %v9586_v52  ;;  %v4132_v11 = vadd.f32 0.2548296, %v4100_v6  ;;  %v4038_v31 = vmul.f32 %v8924_v48, %v4006_v10  ;;  %v9591_v42 = vld [vmem:[#allocation22_spill] sm:$0xff]  ;;  %v9592_v56 = vld [vmem:[#allocation53_spill] sm:$0xff] }
 0xf93   : > { %v3971_v36 = vmul.f32 %v8895_v7, %v3939_v55  ;;  %4710 = vmatmul.mubr.f32.gmra.mrb[66].mxu0 %v4445_v47  ;;  %v4448_v24 = vmul.f32 %v4416_v53, %v9587_v28  ;;  %v4385_v41 = vmul.f32 %v4353_v35, %v9589_v15  ;;  %v3909_v22 = vmul.f32 1.0614054, %v9590_v44  ;;  %v9594_v28 = vld [vmem:[#allocation42_spill] sm:$0xff] }
 0xf94   : > { %v4450_v57 = vmul.f32 %v4418_v39, %v9588_v43  ;;  %v9179_v8 = vpop.eup %6829  ;;  %v4415_v59 = vadd.f32 1.0, %v4383_v5  ;;  %v4164_v26 = vmul.f32 %v8912_v30, %v4132_v11  ;;  %v4070_v23 = vadd.f32 -0.28449672, %v4038_v31 }
 0xf95   : > { %v4003_v62 = vadd.f32 1.4214138, %v3971_v36  ;;  %6831 = vrcp.f32 %v3830_v0  ;;  %4609 = vmatprep.mubr.f32.mxu1 %v4448_v24  ;;  %v4417_v50 = vadd.f32 1.0, %v4385_v41  ;;  %v3941_v14 = vadd.f32 -1.4531521, %v3909_v22 }
 0xf96   : > { %4714 = vmatprep.mubr.f32.mxu0 %v4450_v57  ;;  %v3912_v60 = vmul.f32 1.0614054, %v8966_v19  ;;  %v4447_v4 = vmul.f32 %v4415_v59, %v9591_v42  ;;  %v4324_v6 = vmul.f32 %v9592_v56, %v4164_v26  ;;  %v4102_v10 = vmul.f32 %v8924_v48, %v4070_v23 }
 0xf97   : > { %v4035_v55 = vmul.f32 %v8895_v7, %v4003_v62  ;;  %v4449_v47 = vmul.f32 %v4417_v50, %v9593_v38  ;;  %v3973_v30 = vmul.f32 %v9590_v44, %v3941_v14  ;;  %v3914_v0 = vmul.f32 1.0614054, %v8981_v21 }
 0xf98   : > { %v3944_v53 = vadd.f32 -1.4531521, %v3912_v60  ;;  %6833 = vpow2.f32 %v9113_v9  ;;  %4610 = vmatmul.mubr.f32.gmra.mrb[68].mxu1 %v4447_v4  ;;  %v4356_v39 = vsub.f32 1.0, %v4324_v6  ;;  %v4134_v35 = vadd.f32 0.2548296, %v4102_v10  ;;  %v9595_v4 = vld [vmem:[#allocation39_spill] sm:$0xff] }
 0xf99   : > { %v4067_v52 = vadd.f32 -0.28449672, %v4035_v55  ;;  %4715 = vmatmul.mubr.f32.gmra.mrb[68].mxu0 %v4449_v47  ;;  %v4005_v5 = vadd.f32 1.4214138, %v3973_v30  ;;  %v3946_v31 = vadd.f32 -1.4531521, %v3914_v0 }
 0xf9a   : > { %v3976_v11 = vmul.f32 %v8966_v19, %v3944_v53  ;;  %v3911_v36 = vmul.f32 1.0614054, %v8937_v46  ;;  %v4388_v24 = vmul.f32 %v4356_v39, %v9594_v28  ;;  %v4166_v43 = vmul.f32 %v8924_v48, %v4134_v35  ;;  %v9596_v0 = vld [vmem:[#allocation43_spill] sm:$0xff]  ;;  %v9597_v35 = vld [vmem:[#allocation49_spill] sm:$0xff] }
 0xf9b   : > { %v4099_v57 = vmul.f32 %v8895_v7, %v4067_v52  ;;  %v3913_v15 = vmul.f32 1.0614054, %v8954_v51  ;;  %v4037_v9 = vmul.f32 %v9590_v44, %v4005_v5  ;;  %v3978_v22 = vmul.f32 %v8981_v21, %v3946_v31 }
 0xf9c   : > { %v4008_v41 = vadd.f32 1.4214138, %v3976_v11  ;;  %v3943_v59 = vadd.f32 -1.4531521, %v3911_v36  ;;  %v4420_v26 = vadd.f32 1.0, %v4388_v24  ;;  %v4326_v23 = vmul.f32 %v8933_v49, %v4166_v43 }
 0xf9d   : > { %v4131_v62 = vadd.f32 0.2548296, %v4099_v57  ;;  %v3945_v50 = vadd.f32 -1.4531521, %v3913_v15  ;;  %v4069_v14 = vadd.f32 -0.28449672, %v4037_v9 }
 0xf9e   : > { %v4040_v60 = vmul.f32 %v8966_v19, %v4008_v41  ;;  %v4010_v42 = vadd.f32 1.4214138, %v3978_v22  ;;  %v3975_v48 = vmul.f32 %v8937_v46, %v3943_v59  ;;  %v4452_v56 = vmul.f32 %v4420_v26, %v9595_v4 }
 0xf9f   : > { %v4358_v6 = vsub.f32 1.0, %v4326_v23  ;;  %v4163_v10 = vmul.f32 %v8895_v7, %v4131_v62  ;;  %v3977_v55 = vmul.f32 %v8954_v51, %v3945_v50  ;;  %v9205_v38 = vpop.eup %6831  ;;  %v4101_v47 = vmul.f32 %v9590_v44, %v4069_v14  ;;  %v9598_v23 = vld [vmem:[#allocation41_spill] sm:$0xff]  ;;  %v9599_v50 = vld [vmem:[#allocation38_spill] sm:$0xff] }
 0xfa0   : > { %v4072_v49 = vadd.f32 -0.28449672, %v4040_v60  ;;  %v4042_v30 = vmul.f32 %v8981_v21, %v4010_v42  ;;  %v4007_v53 = vadd.f32 1.4214138, %v3975_v48  ;;  %4614 = vmatprep.mubr.f32.mxu1 %v4452_v56  ;;  %v3916_v11 = vmul.f32 1.0614054, %v9022_v40 }
 0xfa1   : > { %v4390_v39 = vmul.f32 %v4358_v6, %v9596_v0  ;;  %v4323_v52 = vmul.f32 %v9597_v35, %v4163_v10  ;;  %v4009_v5 = vadd.f32 1.4214138, %v3977_v55  ;;  %v4133_v31 = vadd.f32 0.2548296, %v4101_v47  ;;  %v9600_v48 = vld [vmem:[#allocation52_spill] sm:$0xff] }
 0xfa2   : > { %v4104_v7 = vmul.f32 %v8966_v19, %v4072_v49  ;;  %v4074_v36 = vadd.f32 -0.28449672, %v4042_v30  ;;  %v4039_v28 = vmul.f32 %v8937_v46, %v4007_v53  ;;  %v9214_v24 = vpop.eup %6833  ;;  %v3948_v9 = vadd.f32 -1.4531521, %v3916_v11  ;;  %v9601_v53 = vld [vmem:[#allocation67_spill] sm:$0xff] }
 0xfa3   : > { %v4422_v43 = vadd.f32 1.0, %v4390_v39  ;;  %v4355_v57 = vsub.f32 1.0, %v4323_v52  ;;  %v4041_v15 = vmul.f32 %v8954_v51, %v4009_v5  ;;  %v4165_v41 = vmul.f32 %v9590_v44, %v4133_v31  ;;  %v9602_v52 = vld [vmem:[#allocation31_spill] sm:$0xff] }
 0xfa4   : > { %v4136_v22 = vadd.f32 0.2548296, %v4104_v7  ;;  %v4106_v59 = vmul.f32 %v8981_v21, %v4074_v36  ;;  %v4071_v26 = vadd.f32 -0.28449672, %v4039_v28  ;;  %v3980_v42 = vmul.f32 %v9022_v40, %v3948_v9  ;;  %v9603_v7 = vld [vmem:[#allocation40_spill] sm:$0xff] }
 0xfa5   : > { %v4454_v62 = vmul.f32 %v4422_v43, %v9598_v23  ;;  %v4387_v14 = vmul.f32 %v4355_v57, %v9599_v50  ;;  %v4073_v60 = vadd.f32 -0.28449672, %v4041_v15  ;;  %v4325_v4 = vmul.f32 %v9600_v48, %v4165_v41  ;;  %v9604_v43 = vld [vmem:[#allocation68_spill] sm:$0xff]  ;;  %v9606_v23 = vld [vmem:[#allocation54_spill] sm:$0xff] }
 0xfa6   : > { %v4168_v56 = vmul.f32 %v8966_v19, %v4136_v22  ;;  %v4138_v6 = vadd.f32 0.2548296, %v4106_v59  ;;  %v4103_v10 = vmul.f32 %v8937_v46, %v4071_v26  ;;  %v4012_v47 = vadd.f32 1.4214138, %v3980_v42  ;;  %v9605_v22 = vld [vmem:[#allocation71_spill] sm:$0xff]  ;;  %v9608_v42 = vld [vmem:[#allocation64_spill] sm:$0xff] }
 0xfa7   : > { %4719 = vmatprep.mubr.f32.mxu0 %v4454_v62  ;;  %v4419_v44 = vadd.f32 1.0, %v4387_v14  ;;  %v4105_v55 = vmul.f32 %v8954_v51, %v4073_v60  ;;  %v3918_v49 = vmul.f32 1.0614054, %v9045_v33  ;;  %v4357_v30 = vsub.f32 1.0, %v4325_v4  ;;  %v9607_v14 = vld [vmem:[#allocation59_spill] sm:$0xff] }
 0xfa8   : > { %v4328_v0 = vmul.f32 %v9601_v53, %v4168_v56  ;;  %v4170_v39 = vmul.f32 %v8981_v21, %v4138_v6  ;;  %v4135_v35 = vadd.f32 0.2548296, %v4103_v10  ;;  %v4044_v19 = vmul.f32 %v9022_v40, %v4012_v47  ;;  %v9609_v6 = vld [vmem:[#allocation35_spill] sm:$0xff] }
 0xfa9   : > { %v4451_v5 = vmul.f32 %v4419_v44, %v9602_v52  ;;  %v4137_v11 = vadd.f32 0.2548296, %v4105_v55  ;;  %v3950_v31 = vadd.f32 -1.4531521, %v3918_v49  ;;  %v4389_v36 = vmul.f32 %v4357_v30, %v9603_v7  ;;  %v9610_v44 = vld [vmem:[#allocation55_spill] sm:$0xff] }
 0xfaa   : > { %v4360_v28 = vsub.f32 1.0, %v4328_v0  ;;  %v4330_v57 = vmul.f32 %v9604_v43, %v4170_v39  ;;  %v4167_v15 = vmul.f32 %v8937_v46, %v4135_v35  ;;  %v4076_v41 = vadd.f32 -0.28449672, %v4044_v19  ;;  %v9611_v39 = vld [vmem:[#allocation48_spill] sm:$0xff] }
 0xfab   : > { %4615 = vmatmul.mubr.f32.gmra.mrb[70].mxu1 %v4451_v5  ;;  %v4169_v9 = vmul.f32 %v8954_v51, %v4137_v11  ;;  %v3982_v21 = vmul.f32 %v9045_v33, %v3950_v31  ;;  %v3915_v59 = vmul.f32 1.0614054, %v9605_v22  ;;  %v4421_v26 = vadd.f32 1.0, %v4389_v36  ;;  %v9612_v5 = vld [vmem:[#allocation45_spill] sm:$0xff]  ;;  %v9613_v31 = vld [vmem:[#allocation47_spill] sm:$0xff] }
 0xfac   : > { %v4392_v62 = vmul.f32 %v4360_v28, %v9606_v23  ;;  %v4362_v50 = vsub.f32 1.0, %v4330_v57  ;;  %v4327_v60 = vmul.f32 %v9607_v14, %v4167_v15  ;;  %v4108_v4 = vmul.f32 %v9022_v40, %v4076_v41  ;;  %v9614_v57 = vld [vmem:[#allocation51_spill] sm:$0xff] }
 0xfad   : > { %v4329_v48 = vmul.f32 %v9608_v42, %v4169_v9  ;;  %v4014_v56 = vadd.f32 1.4214138, %v3982_v21  ;;  %v3947_v46 = vadd.f32 -1.4531521, %v3915_v59  ;;  %v4453_v10 = vmul.f32 %v4421_v26, %v9609_v6 }
 0xfae   : > { %v4424_v51 = vadd.f32 1.0, %v4392_v62  ;;  %v4394_v55 = vmul.f32 %v4362_v50, %v9610_v44  ;;  %v4359_v47 = vsub.f32 1.0, %v4327_v60  ;;  %v4140_v30 = vadd.f32 0.2548296, %v4108_v4  ;;  %v9615_v50 = vld [vmem:[#allocation44_spill] sm:$0xff] }
 0xfaf   : > { %v4361_v49 = vsub.f32 1.0, %v4329_v48  ;;  %v4046_v53 = vmul.f32 %v9045_v33, %v4014_v56  ;;  %v3979_v0 = vmul.f32 %v9605_v22, %v3947_v46  ;;  %4720 = vmatmul.mubr.f32.gmra.mrb[70].mxu0 %v4453_v10  ;;  %v3917_v19 = vmul.f32 1.0614054, %v9005_v2  ;;  %v9616_v48 = vld [vmem:[#allocation46_spill] sm:$0xff] }
 0xfb0   : > { %v4456_v35 = vmul.f32 %v4424_v51, %v9611_v39  ;;  %v4426_v52 = vadd.f32 1.0, %v4394_v55  ;;  %v4391_v11 = vmul.f32 %v4359_v47, %v9612_v5  ;;  %v4172_v36 = vmul.f32 %v9022_v40, %v4140_v30  ;;  %v9617_v55 = vld [vmem:[#allocation62_spill] sm:$0xff] }
 0xfb1   : > { %v4393_v7 = vmul.f32 %v4361_v49, %v9613_v31  ;;  %v4078_v28 = vadd.f32 -0.28449672, %v4046_v53  ;;  %v4011_v43 = vadd.f32 1.4214138, %v3979_v0  ;;  %v3949_v41 = vadd.f32 -1.4531521, %v3917_v19 }
 0xfb2   : > { %4619 = vmatprep.mubr.f32.mxu1 %v4456_v35  ;;  %v4458_v15 = vmul.f32 %v4426_v52, %v9614_v57  ;;  %v4423_v9 = vadd.f32 1.0, %v4391_v11  ;;  %v3920_v21 = vmul.f32 1.0614054, %v9086_v34  ;;  %v4332_v26 = vmul.f32 %v9034_v20, %v4172_v36 }
 0xfb3   : > { %v4425_v59 = vadd.f32 1.0, %v4393_v7  ;;  %v4110_v23 = vmul.f32 %v9045_v33, %v4078_v28  ;;  %v4043_v62 = vmul.f32 %v9605_v22, %v4011_v43  ;;  %v3981_v40 = vmul.f32 %v9005_v2, %v3949_v41  ;;  %v9618_v43 = vld [vmem:[#allocation61_spill] sm:$0xff] }
 0xfb4   : > { %4724 = vmatprep.mubr.f32.mxu0 %v4458_v15  ;;  %v4455_v14 = vmul.f32 %v4423_v9, %v9615_v50  ;;  %v3952_v60 = vadd.f32 -1.4531521, %v3920_v21  ;;  %v3922_v42 = vmul.f32 1.0614054, %v9102_v32  ;;  %v4364_v56 = vsub.f32 1.0, %v4332_v26 }
 0xfb5   : > { %v4457_v4 = vmul.f32 %v4425_v59, %v9616_v48  ;;  %v4142_v46 = vadd.f32 0.2548296, %v4110_v23  ;;  %v4075_v6 = vadd.f32 -0.28449672, %v4043_v62  ;;  %v4013_v10 = vadd.f32 1.4214138, %v3981_v40 }
 0xfb6   : > { %4620 = vmatmul.mubr.f32.gmra.mrb[72].mxu1 %v4455_v14  ;;  %v3984_v20 = vmul.f32 %v9086_v34, %v3952_v60  ;;  %v3954_v51 = vadd.f32 -1.4531521, %v3922_v42  ;;  %v3919_v44 = vmul.f32 1.0614054, %v9049_v18  ;;  %v4396_v47 = vmul.f32 %v4364_v56, %v9617_v55  ;;  %v9619_v23 = vld [vmem:[#allocation66_spill] sm:$0xff] }
 0xfb7   : > { %4725 = vmatmul.mubr.f32.gmra.mrb[72].mxu0 %v4457_v4  ;;  %v4174_v49 = vmul.f32 %v9045_v33, %v4142_v46  ;;  %v4107_v30 = vmul.f32 %v9605_v22, %v4075_v6  ;;  %v3921_v53 = vmul.f32 1.0614054, %v9073_v16  ;;  %v4045_v0 = vmul.f32 %v9005_v2, %v4013_v10 }
 0xfb8   : > { %v4016_v39 = vadd.f32 1.4214138, %v3984_v20  ;;  %v3986_v35 = vmul.f32 %v9102_v32, %v3954_v51  ;;  %v3951_v52 = vadd.f32 -1.4531521, %v3919_v44  ;;  %v4428_v5 = vadd.f32 1.0, %v4396_v47  ;;  %v9620_v44 = vld [vmem:[#allocation63_spill] sm:$0xff] }
 0xfb9   : > { %v4334_v11 = vmul.f32 %v9058_v37, %v4174_v49  ;;  %v4139_v19 = vadd.f32 0.2548296, %v4107_v30  ;;  %v3953_v31 = vadd.f32 -1.4531521, %v3921_v53  ;;  %v4077_v7 = vadd.f32 -0.28449672, %v4045_v0 }
 0xfba   : > { %v4048_v36 = vmul.f32 %v9086_v34, %v4016_v39  ;;  %v4018_v28 = vadd.f32 1.4214138, %v3986_v35  ;;  %v3983_v33 = vmul.f32 %v9049_v18, %v3951_v52  ;;  %v4460_v57 = vmul.f32 %v4428_v5, %v9618_v43  ;;  %v9621_v47 = vld [vmem:[#allocation58_spill] sm:$0xff] }
 0xfbb   : > { %v4366_v15 = vsub.f32 1.0, %v4334_v11  ;;  %v4171_v9 = vmul.f32 %v9605_v22, %v4139_v19  ;;  %v3985_v41 = vmul.f32 %v9073_v16, %v3953_v31  ;;  %v4109_v21 = vmul.f32 %v9005_v2, %v4077_v7 }
 0xfbc   : > { %v4080_v59 = vadd.f32 -0.28449672, %v4048_v36  ;;  %v4050_v37 = vmul.f32 %v9102_v32, %v4018_v28  ;;  %v4015_v26 = vadd.f32 1.4214138, %v3983_v33  ;;  %4624 = vmatprep.mubr.f32.mxu1 %v4460_v57  ;;  %v3924_v40 = vmul.f32 1.0614054, %v9137_v61 }
 0xfbd   : > { %v4398_v62 = vmul.f32 %v4366_v15, %v9619_v23  ;;  %v4331_v50 = vmul.f32 %v9002_v58, %v4171_v9  ;;  %v4017_v14 = vadd.f32 1.4214138, %v3985_v41  ;;  %v4141_v60 = vadd.f32 0.2548296, %v4109_v21  ;;  %v9622_v33 = vld [vmem:[#allocation56_spill] sm:$0xff] }
 0xfbe   : > { %v4112_v42 = vmul.f32 %v9086_v34, %v4080_v59  ;;  %v4082_v22 = vadd.f32 -0.28449672, %v4050_v37  ;;  %v4047_v48 = vmul.f32 %v9049_v18, %v4015_v26  ;;  %v3956_v6 = vadd.f32 -1.4531521, %v3924_v40  ;;  %v9623_v15 = vld [vmem:[#allocation60_spill] sm:$0xff] }
 0xfbf   : > { %v4430_v4 = vadd.f32 1.0, %v4398_v62  ;;  %v4363_v56 = vsub.f32 1.0, %v4331_v50  ;;  %v4049_v46 = vmul.f32 %v9073_v16, %v4017_v14  ;;  %v4173_v10 = vmul.f32 %v9005_v2, %v4141_v60 }
 0xfc0   : > { %v4144_v20 = vadd.f32 0.2548296, %v4112_v42  ;;  %v4114_v51 = vmul.f32 %v9102_v32, %v4082_v22  ;;  %v4079_v58 = vadd.f32 -0.28449672, %v4047_v48  ;;  %v3988_v53 = vmul.f32 %v9137_v61, %v3956_v6  ;;  %v9624_v42 = vld [vmem:[#allocation57_spill] sm:$0xff] }
 0xfc1   : > { %v4462_v55 = vmul.f32 %v4430_v4, %v9620_v44  ;;  %v4395_v49 = vmul.f32 %v4363_v56, %v9621_v47  ;;  %v4081_v30 = vadd.f32 -0.28449672, %v4049_v46  ;;  %v4333_v0 = vmul.f32 %v9007_v3, %v4173_v10  ;;  %v9625_v10 = vld [vmem:[#allocation69_spill] sm:$0xff] }
 0xfc2   : > { %v4176_v39 = vmul.f32 %v9086_v34, %v4144_v20  ;;  %v4146_v35 = vadd.f32 0.2548296, %v4114_v51  ;;  %v4111_v52 = vmul.f32 %v9049_v18, %v4079_v58  ;;  %v4020_v11 = vadd.f32 1.4214138, %v3988_v53  ;;  %v9626_v58 = vld [vmem:[#allocation75_spill] sm:$0xff] }
 0xfc3   : > { %4729 = vmatprep.mubr.f32.mxu0 %v4462_v55  ;;  %v4427_v2 = vadd.f32 1.0, %v4395_v49  ;;  %v4113_v5 = vmul.f32 %v9073_v16, %v4081_v30  ;;  %v3926_v19 = vmul.f32 1.0614054, %v9205_v38  ;;  %v4365_v31 = vsub.f32 1.0, %v4333_v0  ;;  %v9627_v49 = vld [vmem:[#allocation77_spill] sm:$0xff] }
 0xfc4   : > { %v4336_v7 = vmul.f32 %v9089_v45, %v4176_v39  ;;  %v4178_v36 = vmul.f32 %v9102_v32, %v4146_v35  ;;  %v4143_v28 = vadd.f32 0.2548296, %v4111_v52  ;;  %v4052_v34 = vmul.f32 %v9137_v61, %v4020_v11  ;;  %v9629_v11 = vld [vmem:[#allocation70_spill] sm:$0xff] }
 0xfc5   : > { %v4459_v3 = vmul.f32 %v4427_v2, %v9622_v33  ;;  %v4145_v43 = vadd.f32 0.2548296, %v4113_v5  ;;  %v3958_v57 = vadd.f32 -1.4531521, %v3926_v19  ;;  %v4397_v9 = vmul.f32 %v4365_v31, %v9623_v15  ;;  %v9628_v2 = vld [vmem:[#allocation65_spill] sm:$0xff]  ;;  %v9632_v15 = vld [vmem:[#allocation78_spill] sm:$0xff] }
 0xfc6   : > { %v4368_v41 = vsub.f32 1.0, %v4336_v7  ;;  %v4338_v21 = vmul.f32 %v9111_v27, %v4178_v36  ;;  %v4175_v59 = vmul.f32 %v9049_v18, %v4143_v28  ;;  %v4084_v45 = vadd.f32 -0.28449672, %v4052_v34 }
 0xfc7   : > { %4625 = vmatmul.mubr.f32.gmra.mrb[74].mxu1 %v4459_v3  ;;  %v4177_v37 = vmul.f32 %v9073_v16, %v4145_v43  ;;  %v3990_v32 = vmul.f32 %v9205_v38, %v3958_v57  ;;  %v3923_v26 = vmul.f32 1.0614054, %v9121_v29  ;;  %v4429_v23 = vadd.f32 1.0, %v4397_v9  ;;  %v9631_v3 = vld [vmem:[#allocation81_spill] sm:$0xff] }
 0xfc8   : > { %v4400_v62 = vmul.f32 %v4368_v41, %v9039_v13  ;;  %v4370_v50 = vsub.f32 1.0, %v4338_v21  ;;  %v4335_v14 = vmul.f32 %v9064_v54, %v4175_v59  ;;  %v4116_v27 = vmul.f32 %v9137_v61, %v4084_v45  ;;  %v9633_v21 = vld [vmem:[#allocation80_spill] sm:$0xff] }
 0xfc9   : > { %v4337_v40 = vmul.f32 %v9079_v12, %v4177_v37  ;;  %v4022_v60 = vadd.f32 1.4214138, %v3990_v32  ;;  %v3955_v18 = vadd.f32 -1.4531521, %v3923_v26  ;;  %v4461_v22 = vmul.f32 %v4429_v23, %v9624_v42 }
 0xfca   : > { %v4432_v16 = vadd.f32 1.0, %v4400_v62  ;;  %v4402_v48 = vmul.f32 %v4370_v50, %v9097_v17  ;;  %v4367_v4 = vsub.f32 1.0, %v4335_v14  ;;  %v4148_v46 = vadd.f32 0.2548296, %v4116_v27  ;;  %v9634_v50 = vld [vmem:[#allocation73_spill] sm:$0xff] }
 0xfcb   : > { %v4369_v56 = vsub.f32 1.0, %v4337_v40  ;;  %v4054_v6 = vmul.f32 %v9205_v38, %v4022_v60  ;;  %v3987_v13 = vmul.f32 %v9121_v29, %v3955_v18  ;;  %4730 = vmatmul.mubr.f32.gmra.mrb[74].mxu0 %v4461_v22  ;;  %v3925_v51 = vmul.f32 1.0614054, %v9130_v63  ;;  %v9635_v40 = vld [vmem:[#allocation32_spill] sm:$0xff]  ;;  %v9636_v18 = vld [vmem:[#allocation79_spill] sm:$0xff] }
 0xfcc   : > { %v4464_v54 = vmul.f32 %v4432_v16, %v9030_v25  ;;  %v4434_v12 = vadd.f32 1.0, %v4402_v48  ;;  %v4399_v20 = vmul.f32 %v4367_v4, %v9625_v10  ;;  %v4180_v55 = vmul.f32 %v9137_v61, %v4148_v46  ;;  %v9637_v46 = vld [vmem:[#allocation76_spill] sm:$0xff] }
 0xfcd   : > { %v4401_v44 = vmul.f32 %v4369_v56, %v9626_v58  ;;  %v4086_v17 = vadd.f32 -0.28449672, %v4054_v6  ;;  %v4019_v47 = vadd.f32 1.4214138, %v3987_v13  ;;  %vm3700_vm0 = vcmp.ge.f32.partialorder %v9069_v1, 0.0  ;;  %v9638_v13 = vld [vmem:[#allocation72_spill] sm:$0xff] }
 0xfce   : > { %4629 = vmatprep.mubr.f32.mxu1 %v4464_v54  ;;  %v4466_v30 = vmul.f32 %v4434_v12, %v9627_v49  ;;  %v4431_v53 = vadd.f32 1.0, %v4399_v20  ;;  %v3957_v0 = vadd.f32 -1.4531521, %v3925_v51  ;;  %v4340_v25 = vmul.f32 %v9179_v8, %v4180_v55 }
 0xfcf   : > { %v4433_v39 = vadd.f32 1.0, %v4401_v44  ;;  %v4118_v35 = vmul.f32 %v9205_v38, %v4086_v17  ;;  %v4051_v52 = vmul.f32 %v9121_v29, %v4019_v47  ;;  %v9630_v28 = vmov -1.0   ;;  %v9639_v44 = vld [vmem:[#allocation74_spill] sm:$0xff] }
 0xfd0   : > { %4734 = vmatprep.mubr.f32.mxu0 %v4466_v30  ;;  %v4463_v5 = vmul.f32 %v4431_v53, %v9628_v2  ;;  %v3989_v61 = vmul.f32 %v9130_v63, %v3957_v0  ;;  %v4372_v31 = vsub.f32 1.0, %v4340_v25  ;;  %v3732_v33 = vsel %vm3700_vm0, 1.0, %v9630_v28  ;;  %v9640_v53 = vld [vmem:[#allocation3_spill] sm:$0xff] }
 0xfd1   : > { %v4465_v19 = vmul.f32 %v4433_v39, %v9629_v11  ;;  %v4150_v7 = vadd.f32 0.2548296, %v4118_v35  ;;  %v4083_v36 = vadd.f32 -0.28449672, %v4051_v52  ;;  %6835 = vpow2.f32 %v9631_v3  ;;  %v6855_v2 = vld [vmem:[%s6970_s13] sm:$0xff] }
 0xfd2   : > { %4630 = vmatmul.mubr.f32.gmra.mrb[76].mxu1 %v4463_v5  ;;  %v4021_v8 = vadd.f32 1.4214138, %v3989_v61  ;;  %v4404_v43 = vmul.f32 %v4372_v31, %v3732_v33  ;;  %v3636_v9 = vmul.f32 0.5, %v9632_v15  ;;  %vm3702_vm1 = vcmp.ge.f32.partialorder %v9633_v21, 0.0  ;;  %v9641_v61 = vld [vmem:[#allocation7_spill] sm:$0xff] }
 0xfd3   : > { %4735 = vmatmul.mubr.f32.gmra.mrb[76].mxu0 %v4465_v19  ;;  %v4182_v34 = vmul.f32 %v9205_v38, %v4150_v7  ;;  %v4115_v57 = vmul.f32 %v9121_v29, %v4083_v36  ;;  %v3734_v62 = vsel %vm3702_vm1, 1.0, %v9630_v28  ;;  %vm3699_vm2 = vcmp.ge.f32.partialorder %v9634_v50, 0.0 }
 0xfd4   : > { %v4053_v41 = vmul.f32 %v9130_v63, %v4021_v8  ;;  %v4436_v59 = vadd.f32 1.0, %v4404_v43  ;;  %v3638_v42 = vmul.f32 0.5, %v9636_v18  ;;  %v3731_v16 = vsel %vm3699_vm2, 1.0, %v9630_v28 }
 0xfd5   : > { %v4342_v1 = vmul.f32 %v9214_v24, %v4182_v34  ;;  %v4147_v37 = vadd.f32 0.2548296, %v4115_v57  ;;  %vm3701_vm3 = vcmp.ge.f32.partialorder %v9637_v46, 0.0  ;;  %v3635_v54 = vmul.f32 0.5, %v9638_v13  ;;  %v9642_v34 = vld [vmem:[#allocation6_spill] sm:$0xff]  ;;  %v9645_v46 = vld [vmem:[#allocation11_spill] sm:$0xff] }
 0xfd6   : > { %v4085_v45 = vadd.f32 -0.28449672, %v4053_v41  ;;  %v4468_v32 = vmul.f32 %v4436_v59, %v3636_v9  ;;  %v3733_v20 = vsel %vm3701_vm3, 1.0, %v9630_v28  ;;  %v3637_v55 = vmul.f32 0.5, %v9639_v44 }
 0xfd7   : > { %v4374_v26 = vsub.f32 1.0, %v4342_v1  ;;  %v4179_v23 = vmul.f32 %v9121_v29, %v4147_v37  ;;  %v4755_v0 = vsub.s32 5, %v9640_v53 }
 0xfd8   : > { %v4117_v38 = vmul.f32 %v9130_v63, %v4085_v45  ;;  %4634 = vmatprep.mubr.f32.mxu1 %v4468_v32  ;;  %v9643_v45 = vld [vmem:[#allocation8_spill] sm:$0xff] }
 0xfd9   : > { %v4406_v14 = vmul.f32 %v4374_v26, %v3734_v62  ;;  %v4339_v27 = vmul.f32 %v9635_v40, %v4179_v23  ;;  %v9346_v5 = vrot.slane %v6855_v2, %v4755_v0 }
 0xfda   : > { %v4149_v60 = vadd.f32 0.2548296, %v4117_v38 }
 0xfdb   : > { %v4438_v24 = vadd.f32 1.0, %v4406_v14  ;;  %v4371_v22 = vsub.f32 1.0, %v4339_v27  ;;  %v6836_v29 = vpop.eup %6835 }
 0xfdc   : > { %v4181_v48 = vmul.f32 %v9130_v63, %v4149_v60  ;;  %v9644_v60 = vld [vmem:[#allocation9_spill] sm:$0xff] }
 0xfdd   : > { %v4470_v4 = vmul.f32 %v4438_v24, %v3638_v42  ;;  %v4403_v56 = vmul.f32 %v4371_v22, %v3731_v16 }
 0xfde   : > { %v4341_v6 = vmul.f32 %v6836_v29, %v4181_v48 }
 0xfdf   : > { %4739 = vmatprep.mubr.f32.mxu0 %v4470_v4  ;;  %v4435_v12 = vadd.f32 1.0, %v4403_v56 }
 0xfe0   : > { %v4373_v10 = vsub.f32 1.0, %v4341_v6 }
 0xfe1   : > { %v4467_v51 = vmul.f32 %v4435_v12, %v3635_v54 }
 0xfe2   : > { %v4405_v58 = vmul.f32 %v4373_v10, %v3733_v20 }
 0xfe3   : > { %4635 = vmatmul.mubr.f32.gmra.mrb[78].mxu1 %v4467_v51 }
 0xfe4   : > { %v4437_v63 = vadd.f32 1.0, %v4405_v58 }
 0xfe6   : > { %v4469_v17 = vmul.f32 %v4437_v63, %v3637_v55  ;;  %v9646_v55 = vld [vmem:[#allocation10_spill] sm:$0xff] }
 0xfe8   : > { %4740 = vmatmul.mubr.f32.gmra.mrb[78].mxu0 %v4469_v17 }
0x1045   : > { %v5467_v47 = vpop.f32.mrb[64].mxu1 }
0x1046   : > { %v5468_v30 = vpop.f32.mrb[65].mxu1 }
0x1047   : > { %v5523_v49 = vpop.f32.mrb[64].mxu0  ;;  %v5469_v39 = vadd.f32 %v5468_v30, %v5467_v47 }
0x1048   : > { %v5524_v25 = vpop.f32.mrb[65].mxu0 }
0x1049   : > { %v5525_v35 = vadd.f32 %v5524_v25, %v5523_v49 }
0x104b   : > { %v4707_v52 = vadd.f32 %v5525_v35, %v5469_v39  ;;  %v9647_v35 = vld [vmem:[#allocation13_spill] sm:$0xff] }
0x104d   : > { %v4745_v11 = vadd.f32 %v4707_v52, %v9641_v61 }
0x104f   : > { %v9350_v19 = vadd.f32 %v9346_v5, %v4745_v11 }
0x1051   : > { %4765 = vst [vmem:[#allocation2] sm:$0xff] %v9350_v19  ;;  %4778 = vadd.xlane.f32.xlu0 (!%p5084_p5), %v9350_v19 }
0x1062   : > { %v5470_v31 = vpop.f32.mrb[66].mxu1 }
0x1063   : > { %v5471_v7 = vpop.f32.mrb[67].mxu1 }
0x1064   : > { %v5472_v36 = vadd.f32 %v5471_v7, %v5470_v31 }
0x1066   : > { %v5526_v28 = vpop.f32.mrb[66].mxu0 }
0x1067   : > { %v5527_v33 = vpop.f32.mrb[67].mxu0 }
0x1068   : > { %v5528_v8 = vadd.f32 %v5527_v33, %v5526_v28 }
0x106a   : > { %v4712_v3 = vadd.f32 %v5528_v8, %v5472_v36  ;;  %v9648_v8 = vld [vmem:[#allocation12_spill] sm:$0xff] }
0x106b   : > { %v5473_v43 = vpop.f32.mrb[68].mxu1 }
0x106c   : > { %v4746_v57 = vadd.f32 %v4712_v3, %v9642_v34  ;;  %v5529_v15 = vpop.f32.mrb[68].mxu0  ;;  %v5474_v9 = vpop.f32.mrb[69].mxu1 }
0x106d   : > { %v5475_v41 = vadd.f32 %v5474_v9, %v5473_v43  ;;  %v5530_v21 = vpop.f32.mrb[69].mxu0 }
0x106e   : > { %v9355_v59 = vadd.f32 %v9346_v5, %v4746_v57  ;;  %v5531_v1 = vadd.f32 %v5530_v21, %v5529_v15 }
0x1070   : > { %4766 = vst [vmem:[#allocation2 + $0x8] sm:$0xff] %v9355_v59  ;;  %v4717_v37 = vadd.f32 %v5531_v1, %v5475_v41  ;;  %4780 = vadd.xlane.f32.xlu0 (!%p5084_p5), %v9355_v59 }
0x1072   : > { %v4747_v32 = vadd.f32 %v4717_v37, %v9643_v45 }
0x1074   : > { %v9360_v26 = vadd.f32 %v9346_v5, %v4747_v32 }
0x1076   : > { %4767 = vst [vmem:[#allocation2 + $0x10] sm:$0xff] %v9360_v26  ;;  %4782 = vadd.xlane.f32.xlu1 (!%p5084_p5), %v9360_v26 }
0x107e   : > { %v5476_v23 = vpop.f32.mrb[70].mxu1 }
0x107f   : > { %v5477_v62 = vpop.f32.mrb[71].mxu1 }
0x1080   : > { %v5478_v38 = vadd.f32 %v5477_v62, %v5476_v23 }
0x1082   : > { %v5532_v50 = vpop.f32.mrb[70].mxu0 }
0x1083   : > { %v5533_v14 = vpop.f32.mrb[71].mxu0 }
0x1084   : > { %v5534_v40 = vadd.f32 %v5533_v14, %v5532_v50 }
0x1086   : > { %v4722_v27 = vadd.f32 %v5534_v40, %v5478_v38 }
0x1088   : > { %v4748_v18 = vadd.f32 %v4722_v27, %v9644_v60 }
0x1089   : > { %v5479_v42 = vpop.f32.mrb[72].mxu1 }
0x108a   : > { %v5535_v24 = vpop.f32.mrb[72].mxu0  ;;  %v5480_v22 = vpop.f32.mrb[73].mxu1  ;;  %v4760_v16 = vadd.f32 %v9346_v5, %v4748_v18 }
0x108b   : > { %v5481_v48 = vadd.f32 %v5480_v22, %v5479_v42  ;;  %v5536_v29 = vpop.f32.mrb[73].mxu0 }
0x108c   : > { %v5537_v4 = vadd.f32 %v5536_v29, %v5535_v24  ;;  %4768 = vst [vmem:[#allocation2 + $0x18] sm:$0xff] %v4760_v16  ;;  %4784 = vadd.xlane.f32.xlu1 (!%p5084_p5), %v4760_v16 }
0x108e   : > { %v4727_v56 = vadd.f32 %v5537_v4, %v5481_v48 }
0x1090   : > { %v4749_v6 = vadd.f32 %v4727_v56, %v9645_v46 }
0x1092   : > { %v4761_v13 = vadd.f32 %v9346_v5, %v4749_v6 }
0x1094   : > { %4769 = vst [vmem:[#allocation2 + $0x20] sm:$0xff] %v4761_v13  ;;  %4786 = vadd.xlane.f32.xlu0 (!%p5084_p5), %v4761_v13 }
0x109a   : > { %v5482_v54 = vpop.f32.mrb[74].mxu1 }
0x109b   : > { %v5483_v12 = vpop.f32.mrb[75].mxu1 }
0x109c   : > { %v5484_v10 = vadd.f32 %v5483_v12, %v5482_v54 }
0x109e   : > { %v5538_v20 = vpop.f32.mrb[74].mxu0 }
0x109f   : > { %v5539_v51 = vpop.f32.mrb[75].mxu0 }
0x10a0   : > { %v5540_v58 = vadd.f32 %v5539_v51, %v5538_v20 }
0x10a2   : > { %v4732_v44 = vadd.f32 %v5540_v58, %v5484_v10 }
0x10a4   : > { %v4750_v63 = vadd.f32 %v4732_v44, %v9646_v55 }
0x10a5   : > { %v5485_v17 = vpop.f32.mrb[76].mxu1 }
0x10a6   : > { %v5541_v47 = vpop.f32.mrb[76].mxu0  ;;  %v5486_v49 = vpop.f32.mrb[77].mxu1  ;;  %v4762_v30 = vadd.f32 %v9346_v5, %v4750_v63 }
0x10a7   : > { %v5487_v53 = vadd.f32 %v5486_v49, %v5485_v17  ;;  %v5542_v0 = vpop.f32.mrb[77].mxu0  ;;  %v4777_v49 = vld [vmem:[%s9454_s2 + $0x40] sm:$0xff] (!%p5084_p5) }
0x10a8   : > { %v5543_v39 = vadd.f32 %v5542_v0, %v5541_v47  ;;  %4770 = vst [vmem:[#allocation2 + $0x28] sm:$0xff] %v4762_v30  ;;  %4788 = vadd.xlane.f32.xlu1 (!%p5084_p5), %v4762_v30 }
0x10aa   : > { %v4737_v25 = vadd.f32 %v5543_v39, %v5487_v53 }
0x10ac   : > { %v4751_v52 = vadd.f32 %v4737_v25, %v9647_v35 }
0x10ae   : > { %v4763_v2 = vadd.f32 %v9346_v5, %v4751_v52  ;;  %v9649_v52 = vld [vmem:[#allocation4_spill] sm:$0xff] (!%p5084_p5) }
0x10b0   : > { %4771 = vst [vmem:[#allocation2 + $0x30] sm:$0xff] %v4763_v2  ;;  %4790 = vadd.xlane.f32.xlu0 (!%p5084_p5), %v4763_v2 }
0x10b6   : > { %v5488_v61 = vpop.f32.mrb[78].mxu1 }
0x10b7   : > { %v5489_v11 = vpop.f32.mrb[79].mxu1 }
0x10b8   : > { %v5490_v31 = vadd.f32 %v5489_v11, %v5488_v61 }
0x10bb   : > { %v5544_v7 = vpop.f32.mrb[78].mxu0 }
0x10bc   : > { %v5545_v36 = vpop.f32.mrb[79].mxu0 }
0x10bd   : > { %v5546_v28 = vadd.f32 %v5545_v36, %v5544_v7  ;;  %v9650_v36 = vld [vmem:[#allocation5_spill] sm:$0xff] (!%p5084_p5) }
0x10bf   : > { %v4742_v33 = vadd.f32 %v5546_v28, %v5490_v31  ;;  %4776 = sbr.rel (%p5084_p5) target bundleno = 4605 (0x11fd), region = 64  ;;  %v4881_v28 = vrot.slane (!%p5084_p5), %v4777_v49, %v9650_v36 }
0x10c1   : > { %v4752_v3 = vadd.f32 %v4742_v33, %v9648_v8 }
0x10c3   : > { %v4764_v43 = vadd.f32 %v9346_v5, %v4752_v3 }
0x10c5   : > { %4772 = vst [vmem:[#allocation2 + $0x38] sm:$0xff] %v4764_v43  ;;  %4792 = vadd.xlane.f32.xlu1 (!%p5084_p5), %v4764_v43 }
0x10de   : > { %v4779_v34 = vpop.xlane.xlu0 %4778 }
0x10df   : > { %v4794_v15 = vmul.f32 0.0078125, %v4779_v34 }
0x10e1   : > { %v9378_v5 = vsub.f32 %v9350_v19, %v4794_v15 }
0x10e3   : > { %v4810_v45 = vmul.f32 %v9378_v5, %v9378_v5 }
0x10e5   : > { %4818 = vadd.xlane.f32.xlu0 %v4810_v45 }
0x10fd   : > { %v4781_v21 = vpop.xlane.xlu0 %4780 }
0x10fe   : > { %v4795_v37 = vmul.f32 0.0078125, %v4781_v21 }
0x1100   : > { %v9386_v23 = vsub.f32 %v9355_v59, %v4795_v37 }
0x1102   : > { %v4811_v14 = vmul.f32 %v9386_v23, %v9386_v23 }
0x1103   : > { %v4783_v57 = vpop.xlane.xlu1 %4782 }
0x1104   : > { %v4796_v9 = vmul.f32 0.0078125, %v4783_v57  ;;  %4820 = vadd.xlane.f32.xlu1 %v4811_v14 }
0x1106   : > { %v9381_v41 = vsub.f32 %v9360_v26, %v4796_v9 }
0x1108   : > { %v4812_v19 = vmul.f32 %v9381_v41, %v9381_v41 }
0x110a   : > { %4822 = vadd.xlane.f32.xlu0 %v4812_v19 }
0x1119   : > { %v4785_v1 = vpop.xlane.xlu1 %4784 }
0x111a   : > { %v4797_v32 = vmul.f32 0.0078125, %v4785_v1 }
0x111c   : > { %v9388_v62 = vsub.f32 %v4760_v16, %v4797_v32 }
0x111e   : > { %v4813_v59 = vmul.f32 %v9388_v62, %v9388_v62 }
0x1120   : > { %4824 = vadd.xlane.f32.xlu1 %v4813_v59 }
0x1121   : > { %v4787_v38 = vpop.xlane.xlu0 %4786 }
0x1122   : > { %v4798_v26 = vmul.f32 0.0078125, %v4787_v38 }
0x1124   : > { %v9394_v27 = vsub.f32 %v4761_v13, %v4798_v26 }
0x1126   : > { %v4814_v22 = vmul.f32 %v9394_v27, %v9394_v27 }
0x1128   : > { %4826 = vadd.xlane.f32.xlu0 %v4814_v22 }
0x1135   : > { %v4789_v50 = vpop.xlane.xlu1 %4788 }
0x1136   : > { %v4799_v40 = vmul.f32 0.0078125, %v4789_v50 }
0x1138   : > { %v9396_v60 = vsub.f32 %v4762_v30, %v4799_v40 }
0x113a   : > { %v4815_v4 = vmul.f32 %v9396_v60, %v9396_v60 }
0x113c   : > { %4828 = vadd.xlane.f32.xlu1 %v4815_v4 }
0x113d   : > { %v4791_v18 = vpop.xlane.xlu0 %4790 }
0x113e   : > { %v4800_v24 = vmul.f32 0.0078125, %v4791_v18 }
0x1140   : > { %v9402_v48 = vsub.f32 %v4763_v2, %v4800_v24  ;;  %v4869_v2 = vrot.slane %v4777_v49, %v9649_v52 }
0x1142   : > { %v4816_v56 = vmul.f32 %v9402_v48, %v9402_v48 }
0x1144   : > { %4830 = vadd.xlane.f32.xlu0 %v4816_v56 }
0x1152   : > { %v4793_v42 = vpop.xlane.xlu1 %4792 }
0x1153   : > { %v4801_v16 = vmul.f32 0.0078125, %v4793_v42 }
0x1155   : > { %v9404_v29 = vsub.f32 %v4764_v43, %v4801_v16 }
0x1157   : > { %v4817_v46 = vmul.f32 %v9404_v29, %v9404_v29 }
0x1159   : > { %4832 = vadd.xlane.f32.xlu1 %v4817_v46 }
0x1172   : > { %v4819_v6 = vpop.xlane.xlu0 %4818 }
0x1173   : > { %v4834_v13 = vmul.f32 0.0078125, %v4819_v6 }
0x1175   : > { %v4842_v54 = vadd.f32 1e-06, %v4834_v13 }
0x1177   : > { %6856 = vrsqrt.f32 %v4842_v54 }
0x1181   : > { %v6857_v61 = vpop.eup %6856 }
0x1182   : > { %v4858_v7 = vmul.f32 %v6857_v61, %v9378_v5 }
0x1184   : > { %v4870_v3 = vmul.f32 %v4869_v2, %v4858_v7 }
0x1186   : > { %v4882_v15 = vadd.f32 %v4881_v28, %v4870_v3 }
0x1188   : > { %4890 = vst [vmem:[%s9461_s9] sm:$0xff] %v4882_v15 }
0x1191   : > { %v4821_v12 = vpop.xlane.xlu1 %4820 }
0x1192   : > { %v4835_v20 = vmul.f32 0.0078125, %v4821_v12 }
0x1194   : > { %v4843_v58 = vadd.f32 1e-06, %v4835_v20 }
0x1196   : > { %6858 = vrsqrt.f32 %v4843_v58 }
0x1197   : > { %v4823_v10 = vpop.xlane.xlu0 %4822 }
0x1198   : > { %v4836_v51 = vmul.f32 0.0078125, %v4823_v10 }
0x119a   : > { %v4844_v44 = vadd.f32 1e-06, %v4836_v51 }
0x119c   : > { %6860 = vrsqrt.f32 %v4844_v44 }
0x11a0   : > { %v6859_v43 = vpop.eup %6858 }
0x11a1   : > { %v4859_v9 = vmul.f32 %v6859_v43, %v9386_v23 }
0x11a3   : > { %v4871_v5 = vmul.f32 %v4869_v2, %v4859_v9 }
0x11a5   : > { %v4883_v32 = vadd.f32 %v4881_v28, %v4871_v5 }
0x11a6   : > { %v6861_v57 = vpop.eup %6860 }
0x11a7   : > { %v4860_v21 = vmul.f32 %v6861_v57, %v9381_v41  ;;  %4891 = vst [vmem:[%s9461_s9 + $0x8] sm:$0xff] %v4883_v32 }
0x11a9   : > { %v4872_v37 = vmul.f32 %v4869_v2, %v4860_v21 }
0x11ab   : > { %v4884_v38 = vadd.f32 %v4881_v28, %v4872_v37 }
0x11ad   : > { %v4825_v55 = vpop.xlane.xlu1 %4824  ;;  %4892 = vst [vmem:[%s9461_s9 + $0x10] sm:$0xff] %v4884_v38 }
0x11ae   : > { %v4837_v17 = vmul.f32 0.0078125, %v4825_v55 }
0x11b0   : > { %v4845_v30 = vadd.f32 1e-06, %v4837_v17 }
0x11b2   : > { %6862 = vrsqrt.f32 %v4845_v30 }
0x11b5   : > { %v4827_v63 = vpop.xlane.xlu0 %4826 }
0x11b6   : > { %v4838_v47 = vmul.f32 0.0078125, %v4827_v63 }
0x11b8   : > { %v4846_v53 = vadd.f32 1e-06, %v4838_v47 }
0x11ba   : > { %6864 = vrsqrt.f32 %v4846_v53 }
0x11bc   : > { %v6863_v1 = vpop.eup %6862 }
0x11bd   : > { %v4861_v19 = vmul.f32 %v6863_v1, %v9388_v62 }
0x11bf   : > { %v4873_v41 = vmul.f32 %v4869_v2, %v4861_v19 }
0x11c1   : > { %v4885_v40 = vadd.f32 %v4881_v28, %v4873_v41 }
0x11c3   : > { %4893 = vst [vmem:[%s9461_s9 + $0x18] sm:$0xff] %v4885_v40 }
0x11c4   : > { %v6865_v45 = vpop.eup %6864 }
0x11c5   : > { %v4862_v50 = vmul.f32 %v6865_v45, %v9394_v27 }
0x11c7   : > { %v4874_v26 = vmul.f32 %v4869_v2, %v4862_v50 }
0x11c9   : > { %v4829_v0 = vpop.xlane.xlu1 %4828  ;;  %v4886_v18 = vadd.f32 %v4881_v28, %v4874_v26 }
0x11ca   : > { %v4839_v25 = vmul.f32 0.0078125, %v4829_v0 }
0x11cb   : > { %4894 = vst [vmem:[%s9461_s9 + $0x20] sm:$0xff] %v4886_v18 }
0x11cc   : > { %v4847_v11 = vadd.f32 1e-06, %v4839_v25 }
0x11ce   : > { %6866 = vrsqrt.f32 %v4847_v11 }
0x11d1   : > { %v4831_v39 = vpop.xlane.xlu0 %4830 }
0x11d2   : > { %v4840_v35 = vmul.f32 0.0078125, %v4831_v39 }
0x11d4   : > { %v4848_v31 = vadd.f32 1e-06, %v4840_v35 }
0x11d6   : > { %6868 = vrsqrt.f32 %v4848_v31 }
0x11d8   : > { %v6867_v23 = vpop.eup %6866 }
0x11d9   : > { %v4863_v59 = vmul.f32 %v6867_v23, %v9396_v60 }
0x11db   : > { %v4875_v27 = vmul.f32 %v4869_v2, %v4863_v59 }
0x11dd   : > { %v4887_v22 = vadd.f32 %v4881_v28, %v4875_v27 }
0x11df   : > { %4895 = vst [vmem:[%s9461_s9 + $0x28] sm:$0xff] %v4887_v22 }
0x11e0   : > { %v6869_v14 = vpop.eup %6868 }
0x11e1   : > { %v4864_v62 = vmul.f32 %v6869_v14, %v9402_v48 }
0x11e3   : > { %v4876_v24 = vmul.f32 %v4869_v2, %v4864_v62 }
0x11e5   : > { %v4888_v4 = vadd.f32 %v4881_v28, %v4876_v24 }
0x11e6   : > { %v4833_v33 = vpop.xlane.xlu1 %4832 }
0x11e7   : > { %v4841_v8 = vmul.f32 0.0078125, %v4833_v33  ;;  %4896 = vst [vmem:[%s9461_s9 + $0x30] sm:$0xff] %v4888_v4 }
0x11e9   : > { %v4849_v34 = vadd.f32 1e-06, %v4841_v8 }
0x11eb   : > { %6870 = vrsqrt.f32 %v4849_v34 }
0x11f5   : > { %v6871_v42 = vpop.eup %6870 }
0x11f6   : > { %v4865_v16 = vmul.f32 %v6871_v42, %v9404_v29 }
0x11f8   : > { %v4877_v60 = vmul.f32 %v4869_v2, %v4865_v16 }
0x11fa   : > { %v4889_v48 = vadd.f32 %v4881_v28, %v4877_v60 }
0x11fc   : > { %4897 = vst [vmem:[%s9461_s9 + $0x38] sm:$0xff] %v4889_v48 }
0x11fd PF: > { %s19_s30 = sadd.s32 1, %s6878_s30  }
0x11fe   : > { %p16_p6 = scmp.ge.s32.totalorder %s19_s30, 4  }
0x1200   :  { %18 = sbr.rel (!%p16_p6) target bundleno = 1 (0x1), region = 102 }

</bundles_post_ra>
